<compile_context>
chip_gen: v6e
topology: v6e:2x2x1
jax: 0.10.0
libtpu: 0.0.40
codegen_flags: <defaults>
</compile_context>

<pallas_src>
import functools

import jax
import jax.numpy as jnp
from jax import lax
from jax.experimental import pallas as pl
from jax.experimental.pallas import tpu as pltpu

EPS = 1e-5
LANE = 128
_SUB = 8  # sublane rows used by the per-channel moment accumulators


# ----------------------------------------------------------------------------- helpers
def _round_up(x, m):
    return (x + m - 1) // m * m


def _pad_axis(a, axis, target):
    pad = target - a.shape[axis]
    if pad == 0:
        return a
    cfg = [(0, 0)] * a.ndim
    cfg[axis] = (0, pad)
    return jnp.pad(a, cfg)


def _pad_last(a, target):
    return _pad_axis(a, a.ndim - 1, target)


_TILE_CANDS = (2048, 1024, 512, 256, 128, 64, 32, 16, 8)


def _split_tiles(m, cap=2048):
    """Row tile + (core-split, steps-per-core) for the stats/reduction passes."""
    cands = [t for t in _TILE_CANDS if t <= cap and m % t == 0]
    for t in cands:  # prefer an even tile count -> 2-way "parallel" core split (v7x)
        if (m // t) % 2 == 0:
            return t, 2, m // (2 * t)
    if cands:
        return cands[0], 1, m // cands[0]
    return m, 1, 1


def _flat_tiles(m, cap=1024):
    """Row tile for the 'parallel' final pass (prefer >=2 tiles for megacore)."""
    tm, ncore, steps = _split_tiles(m, cap)
    return tm, ncore * steps


def _pick_th(ho, wo):
    """Largest output-row tile keeping the (th*wo, C) conv2 slab a well-filled MXU dot."""
    best = 1
    for t in range(1, ho + 1):
        if ho % t == 0 and t * wo <= 2048:
            best = t
    return best


def _cparams(sem):
    # 32 MiB scoped VMEM: within budget on v5e/v6e (128 MiB) and v7x (64 MiB physical).
    return pltpu.CompilerParams(dimension_semantics=sem,
                                vmem_limit_bytes=32 * 1024 * 1024)


def _stats_to_affine(s, ss, gamma, beta, m):
    # (sum, sumsq) -> per-channel BN affine (scale, shift); biased variance, train mode.
    mean = s / m
    var = jnp.maximum(ss / m - mean * mean, 0.0)  # clamp: cancellation can dip below 0
    inv = lax.rsqrt(var + EPS)
    scale = gamma * inv
    shift = beta - mean * scale
    return scale, shift


def _combine_moments(sp, qp):
    # (G, 8, C) per-core / per-image partials -> (1, C) totals.
    return (jnp.sum(sp, axis=(0, 1)).reshape(1, -1),
            jnp.sum(qp, axis=(0, 1)).reshape(1, -1))


def _accum_moments(y, sum_ref, ssq_ref):
    # Accumulate per-channel sum / sum-of-squares of f32 `y` into (1, 8, C) refs.
    c = y.shape[-1]
    if y.shape[0] % _SUB == 0:
        yr = y.reshape(-1, _SUB, c)
        sum_ref[0] += jnp.sum(yr, axis=0)
        ssq_ref[0] += jnp.sum(yr * yr, axis=0)
    else:
        sum_ref[0, 0:1, :] += jnp.sum(y, axis=0, keepdims=True)
        ssq_ref[0, 0:1, :] += jnp.sum(y * y, axis=0, keepdims=True)


# ----------------------------------------------------------------------------- kernels
def _conv1_kernel(x_ref, w_ref, y_ref, sum_ref, ssq_ref):
    # conv1 (1x1) as matmul: emit raw y1 (bf16) AND accumulate BN1 batch moments.
    @pl.when(pl.program_id(1) == 0)
    def _init():
        sum_ref[...] = jnp.zeros_like(sum_ref)
        ssq_ref[...] = jnp.zeros_like(ssq_ref)

    y = jnp.dot(x_ref[...], w_ref[...], preferred_element_type=jnp.float32)
    _accum_moments(y, sum_ref, ssq_ref)
    y_ref[...] = y.astype(y_ref.dtype)


def _conv2_kernel(y1_ref, sc1_ref, sh1_ref, w_ref, y2_ref, sum_ref, ssq_ref, xpad_ref,
                  *, th, wo, stride):
    # 3x3 conv (pad=1, stride) on one image; BN1 affine+relu applied in-VMEM, halo
    # built in a VMEM scratch, BN2 moments accumulated in the same pass.
    h, w, c = y1_ref.shape[1], y1_ref.shape[2], y1_ref.shape[3]
    hi = pl.program_id(1)

    @pl.when(hi == 0)
    def _prep():
        sum_ref[...] = jnp.zeros_like(sum_ref)
        ssq_ref[...] = jnp.zeros_like(ssq_ref)
        xpad_ref[...] = jnp.zeros_like(xpad_ref)
        a1 = y1_ref[0].astype(jnp.float32) * sc1_ref[...] + sh1_ref[...]
        xpad_ref[1:h + 1, 1:w + 1, :] = jnp.maximum(a1, 0.0).astype(xpad_ref.dtype)

    # Per kh row: the three kw shifts are stacked along K (K = 3*C), so each grid step
    # issues only 3 MXU dots with M = th*wo rows (instead of 9*th tiny dots).
    oh0 = hi * th
    acc = jnp.zeros((th * wo, c), jnp.float32)
    for dh in range(3):
        if stride == 1:
            slab = xpad_ref[pl.ds(oh0 + dh, th)]                     # (th, Wp, C)
            shifted = [slab[:, dw:dw + wo, :] for dw in range(3)]
        else:
            # TODO(synk): stride>1 path uses strided in-VMEM slices (saves the stride^2
            #             FLOPs and the host-side subsample copy) but is not exercised
            #             by the small test and is less tuned than the stride==1 path.
            rows = (th - 1) * stride + 1
            full = xpad_ref[pl.ds(oh0 * stride + dh, rows)]
            slab = lax.slice(full, (0, 0, 0), (rows, full.shape[1], c), (stride, 1, 1))
            shifted = [lax.slice(slab, (0, dw, 0),
                                 (th, dw + (wo - 1) * stride + 1, c), (1, stride, 1))
                       for dw in range(3)]
        cat = jnp.concatenate(shifted, axis=-1).reshape(th * wo, 3 * c)
        acc = acc + jnp.dot(cat, w_ref[dh], preferred_element_type=jnp.float32)

    y2_ref[...] = acc.reshape(1, th, wo, c).astype(y2_ref.dtype)
    _accum_moments(acc, sum_ref, ssq_ref)


def _stats3_sc_kernel(y2_ref, sc2_ref, sh2_ref, w3_ref, xs_ref, ws_ref,
                      s3_ref, q3_ref, ss_ref, qs_ref):
    # Merged conv3-stats + shortcut-conv-stats pass; BN2 affine+relu applied in-kernel.
    @pl.when(pl.program_id(1) == 0)
    def _init():
        for r in (s3_ref, q3_ref, ss_ref, qs_ref):
            r[...] = jnp.zeros_like(r)

    a2 = jnp.maximum(y2_ref[...].astype(jnp.float32) * sc2_ref[...] + sh2_ref[...], 0.0)
    y3 = jnp.dot(a2.astype(jnp.bfloat16), w3_ref[...], preferred_element_type=jnp.float32)
    _accum_moments(y3, s3_ref, q3_ref)
    ys = jnp.dot(xs_ref[...], ws_ref[...], preferred_element_type=jnp.float32)
    _accum_moments(ys, ss_ref, qs_ref)


def _stats3_id_kernel(y2_ref, sc2_ref, sh2_ref, w3_ref, s3_ref, q3_ref):
    @pl.when(pl.program_id(1) == 0)
    def _init():
        s3_ref[...] = jnp.zeros_like(s3_ref)
        q3_ref[...] = jnp.zeros_like(q3_ref)

    a2 = jnp.maximum(y2_ref[...].astype(jnp.float32) * sc2_ref[...] + sh2_ref[...], 0.0)
    y3 = jnp.dot(a2.astype(jnp.bfloat16), w3_ref[...], preferred_element_type=jnp.float32)
    _accum_moments(y3, s3_ref, q3_ref)


def _final_sc_kernel(y2_ref, sc2_ref, sh2_ref, w3s_ref, xs_ref, wss_ref, shift_ref, o_ref):
    # BN2 affine+relu + conv3 (scale folded into weights) + shortcut conv (scale folded)
    # + combined shift + relu, fully fused per M-tile.
    a2 = jnp.maximum(y2_ref[...].astype(jnp.float32) * sc2_ref[...] + sh2_ref[...], 0.0)
    acc = jnp.dot(a2.astype(jnp.bfloat16), w3s_ref[...], preferred_element_type=jnp.float32)
    acc = acc + jnp.dot(xs_ref[...], wss_ref[...], preferred_element_type=jnp.float32)
    o_ref[...] = jnp.maximum(acc + shift_ref[...], 0.0).astype(o_ref.dtype)


def _final_id_kernel(y2_ref, sc2_ref, sh2_ref, w3s_ref, sh3_ref, res_ref, o_ref):
    # Identity shortcut (is_client path of shortcut1/2/3).
    a2 = jnp.maximum(y2_ref[...].astype(jnp.float32) * sc2_ref[...] + sh2_ref[...], 0.0)
    acc = jnp.dot(a2.astype(jnp.bfloat16), w3s_ref[...], preferred_element_type=jnp.float32)
    o_ref[...] = jnp.maximum(acc + sh3_ref[...] + res_ref[...].astype(jnp.float32),
                             0.0).astype(o_ref.dtype)


# ----------------------------------------------------------------------------- wrappers
def _conv1(x, w):
    m, k = x.shape
    c = w.shape[1]
    tm, ncore, steps = _split_tiles(m)
    row = lambda g, i: (g * steps + i, 0)
    acc_spec = pl.BlockSpec((1, _SUB, c), lambda g, i: (g, 0, 0))
    return pl.pallas_call(
        _conv1_kernel,
        out_shape=(jax.ShapeDtypeStruct((m, c), jnp.bfloat16),
                   jax.ShapeDtypeStruct((ncore, _SUB, c), jnp.float32),
                   jax.ShapeDtypeStruct((ncore, _SUB, c), jnp.float32)),
        grid=(ncore, steps),
        in_specs=[pl.BlockSpec((tm, k), row),
                  pl.BlockSpec((k, c), lambda g, i: (0, 0))],
        out_specs=(pl.BlockSpec((tm, c), row), acc_spec, acc_spec),
        compiler_params=_cparams(("parallel", "arbitrary")),
    )(x, w)


def _conv2_bn1(y1_img, sc1, sh1, w2k, *, stride):
    n, h, w, c = y1_img.shape
    ho = (h - 1) // stride + 1
    wo = (w - 1) // stride + 1
    th = _pick_th(ho, wo)
    hp, wp = h + 2, w + 2
    acc_spec = pl.BlockSpec((1, _SUB, c), lambda ni, hi: (ni, 0, 0))
    return pl.pallas_call(
        functools.partial(_conv2_kernel, th=th, wo=wo, stride=stride),
        out_shape=(jax.ShapeDtypeStruct((n, ho, wo, c), jnp.bfloat16),
                   jax.ShapeDtypeStruct((n, _SUB, c), jnp.float32),
                   jax.ShapeDtypeStruct((n, _SUB, c), jnp.float32)),
        grid=(n, ho // th),
        in_specs=[pl.BlockSpec((1, h, w, c), lambda ni, hi: (ni, 0, 0, 0)),
                  pl.BlockSpec((1, c), lambda ni, hi: (0, 0)),
                  pl.BlockSpec((1, c), lambda ni, hi: (0, 0)),
                  pl.BlockSpec((3, 3 * c, c), lambda ni, hi: (0, 0, 0))],
        out_specs=(pl.BlockSpec((1, th, wo, c), lambda ni, hi: (ni, hi, 0, 0)),
                   acc_spec, acc_spec),
        scratch_shapes=[pltpu.VMEM((hp, wp, c), jnp.bfloat16)],
        compiler_params=_cparams(("parallel", "arbitrary")),
    )(y1_img, sc1, sh1, w2k)


def _stats3_sc(y2f, sc2, sh2, w3, xs, ws):
    m, c2 = y2f.shape
    kin = xs.shape[1]
    ce = w3.shape[1]
    tm, ncore, steps = _split_tiles(m)
    row = lambda g, i: (g * steps + i, 0)
    const = lambda shape: pl.BlockSpec(shape, lambda g, i: (0,) * len(shape))
    acc_spec = pl.BlockSpec((1, _SUB, ce), lambda g, i: (g, 0, 0))
    return pl.pallas_call(
        _stats3_sc_kernel,
        out_shape=tuple(jax.ShapeDtypeStruct((ncore, _SUB, ce), jnp.float32)
                        for _ in range(4)),
        grid=(ncore, steps),
        in_specs=[pl.BlockSpec((tm, c2), row), const((1, c2)), const((1, c2)),
                  const((c2, ce)), pl.BlockSpec((tm, kin), row), const((kin, ce))],
        out_specs=(acc_spec,) * 4,
        compiler_params=_cparams(("parallel", "arbitrary")),
    )(y2f, sc2, sh2, w3, xs, ws)


def _stats3_id(y2f, sc2, sh2, w3):
    m, c2 = y2f.shape
    ce = w3.shape[1]
    tm, ncore, steps = _split_tiles(m)
    row = lambda g, i: (g * steps + i, 0)
    const = lambda shape: pl.BlockSpec(shape, lambda g, i: (0,) * len(shape))
    acc_spec = pl.BlockSpec((1, _SUB, ce), lambda g, i: (g, 0, 0))
    return pl.pallas_call(
        _stats3_id_kernel,
        out_shape=tuple(jax.ShapeDtypeStruct((ncore, _SUB, ce), jnp.float32)
                        for _ in range(2)),
        grid=(ncore, steps),
        in_specs=[pl.BlockSpec((tm, c2), row), const((1, c2)), const((1, c2)),
                  const((c2, ce))],
        out_specs=(acc_spec, acc_spec),
        compiler_params=_cparams(("parallel", "arbitrary")),
    )(y2f, sc2, sh2, w3)


def _final_sc(y2f, sc2, sh2, w3s, xs, wss, shift):
    m, c2 = y2f.shape
    kin = xs.shape[1]
    ce = w3s.shape[1]
    tm, ntiles = _flat_tiles(m)
    row = lambda i: (i, 0)
    const = lambda shape: pl.BlockSpec(shape, lambda i: (0,) * len(shape))
    return pl.pallas_call(
        _final_sc_kernel,
        out_shape=jax.ShapeDtypeStruct((m, ce), jnp.float32),
        grid=(ntiles,),
        in_specs=[pl.BlockSpec((tm, c2), row), const((1, c2)), const((1, c2)),
                  const((c2, ce)), pl.BlockSpec((tm, kin), row), const((kin, ce)),
                  const((1, ce))],
        out_specs=pl.BlockSpec((tm, ce), row),
        compiler_params=_cparams(("parallel",)),
    )(y2f, sc2, sh2, w3s, xs, wss, shift)


def _final_id(y2f, sc2, sh2, w3s, sh3, res):
    m, c2 = y2f.shape
    ce = w3s.shape[1]
    tm, ntiles = _flat_tiles(m)
    row = lambda i: (i, 0)
    const = lambda shape: pl.BlockSpec(shape, lambda i: (0,) * len(shape))
    return pl.pallas_call(
        _final_id_kernel,
        out_shape=jax.ShapeDtypeStruct((m, ce), jnp.float32),
        grid=(ntiles,),
        in_specs=[pl.BlockSpec((tm, c2), row), const((1, c2)), const((1, c2)),
                  const((c2, ce)), const((1, ce)), pl.BlockSpec((tm, ce), row)],
        out_specs=pl.BlockSpec((tm, ce), row),
        compiler_params=_cparams(("parallel",)),
    )(y2f, sc2, sh2, w3s, sh3, res)


# ----------------------------------------------------------------------------- forward
def unordered_bottleneck_forward(x_nchw, params, *, stride=1):
    expansion = 4
    w1, w2, w3 = params["w1"], params["w2"], params["w3"]
    in_planes, planes = w1.shape
    cexp = expansion * planes

    cin_p = _round_up(in_planes, LANE)
    p_p = _round_up(planes, LANE)
    e_p = _round_up(cexp, LANE)

    # one NCHW -> NHWC transpose; pad channels to lane width; bf16 activations.
    x = jnp.transpose(x_nchw, (0, 2, 3, 1)).astype(jnp.float32)
    n, h, w, _ = x.shape
    xp = _pad_last(x, cin_p).astype(jnp.bfloat16)
    m1 = n * h * w
    x_flat = xp.reshape(m1, cin_p)

    # zero-padded weights (padded output channels stay exactly zero)
    w1p = _pad_axis(_pad_axis(w1, 0, cin_p), 1, p_p).astype(jnp.bfloat16)
    w2hwio = _pad_axis(_pad_axis(w2, 2, p_p), 3, p_p)             # (3, 3, p_p, p_p) f32
    # per-kh taps stacked along K (input channel) in kw order, matching the in-kernel
    # concat of the three kw-shifted slabs.
    w2k = jnp.stack(
        [jnp.concatenate([w2hwio[dh, 0], w2hwio[dh, 1], w2hwio[dh, 2]], axis=0)
         for dh in range(3)], axis=0).astype(jnp.bfloat16)        # (3, 3*p_p, p_p)
    w3p = _pad_axis(_pad_axis(w3, 0, p_p), 1, e_p)                # keep f32, fold later

    # padded gamma=0 / beta=0 keep padded channels identically zero through BN.
    g1 = _pad_last(params["g1"], p_p); b1 = _pad_last(params["b1"], p_p)
    g2 = _pad_last(params["g2"], p_p); b2 = _pad_last(params["b2"], p_p)
    g3 = _pad_last(params["g3"], e_p); b3 = _pad_last(params["b3"], e_p)

    # ---- conv1 (1x1): one pass emits raw y1 + global BN1 batch moments ----------
    y1, s1p, q1p = _conv1(x_flat, w1p)
    s1, q1 = _combine_moments(s1p, q1p)
    sc1, sh1 = _stats_to_affine(s1, q1, g1, b1, m1)

    # ---- conv2 (3x3, pad=1, stride): BN1 affine+relu + halo + taps + BN2 stats ---
    y1_img = y1.reshape(n, h, w, p_p)
    y2, s2p, q2p = _conv2_bn1(y1_img, sc1, sh1, w2k, stride=stride)
    ho, wo = y2.shape[1], y2.shape[2]
    m2 = n * ho * wo
    y2f = y2.reshape(m2, p_p)
    s2, q2 = _combine_moments(s2p, q2p)
    sc2, sh2 = _stats_to_affine(s2, q2, g2, b2, m2)

    # ---- conv3 + BN3 + shortcut + add + relu --------------------------------------
    if stride != 1 or in_planes != cexp:
        wsp = _pad_axis(_pad_axis(params["ws"], 0, cin_p), 1, e_p)
        gs = _pad_last(params["gs"], e_p); bs = _pad_last(params["bs"], e_p)
        if stride == 1:
            xs_flat = x_flat
        else:
            # TODO(synk): read the strided shortcut input via a strided index_map /
            #             pl.ds(stride) instead of this host-side XLA strided copy.
            xs_flat = xp[:, ::stride, ::stride, :].reshape(m2, cin_p)
        s3p, q3p, ssp, qsp = _stats3_sc(y2f, sc2, sh2, w3p.astype(jnp.bfloat16),
                                        xs_flat, wsp.astype(jnp.bfloat16))
        s3, q3 = _combine_moments(s3p, q3p)
        ss, qs = _combine_moments(ssp, qsp)
        sc3, sh3 = _stats_to_affine(s3, q3, g3, b3, m2)
        scs, shs = _stats_to_affine(ss, qs, gs, bs, m2)
        w3s = (w3p * sc3).astype(jnp.bfloat16)   # fold BN3 scale into weight columns
        wss = (wsp * scs).astype(jnp.bfloat16)   # fold shortcut-BN scale
        out_flat = _final_sc(y2f, sc2, sh2, w3s, xs_flat, wss, sh3 + shs)
    else:
        # identity shortcut (is_client path of shortcut1/2/3); here cin_p == e_p.
        s3p, q3p = _stats3_id(y2f, sc2, sh2, w3p.astype(jnp.bfloat16))
        s3, q3 = _combine_moments(s3p, q3p)
        sc3, sh3 = _stats_to_affine(s3, q3, g3, b3, m2)
        w3s = (w3p * sc3).astype(jnp.bfloat16)
        out_flat = _final_id(y2f, sc2, sh2, w3s, sh3, x_flat)

    out = out_flat.reshape(n, ho, wo, e_p)[:, :, :, :cexp]
    return jnp.transpose(out, (0, 3, 1, 2))  # back to NCHW


# ----------------------------------------------------------------------------- reference
def _reference_forward(x_nchw, params, *, stride=1):
    """Pure-JAX f32 reference of the same forward (for a tolerance check)."""
    x = jnp.transpose(x_nchw, (0, 2, 3, 1)).astype(jnp.float32)
    in_planes, planes = params["w1"].shape
    cexp = 4 * planes

    def bn(y, gamma, beta):
        mean = jnp.mean(y, axis=(0, 1, 2), keepdims=True)
        var = jnp.mean(jnp.square(y - mean), axis=(0, 1, 2), keepdims=True)
        return ((y - mean) * lax.rsqrt(var + EPS) * gamma.reshape(1, 1, 1, -1)
                + beta.reshape(1, 1, 1, -1))

    y = jnp.einsum("nhwc,cd->nhwd", x, params["w1"])
    y = jnp.maximum(bn(y, params["g1"], params["b1"]), 0.0)
    y = lax.conv_general_dilated(y, params["w2"], (stride, stride), ((1, 1), (1, 1)),
                                 dimension_numbers=("NHWC", "HWIO", "NHWC"))
    y = jnp.maximum(bn(y, params["g2"], params["b2"]), 0.0)
    y = jnp.einsum("nhwc,cd->nhwd", y, params["w3"])
    y = bn(y, params["g3"], params["b3"])
    if stride != 1 or in_planes != cexp:
        xs = x[:, ::stride, ::stride, :]
        sc = jnp.einsum("nhwc,cd->nhwd", xs, params["ws"])
        sc = bn(sc, params["gs"], params["bs"])
    else:
        sc = x
    out = jnp.maximum(y + sc, 0.0)
    return jnp.transpose(out, (0, 3, 1, 2))


# ----------------------------------------------------------------------------- params
def init_params(key, in_planes, planes):
    expansion = 4
    ks = jax.random.split(key, 4)
    scale = 0.1
    params = {
        "w1": scale * jax.random.normal(ks[0], (in_planes, planes), jnp.float32),
        "w2": scale * jax.random.normal(ks[1], (3, 3, planes, planes), jnp.float32),  # HWIO
        "w3": scale * jax.random.normal(ks[2], (planes, expansion * planes), jnp.float32),
        "ws": scale * jax.random.normal(ks[3], (in_planes, expansion * planes), jnp.float32),
    }
    for name, c in (("1", planes), ("2", planes),
                    ("3", expansion * planes), ("s", expansion * planes)):
        params["g" + name] = jnp.ones((1, c), jnp.float32)   # BN gamma init
        params["b" + name] = jnp.zeros((1, c), jnp.float32)  # BN beta init
    return params


def _check(x, params, stride, tag):
    fwd = jax.jit(functools.partial(unordered_bottleneck_forward, stride=stride))
    out = fwd(x, params)
    jax.block_until_ready(out)
    n, cin, h, w = x.shape
    planes = params["w1"].shape[1]
    assert out.shape == (n, 4 * planes, h // stride, w // stride), (tag, out.shape)
    assert bool(jnp.all(out >= 0.0)), f"{tag}: ReLU output must be non-negative"
    ref = _reference_forward(x, params, stride=stride)
    max_err = float(jnp.max(jnp.abs(out - ref)))
    assert bool(jnp.allclose(out, ref, atol=0.1, rtol=0.1)), f"{tag}: max abs err {max_err}"


if __name__ == "__main__":
    key = jax.random.PRNGKey(0)
    n, h, w, planes = 2, 16, 16, 4

    # conv-shortcut branch (in_planes != 4*planes)
    k1, k2, k3, k4 = jax.random.split(key, 4)
    x_a = jax.random.normal(k1, (n, 4, h, w), jnp.float32)          # NCHW input
    params_a = init_params(k2, 4, planes)
    _check(x_a, params_a, stride=1, tag="conv_shortcut")

    # identity-shortcut branch (in_planes == 4*planes, stride == 1)
    x_b = jax.random.normal(k3, (n, 16, h, w), jnp.float32)
    params_b = init_params(k4, 16, planes)
    _check(x_b, params_b, stride=1, tag="identity_shortcut")

    print("KERNEL_OK")
</pallas_src>

<mosaic_0001>
module attributes {stable_mosaic.version = 11 : i64} {
  func.func @_conv1_kernel(%arg0: i32, %arg1: i32, %arg2: memref<256x128xbf16, #tpu.memory_space<vmem>>, %arg3: memref<128x128xbf16, #tpu.memory_space<vmem>>, %arg4: memref<256x128xbf16, #tpu.memory_space<vmem>>, %arg5: memref<1x8x128xf32, #tpu.memory_space<vmem>>, %arg6: memref<1x8x128xf32, #tpu.memory_space<vmem>>) attributes {dimension_semantics = [#tpu.dimension_semantics<parallel>, #tpu.dimension_semantics<arbitrary>], iteration_bounds = array<i64: 2, 1>, scalar_prefetch = 0 : i64, scratch_operands = 0 : i64, tpu.core_type = #tpu.core_type<tc>, window_params = [{transform_indices = @transform_0, window_bounds = array<i64: 256, 128>}, {pipeline_mode = #tpu.pipeline_mode<synchronous>, transform_indices = @transform_1, window_bounds = array<i64: 128, 128>}, {transform_indices = @transform_2, window_bounds = array<i64: 256, 128>}, {transform_indices = @transform_3, window_bounds = array<i64: 1, 8, 128>}, {transform_indices = @transform_4, window_bounds = array<i64: 1, 8, 128>}]} {
    %c0_i32 = arith.constant 0 : i32
    %0 = arith.cmpi eq, %arg1, %c0_i32 : i32
    %1 = arith.extui %0 : i1 to i32
    %c0_i32_0 = arith.constant 0 : i32
    %2 = arith.cmpi ne, %1, %c0_i32_0 : i32
    scf.if %2 {
      %cst_20 = arith.constant 0.000000e+00 : f32
      %24 = vector.broadcast %cst_20 : f32 to vector<1x8x128xf32>
      %c0_21 = arith.constant 0 : index
      %c0_22 = arith.constant 0 : index
      %c0_23 = arith.constant 0 : index
      %25 = vector.load %arg5[%c0_21, %c0_22, %c0_23] : memref<1x8x128xf32, #tpu.memory_space<vmem>>, vector<1x8x128xf32>
      tpu.vector_store %arg5[%c0_21, %c0_22, %c0_23], %24 {strides = array<i32>} : memref<1x8x128xf32, #tpu.memory_space<vmem>>, vector<1x8x128xf32>,
      %cst_24 = arith.constant 0.000000e+00 : f32
      %26 = vector.broadcast %cst_24 : f32 to vector<1x8x128xf32>
      %c0_25 = arith.constant 0 : index
      %c0_26 = arith.constant 0 : index
      %c0_27 = arith.constant 0 : index
      %27 = vector.load %arg6[%c0_25, %c0_26, %c0_27] : memref<1x8x128xf32, #tpu.memory_space<vmem>>, vector<1x8x128xf32>
      tpu.vector_store %arg6[%c0_25, %c0_26, %c0_27], %26 {strides = array<i32>} : memref<1x8x128xf32, #tpu.memory_space<vmem>>, vector<1x8x128xf32>,
    } else {
    }
    %c0 = arith.constant 0 : index
    %c0_1 = arith.constant 0 : index
    %3 = vector.load %arg2[%c0, %c0_1] : memref<256x128xbf16, #tpu.memory_space<vmem>>, vector<256x128xbf16>
    %c0_2 = arith.constant 0 : index
    %c0_3 = arith.constant 0 : index
    %4 = vector.load %arg3[%c0_2, %c0_3] : memref<128x128xbf16, #tpu.memory_space<vmem>>, vector<128x128xbf16>
    %cst = arith.constant dense<0.000000e+00> : vector<256x128xf32>
    %5 = tpu.matmul %3, %4, %cst {dimension_numbers = #tpu.dot_dimension_numbers<[1], [0], [0], [1], [0, 0, 1, 1], [], []>} : vector<256x128xbf16>, vector<128x128xbf16>, vector<256x128xf32> -> vector<256x128xf32>
    %6 = vector.shape_cast %5 : vector<256x128xf32> to vector<32x8x128xf32>
    %c0_4 = arith.constant 0 : index
    %c0_5 = arith.constant 0 : index
    %c0_6 = arith.constant 0 : index
    %7 = vector.load %arg5[%c0_4, %c0_5, %c0_6] : memref<1x8x128xf32, #tpu.memory_space<vmem>>, vector<1x8x128xf32>
    %8 = vector.shape_cast %7 : vector<1x8x128xf32> to vector<8x128xf32>
    %cst_7 = arith.constant dense<0.000000e+00> : vector<8x128xf32>
    %9 = vector.multi_reduction <add>, %6, %cst_7 [0] : vector<32x8x128xf32> to vector<8x128xf32>
    %10 = arith.addf %8, %9 : vector<8x128xf32>
    %c0_8 = arith.constant 0 : index
    %c0_9 = arith.constant 0 : index
    %c0_10 = arith.constant 0 : index
    %11 = vector.load %arg5[%c0_8, %c0_9, %c0_10] : memref<1x8x128xf32, #tpu.memory_space<vmem>>, vector<1x8x128xf32>
    %12 = vector.shape_cast %11 : vector<1x8x128xf32> to vector<8x128xf32>
    %13 = vector.shape_cast %10 : vector<8x128xf32> to vector<1x8x128xf32>
    tpu.vector_store %arg5[%c0_8, %c0_9, %c0_10], %13 {strides = array<i32>} : memref<1x8x128xf32, #tpu.memory_space<vmem>>, vector<1x8x128xf32>,
    %c0_11 = arith.constant 0 : index
    %c0_12 = arith.constant 0 : index
    %c0_13 = arith.constant 0 : index
    %14 = vector.load %arg6[%c0_11, %c0_12, %c0_13] : memref<1x8x128xf32, #tpu.memory_space<vmem>>, vector<1x8x128xf32>
    %15 = vector.shape_cast %14 : vector<1x8x128xf32> to vector<8x128xf32>
    %16 = arith.mulf %6, %6 : vector<32x8x128xf32>
    %cst_14 = arith.constant dense<0.000000e+00> : vector<8x128xf32>
    %17 = vector.multi_reduction <add>, %16, %cst_14 [0] : vector<32x8x128xf32> to vector<8x128xf32>
    %18 = arith.addf %15, %17 : vector<8x128xf32>
    %c0_15 = arith.constant 0 : index
    %c0_16 = arith.constant 0 : index
    %c0_17 = arith.constant 0 : index
    %19 = vector.load %arg6[%c0_15, %c0_16, %c0_17] : memref<1x8x128xf32, #tpu.memory_space<vmem>>, vector<1x8x128xf32>
    %20 = vector.shape_cast %19 : vector<1x8x128xf32> to vector<8x128xf32>
    %21 = vector.shape_cast %18 : vector<8x128xf32> to vector<1x8x128xf32>
    tpu.vector_store %arg6[%c0_15, %c0_16, %c0_17], %21 {strides = array<i32>} : memref<1x8x128xf32, #tpu.memory_space<vmem>>, vector<1x8x128xf32>,
    %22 = arith.truncf %5 : vector<256x128xf32> to vector<256x128xbf16>
    %c0_18 = arith.constant 0 : index
    %c0_19 = arith.constant 0 : index
    %23 = vector.load %arg4[%c0_18, %c0_19] : memref<256x128xbf16, #tpu.memory_space<vmem>>, vector<256x128xbf16>
    tpu.vector_store %arg4[%c0_18, %c0_19], %22 {strides = array<i32>} : memref<256x128xbf16, #tpu.memory_space<vmem>>, vector<256x128xbf16>,
    return
  }
  func.func @transform_0(%arg0: i32, %arg1: i32) -> (i32, i32) {
    %c1_i32 = arith.constant 1 : i32
    %0 = arith.muli %arg0, %c1_i32 : i32
    %1 = arith.addi %0, %arg1 : i32
    %c0_i32 = arith.constant 0 : i32
    %c0_i32_0 = arith.constant 0 : i32
    return %1, %c0_i32 : i32, i32
  }
  func.func @transform_1(%arg0: i32, %arg1: i32) -> (i32, i32) {
    %c0_i32 = arith.constant 0 : i32
    %c0_i32_0 = arith.constant 0 : i32
    %c0_i32_1 = arith.constant 0 : i32
    return %c0_i32, %c0_i32_0 : i32, i32
  }
  func.func @transform_2(%arg0: i32, %arg1: i32) -> (i32, i32) {
    %c1_i32 = arith.constant 1 : i32
    %0 = arith.muli %arg0, %c1_i32 : i32
    %1 = arith.addi %0, %arg1 : i32
    %c0_i32 = arith.constant 0 : i32
    %c0_i32_0 = arith.constant 0 : i32
    return %1, %c0_i32 : i32, i32
  }
  func.func @transform_3(%arg0: i32, %arg1: i32) -> (i32, i32, i32) {
    %c0_i32 = arith.constant 0 : i32
    %c0_i32_0 = arith.constant 0 : i32
    %c0_i32_1 = arith.constant 0 : i32
    return %arg0, %c0_i32, %c0_i32_0 : i32, i32, i32
  }
  func.func @transform_4(%arg0: i32, %arg1: i32) -> (i32, i32, i32) {
    %c0_i32 = arith.constant 0 : i32
    %c0_i32_0 = arith.constant 0 : i32
    %c0_i32_1 = arith.constant 0 : i32
    return %arg0, %c0_i32, %c0_i32_0 : i32, i32, i32
  }
}

module attributes {stable_mosaic.version = 11 : i64} {
  func.func @_conv2_kernel(%arg0: i32, %arg1: i32, %arg2: memref<1x16x16x128xbf16, #tpu.memory_space<vmem>>, %arg3: memref<1x128xf32, #tpu.memory_space<vmem>>, %arg4: memref<1x128xf32, #tpu.memory_space<vmem>>, %arg5: memref<3x384x128xbf16, #tpu.memory_space<vmem>>, %arg6: memref<1x16x16x128xbf16, #tpu.memory_space<vmem>>, %arg7: memref<1x8x128xf32, #tpu.memory_space<vmem>>, %arg8: memref<1x8x128xf32, #tpu.memory_space<vmem>>, %arg9: memref<18x18x128xbf16, #tpu.memory_space<vmem>>) attributes {dimension_semantics = [#tpu.dimension_semantics<parallel>, #tpu.dimension_semantics<arbitrary>], iteration_bounds = array<i64: 2, 1>, scalar_prefetch = 0 : i64, scratch_operands = 1 : i64, tpu.core_type = #tpu.core_type<tc>, window_params = [{transform_indices = @transform_0, window_bounds = array<i64: 1, 16, 16, 128>}, {pipeline_mode = #tpu.pipeline_mode<synchronous>, transform_indices = @transform_1, window_bounds = array<i64: 1, 128>}, {pipeline_mode = #tpu.pipeline_mode<synchronous>, transform_indices = @transform_2, window_bounds = array<i64: 1, 128>}, {pipeline_mode = #tpu.pipeline_mode<synchronous>, transform_indices = @transform_3, window_bounds = array<i64: 3, 384, 128>}, {transform_indices = @transform_4, window_bounds = array<i64: 1, 16, 16, 128>}, {transform_indices = @transform_5, window_bounds = array<i64: 1, 8, 128>}, {transform_indices = @transform_6, window_bounds = array<i64: 1, 8, 128>}]} {
    %c0_i32 = arith.constant 0 : i32
    %0 = arith.cmpi eq, %arg1, %c0_i32 : i32
    %1 = arith.extui %0 : i1 to i32
    %c0_i32_0 = arith.constant 0 : i32
    %2 = arith.cmpi ne, %1, %c0_i32_0 : i32
    scf.if %2 {
      %cst_35 = arith.constant 0.000000e+00 : f32
      %60 = vector.broadcast %cst_35 : f32 to vector<1x8x128xf32>
      %c0_36 = arith.constant 0 : index
      %c0_37 = arith.constant 0 : index
      %c0_38 = arith.constant 0 : index
      %61 = vector.load %arg7[%c0_36, %c0_37, %c0_38] : memref<1x8x128xf32, #tpu.memory_space<vmem>>, vector<1x8x128xf32>
      tpu.vector_store %arg7[%c0_36, %c0_37, %c0_38], %60 {strides = array<i32>} : memref<1x8x128xf32, #tpu.memory_space<vmem>>, vector<1x8x128xf32>,
      %cst_39 = arith.constant 0.000000e+00 : f32
      %62 = vector.broadcast %cst_39 : f32 to vector<1x8x128xf32>
      %c0_40 = arith.constant 0 : index
      %c0_41 = arith.constant 0 : index
      %c0_42 = arith.constant 0 : index
      %63 = vector.load %arg8[%c0_40, %c0_41, %c0_42] : memref<1x8x128xf32, #tpu.memory_space<vmem>>, vector<1x8x128xf32>
      tpu.vector_store %arg8[%c0_40, %c0_41, %c0_42], %62 {strides = array<i32>} : memref<1x8x128xf32, #tpu.memory_space<vmem>>, vector<1x8x128xf32>,
      %cst_43 = arith.constant 0.000000e+00 : bf16
      %64 = vector.broadcast %cst_43 : bf16 to vector<18x18x128xbf16>
      %c0_44 = arith.constant 0 : index
      %c0_45 = arith.constant 0 : index
      %c0_46 = arith.constant 0 : index
      %65 = vector.load %arg9[%c0_44, %c0_45, %c0_46] : memref<18x18x128xbf16, #tpu.memory_space<vmem>>, vector<18x18x128xbf16>
      tpu.vector_store %arg9[%c0_44, %c0_45, %c0_46], %64 {strides = array<i32>} : memref<18x18x128xbf16, #tpu.memory_space<vmem>>, vector<18x18x128xbf16>,
      %c0_47 = arith.constant 0 : index
      %c0_48 = arith.constant 0 : index
      %c0_49 = arith.constant 0 : index
      %c0_50 = arith.constant 0 : index
      %66 = vector.load %arg2[%c0_47, %c0_48, %c0_49, %c0_50] : memref<1x16x16x128xbf16, #tpu.memory_space<vmem>>, vector<1x16x16x128xbf16>
      %67 = vector.shape_cast %66 : vector<1x16x16x128xbf16> to vector<16x16x128xbf16>
      %68 = arith.extf %67 : vector<16x16x128xbf16> to vector<16x16x128xf32>
      %c0_51 = arith.constant 0 : index
      %c0_52 = arith.constant 0 : index
      %69 = vector.load %arg3[%c0_51, %c0_52] : memref<1x128xf32, #tpu.memory_space<vmem>>, vector<1x128xf32>
      %70 = vector.shape_cast %69 : vector<1x128xf32> to vector<1x1x128xf32>
      %71 = vector.broadcast %70 : vector<1x1x128xf32> to vector<16x16x128xf32>
      %72 = arith.mulf %68, %71 : vector<16x16x128xf32>
      %c0_53 = arith.constant 0 : index
      %c0_54 = arith.constant 0 : index
      %73 = vector.load %arg4[%c0_53, %c0_54] : memref<1x128xf32, #tpu.memory_space<vmem>>, vector<1x128xf32>
      %74 = vector.shape_cast %73 : vector<1x128xf32> to vector<1x1x128xf32>
      %75 = vector.broadcast %74 : vector<1x1x128xf32> to vector<16x16x128xf32>
      %76 = arith.addf %72, %75 : vector<16x16x128xf32>
      %cst_55 = arith.constant 0.000000e+00 : f32
      %77 = vector.broadcast %cst_55 : f32 to vector<16x16x128xf32>
      %78 = arith.maximumf %76, %77 : vector<16x16x128xf32>
      %79 = arith.truncf %78 : vector<16x16x128xf32> to vector<16x16x128xbf16>
      %c1_56 = arith.constant 1 : index
      %c1_57 = arith.constant 1 : index
      %c0_58 = arith.constant 0 : index
      %80 = vector.load %arg9[%c1_56, %c1_57, %c0_58] : memref<18x18x128xbf16, #tpu.memory_space<vmem>>, vector<16x16x128xbf16>
      tpu.vector_store %arg9[%c1_56, %c1_57, %c0_58], %79 {strides = array<i32>} : memref<18x18x128xbf16, #tpu.memory_space<vmem>>, vector<16x16x128xbf16>,
    } else {
    }
    %c16_i32 = arith.constant 16 : i32
    %3 = arith.muli %arg1, %c16_i32 : i32
    %cst = arith.constant 0.000000e+00 : f32
    %4 = vector.broadcast %cst : f32 to vector<256x128xf32>
    %c0_i32_1 = arith.constant 0 : i32
    %5 = arith.addi %3, %c0_i32_1 : i32
    %6 = arith.index_cast %5 : i32 to index
    %c0 = arith.constant 0 : index
    %c0_2 = arith.constant 0 : index
    %7 = vector.load %arg9[%6, %c0, %c0_2] : memref<18x18x128xbf16, #tpu.memory_space<vmem>>, vector<16x18x128xbf16>
    %8 = vector.extract_strided_slice %7 {offsets = [0, 0, 0], sizes = [16, 16, 128], strides = [1, 1, 1]} : vector<16x18x128xbf16> to vector<16x16x128xbf16>
    %9 = vector.extract_strided_slice %7 {offsets = [0, 1, 0], sizes = [16, 16, 128], strides = [1, 1, 1]} : vector<16x18x128xbf16> to vector<16x16x128xbf16>
    %10 = vector.extract_strided_slice %7 {offsets = [0, 2, 0], sizes = [16, 16, 128], strides = [1, 1, 1]} : vector<16x18x128xbf16> to vector<16x16x128xbf16>
    %11 = tpu.concatenate %8, %9, %10 in 2 : vector<16x16x128xbf16>, vector<16x16x128xbf16>, vector<16x16x128xbf16> -> vector<16x16x384xbf16>
    %12 = vector.shape_cast %11 : vector<16x16x384xbf16> to vector<256x384xbf16>
    %c0_3 = arith.constant 0 : index
    %c0_4 = arith.constant 0 : index
    %c0_5 = arith.constant 0 : index
    %13 = vector.load %arg5[%c0_3, %c0_4, %c0_5] : memref<3x384x128xbf16, #tpu.memory_space<vmem>>, vector<1x384x128xbf16>
    %14 = vector.shape_cast %13 : vector<1x384x128xbf16> to vector<384x128xbf16>
    %cst_6 = arith.constant dense<0.000000e+00> : vector<256x128xf32>
    %15 = tpu.matmul %12, %14, %cst_6 {dimension_numbers = #tpu.dot_dimension_numbers<[1], [0], [0], [1], [0, 0, 1, 1], [], []>} : vector<256x384xbf16>, vector<384x128xbf16>, vector<256x128xf32> -> vector<256x128xf32>
    %16 = arith.addf %4, %15 : vector<256x128xf32>
    %c1_i32 = arith.constant 1 : i32
    %17 = arith.addi %3, %c1_i32 : i32
    %18 = arith.index_cast %17 : i32 to index
    %c0_7 = arith.constant 0 : index
    %c0_8 = arith.constant 0 : index
    %19 = vector.load %arg9[%18, %c0_7, %c0_8] : memref<18x18x128xbf16, #tpu.memory_space<vmem>>, vector<16x18x128xbf16>
    %20 = vector.extract_strided_slice %19 {offsets = [0, 0, 0], sizes = [16, 16, 128], strides = [1, 1, 1]} : vector<16x18x128xbf16> to vector<16x16x128xbf16>
    %21 = vector.extract_strided_slice %19 {offsets = [0, 1, 0], sizes = [16, 16, 128], strides = [1, 1, 1]} : vector<16x18x128xbf16> to vector<16x16x128xbf16>
    %22 = vector.extract_strided_slice %19 {offsets = [0, 2, 0], sizes = [16, 16, 128], strides = [1, 1, 1]} : vector<16x18x128xbf16> to vector<16x16x128xbf16>
    %23 = tpu.concatenate %20, %21, %22 in 2 : vector<16x16x128xbf16>, vector<16x16x128xbf16>, vector<16x16x128xbf16> -> vector<16x16x384xbf16>
    %24 = vector.shape_cast %23 : vector<16x16x384xbf16> to vector<256x384xbf16>
    %c1 = arith.constant 1 : index
    %c0_9 = arith.constant 0 : index
    %c0_10 = arith.constant 0 : index
    %25 = vector.load %arg5[%c1, %c0_9, %c0_10] : memref<3x384x128xbf16, #tpu.memory_space<vmem>>, vector<1x384x128xbf16>
    %26 = vector.shape_cast %25 : vector<1x384x128xbf16> to vector<384x128xbf16>
    %cst_11 = arith.constant dense<0.000000e+00> : vector<256x128xf32>
    %27 = tpu.matmul %24, %26, %cst_11 {dimension_numbers = #tpu.dot_dimension_numbers<[1], [0], [0], [1], [0, 0, 1, 1], [], []>} : vector<256x384xbf16>, vector<384x128xbf16>, vector<256x128xf32> -> vector<256x128xf32>
    %28 = arith.addf %16, %27 : vector<256x128xf32>
    %c2_i32 = arith.constant 2 : i32
    %29 = arith.addi %3, %c2_i32 : i32
    %30 = arith.index_cast %29 : i32 to index
    %c0_12 = arith.constant 0 : index
    %c0_13 = arith.constant 0 : index
    %31 = vector.load %arg9[%30, %c0_12, %c0_13] : memref<18x18x128xbf16, #tpu.memory_space<vmem>>, vector<16x18x128xbf16>
    %32 = vector.extract_strided_slice %31 {offsets = [0, 0, 0], sizes = [16, 16, 128], strides = [1, 1, 1]} : vector<16x18x128xbf16> to vector<16x16x128xbf16>
    %33 = vector.extract_strided_slice %31 {offsets = [0, 1, 0], sizes = [16, 16, 128], strides = [1, 1, 1]} : vector<16x18x128xbf16> to vector<16x16x128xbf16>
    %34 = vector.extract_strided_slice %31 {offsets = [0, 2, 0], sizes = [16, 16, 128], strides = [1, 1, 1]} : vector<16x18x128xbf16> to vector<16x16x128xbf16>
    %35 = tpu.concatenate %32, %33, %34 in 2 : vector<16x16x128xbf16>, vector<16x16x128xbf16>, vector<16x16x128xbf16> -> vector<16x16x384xbf16>
    %36 = vector.shape_cast %35 : vector<16x16x384xbf16> to vector<256x384xbf16>
    %c2 = arith.constant 2 : index
    %c0_14 = arith.constant 0 : index
    %c0_15 = arith.constant 0 : index
    %37 = vector.load %arg5[%c2, %c0_14, %c0_15] : memref<3x384x128xbf16, #tpu.memory_space<vmem>>, vector<1x384x128xbf16>
    %38 = vector.shape_cast %37 : vector<1x384x128xbf16> to vector<384x128xbf16>
    %cst_16 = arith.constant dense<0.000000e+00> : vector<256x128xf32>
    %39 = tpu.matmul %36, %38, %cst_16 {dimension_numbers = #tpu.dot_dimension_numbers<[1], [0], [0], [1], [0, 0, 1, 1], [], []>} : vector<256x384xbf16>, vector<384x128xbf16>, vector<256x128xf32> -> vector<256x128xf32>
    %40 = arith.addf %28, %39 : vector<256x128xf32>
    %41 = vector.shape_cast %40 : vector<256x128xf32> to vector<1x16x16x128xf32>
    %42 = arith.truncf %41 : vector<1x16x16x128xf32> to vector<1x16x16x128xbf16>
    %c0_17 = arith.constant 0 : index
    %c0_18 = arith.constant 0 : index
    %c0_19 = arith.constant 0 : index
    %c0_20 = arith.constant 0 : index
    %43 = vector.load %arg6[%c0_17, %c0_18, %c0_19, %c0_20] : memref<1x16x16x128xbf16, #tpu.memory_space<vmem>>, vector<1x16x16x128xbf16>
    tpu.vector_store %arg6[%c0_17, %c0_18, %c0_19, %c0_20], %42 {strides = array<i32>} : memref<1x16x16x128xbf16, #tpu.memory_space<vmem>>, vector<1x16x16x128xbf16>,
    %44 = vector.shape_cast %40 : vector<256x128xf32> to vector<32x8x128xf32>
    %c0_21 = arith.constant 0 : index
    %c0_22 = arith.constant 0 : index
    %c0_23 = arith.constant 0 : index
    %45 = vector.load %arg7[%c0_21, %c0_22, %c0_23] : memref<1x8x128xf32, #tpu.memory_space<vmem>>, vector<1x8x128xf32>
    %46 = vector.shape_cast %45 : vector<1x8x128xf32> to vector<8x128xf32>
    %cst_24 = arith.constant dense<0.000000e+00> : vector<8x128xf32>
    %47 = vector.multi_reduction <add>, %44, %cst_24 [0] : vector<32x8x128xf32> to vector<8x128xf32>
    %48 = arith.addf %46, %47 : vector<8x128xf32>
    %c0_25 = arith.constant 0 : index
    %c0_26 = arith.constant 0 : index
    %c0_27 = arith.constant 0 : index
    %49 = vector.load %arg7[%c0_25, %c0_26, %c0_27] : memref<1x8x128xf32, #tpu.memory_space<vmem>>, vector<1x8x128xf32>
    %50 = vector.shape_cast %49 : vector<1x8x128xf32> to vector<8x128xf32>
    %51 = vector.shape_cast %48 : vector<8x128xf32> to vector<1x8x128xf32>
    tpu.vector_store %arg7[%c0_25, %c0_26, %c0_27], %51 {strides = array<i32>} : memref<1x8x128xf32, #tpu.memory_space<vmem>>, vector<1x8x128xf32>,
    %c0_28 = arith.constant 0 : index
    %c0_29 = arith.constant 0 : index
    %c0_30 = arith.constant 0 : index
    %52 = vector.load %arg8[%c0_28, %c0_29, %c0_30] : memref<1x8x128xf32, #tpu.memory_space<vmem>>, vector<1x8x128xf32>
    %53 = vector.shape_cast %52 : vector<1x8x128xf32> to vector<8x128xf32>
    %54 = arith.mulf %44, %44 : vector<32x8x128xf32>
    %cst_31 = arith.constant dense<0.000000e+00> : vector<8x128xf32>
    %55 = vector.multi_reduction <add>, %54, %cst_31 [0] : vector<32x8x128xf32> to vector<8x128xf32>
    %56 = arith.addf %53, %55 : vector<8x128xf32>
    %c0_32 = arith.constant 0 : index
    %c0_33 = arith.constant 0 : index
    %c0_34 = arith.constant 0 : index
    %57 = vector.load %arg8[%c0_32, %c0_33, %c0_34] : memref<1x8x128xf32, #tpu.memory_space<vmem>>, vector<1x8x128xf32>
    %58 = vector.shape_cast %57 : vector<1x8x128xf32> to vector<8x128xf32>
    %59 = vector.shape_cast %56 : vector<8x128xf32> to vector<1x8x128xf32>
    tpu.vector_store %arg8[%c0_32, %c0_33, %c0_34], %59 {strides = array<i32>} : memref<1x8x128xf32, #tpu.memory_space<vmem>>, vector<1x8x128xf32>,
    return
  }
  func.func @transform_0(%arg0: i32, %arg1: i32) -> (i32, i32, i32, i32) {
    %c0_i32 = arith.constant 0 : i32
    %c0_i32_0 = arith.constant 0 : i32
    %c0_i32_1 = arith.constant 0 : i32
    %c0_i32_2 = arith.constant 0 : i32
    return %arg0, %c0_i32, %c0_i32_0, %c0_i32_1 : i32, i32, i32, i32
  }
  func.func @transform_1(%arg0: i32, %arg1: i32) -> (i32, i32) {
    %c0_i32 = arith.constant 0 : i32
    %c0_i32_0 = arith.constant 0 : i32
    %c0_i32_1 = arith.constant 0 : i32
    return %c0_i32, %c0_i32_0 : i32, i32
  }
  func.func @transform_2(%arg0: i32, %arg1: i32) -> (i32, i32) {
    %c0_i32 = arith.constant 0 : i32
    %c0_i32_0 = arith.constant 0 : i32
    %c0_i32_1 = arith.constant 0 : i32
    return %c0_i32, %c0_i32_0 : i32, i32
  }
  func.func @transform_3(%arg0: i32, %arg1: i32) -> (i32, i32, i32) {
    %c0_i32 = arith.constant 0 : i32
    %c0_i32_0 = arith.constant 0 : i32
    %c0_i32_1 = arith.constant 0 : i32
    %c0_i32_2 = arith.constant 0 : i32
    return %c0_i32, %c0_i32_0, %c0_i32_1 : i32, i32, i32
  }
  func.func @transform_4(%arg0: i32, %arg1: i32) -> (i32, i32, i32, i32) {
    %c0_i32 = arith.constant 0 : i32
    %c0_i32_0 = arith.constant 0 : i32
    %c0_i32_1 = arith.constant 0 : i32
    return %arg0, %arg1, %c0_i32, %c0_i32_0 : i32, i32, i32, i32
  }
  func.func @transform_5(%arg0: i32, %arg1: i32) -> (i32, i32, i32) {
    %c0_i32 = arith.constant 0 : i32
    %c0_i32_0 = arith.constant 0 : i32
    %c0_i32_1 = arith.constant 0 : i32
    return %arg0, %c0_i32, %c0_i32_0 : i32, i32, i32
  }
  func.func @transform_6(%arg0: i32, %arg1: i32) -> (i32, i32, i32) {
    %c0_i32 = arith.constant 0 : i32
    %c0_i32_0 = arith.constant 0 : i32
    %c0_i32_1 = arith.constant 0 : i32
    return %arg0, %c0_i32, %c0_i32_0 : i32, i32, i32
  }
}

module attributes {stable_mosaic.version = 11 : i64} {
  func.func @_stats3_sc_kernel(%arg0: i32, %arg1: i32, %arg2: memref<256x128xbf16, #tpu.memory_space<vmem>>, %arg3: memref<1x128xf32, #tpu.memory_space<vmem>>, %arg4: memref<1x128xf32, #tpu.memory_space<vmem>>, %arg5: memref<128x128xbf16, #tpu.memory_space<vmem>>, %arg6: memref<256x128xbf16, #tpu.memory_space<vmem>>, %arg7: memref<128x128xbf16, #tpu.memory_space<vmem>>, %arg8: memref<1x8x128xf32, #tpu.memory_space<vmem>>, %arg9: memref<1x8x128xf32, #tpu.memory_space<vmem>>, %arg10: memref<1x8x128xf32, #tpu.memory_space<vmem>>, %arg11: memref<1x8x128xf32, #tpu.memory_space<vmem>>) attributes {dimension_semantics = [#tpu.dimension_semantics<parallel>, #tpu.dimension_semantics<arbitrary>], iteration_bounds = array<i64: 2, 1>, scalar_prefetch = 0 : i64, scratch_operands = 0 : i64, tpu.core_type = #tpu.core_type<tc>, window_params = [{transform_indices = @transform_0, window_bounds = array<i64: 256, 128>}, {pipeline_mode = #tpu.pipeline_mode<synchronous>, transform_indices = @transform_1, window_bounds = array<i64: 1, 128>}, {pipeline_mode = #tpu.pipeline_mode<synchronous>, transform_indices = @transform_2, window_bounds = array<i64: 1, 128>}, {pipeline_mode = #tpu.pipeline_mode<synchronous>, transform_indices = @transform_3, window_bounds = array<i64: 128, 128>}, {transform_indices = @transform_4, window_bounds = array<i64: 256, 128>}, {pipeline_mode = #tpu.pipeline_mode<synchronous>, transform_indices = @transform_5, window_bounds = array<i64: 128, 128>}, {transform_indices = @transform_6, window_bounds = array<i64: 1, 8, 128>}, {transform_indices = @transform_7, window_bounds = array<i64: 1, 8, 128>}, {transform_indices = @transform_8, window_bounds = array<i64: 1, 8, 128>}, {transform_indices = @transform_9, window_bounds = array<i64: 1, 8, 128>}]} {
    %c0_i32 = arith.constant 0 : i32
    %0 = arith.cmpi eq, %arg1, %c0_i32 : i32
    %1 = arith.extui %0 : i1 to i32
    %c0_i32_0 = arith.constant 0 : i32
    %2 = arith.cmpi ne, %1, %c0_i32_0 : i32
    scf.if %2 {
      %cst_42 = arith.constant 0.000000e+00 : f32
      %51 = vector.broadcast %cst_42 : f32 to vector<1x8x128xf32>
      %c0_43 = arith.constant 0 : index
      %c0_44 = arith.constant 0 : index
      %c0_45 = arith.constant 0 : index
      %52 = vector.load %arg8[%c0_43, %c0_44, %c0_45] : memref<1x8x128xf32, #tpu.memory_space<vmem>>, vector<1x8x128xf32>
      tpu.vector_store %arg8[%c0_43, %c0_44, %c0_45], %51 {strides = array<i32>} : memref<1x8x128xf32, #tpu.memory_space<vmem>>, vector<1x8x128xf32>,
      %cst_46 = arith.constant 0.000000e+00 : f32
      %53 = vector.broadcast %cst_46 : f32 to vector<1x8x128xf32>
      %c0_47 = arith.constant 0 : index
      %c0_48 = arith.constant 0 : index
      %c0_49 = arith.constant 0 : index
      %54 = vector.load %arg9[%c0_47, %c0_48, %c0_49] : memref<1x8x128xf32, #tpu.memory_space<vmem>>, vector<1x8x128xf32>
      tpu.vector_store %arg9[%c0_47, %c0_48, %c0_49], %53 {strides = array<i32>} : memref<1x8x128xf32, #tpu.memory_space<vmem>>, vector<1x8x128xf32>,
      %cst_50 = arith.constant 0.000000e+00 : f32
      %55 = vector.broadcast %cst_50 : f32 to vector<1x8x128xf32>
      %c0_51 = arith.constant 0 : index
      %c0_52 = arith.constant 0 : index
      %c0_53 = arith.constant 0 : index
      %56 = vector.load %arg10[%c0_51, %c0_52, %c0_53] : memref<1x8x128xf32, #tpu.memory_space<vmem>>, vector<1x8x128xf32>
      tpu.vector_store %arg10[%c0_51, %c0_52, %c0_53], %55 {strides = array<i32>} : memref<1x8x128xf32, #tpu.memory_space<vmem>>, vector<1x8x128xf32>,
      %cst_54 = arith.constant 0.000000e+00 : f32
      %57 = vector.broadcast %cst_54 : f32 to vector<1x8x128xf32>
      %c0_55 = arith.constant 0 : index
      %c0_56 = arith.constant 0 : index
      %c0_57 = arith.constant 0 : index
      %58 = vector.load %arg11[%c0_55, %c0_56, %c0_57] : memref<1x8x128xf32, #tpu.memory_space<vmem>>, vector<1x8x128xf32>
      tpu.vector_store %arg11[%c0_55, %c0_56, %c0_57], %57 {strides = array<i32>} : memref<1x8x128xf32, #tpu.memory_space<vmem>>, vector<1x8x128xf32>,
    } else {
    }
    %c0 = arith.constant 0 : index
    %c0_1 = arith.constant 0 : index
    %3 = vector.load %arg2[%c0, %c0_1] : memref<256x128xbf16, #tpu.memory_space<vmem>>, vector<256x128xbf16>
    %4 = arith.extf %3 : vector<256x128xbf16> to vector<256x128xf32>
    %c0_2 = arith.constant 0 : index
    %c0_3 = arith.constant 0 : index
    %5 = vector.load %arg3[%c0_2, %c0_3] : memref<1x128xf32, #tpu.memory_space<vmem>>, vector<1x128xf32>
    %6 = vector.broadcast %5 : vector<1x128xf32> to vector<256x128xf32>
    %7 = arith.mulf %4, %6 : vector<256x128xf32>
    %c0_4 = arith.constant 0 : index
    %c0_5 = arith.constant 0 : index
    %8 = vector.load %arg4[%c0_4, %c0_5] : memref<1x128xf32, #tpu.memory_space<vmem>>, vector<1x128xf32>
    %9 = vector.broadcast %8 : vector<1x128xf32> to vector<256x128xf32>
    %10 = arith.addf %7, %9 : vector<256x128xf32>
    %cst = arith.constant 0.000000e+00 : f32
    %11 = vector.broadcast %cst : f32 to vector<256x128xf32>
    %12 = arith.maximumf %10, %11 : vector<256x128xf32>
    %13 = arith.truncf %12 : vector<256x128xf32> to vector<256x128xbf16>
    %c0_6 = arith.constant 0 : index
    %c0_7 = arith.constant 0 : index
    %14 = vector.load %arg5[%c0_6, %c0_7] : memref<128x128xbf16, #tpu.memory_space<vmem>>, vector<128x128xbf16>
    %cst_8 = arith.constant dense<0.000000e+00> : vector<256x128xf32>
    %15 = tpu.matmul %13, %14, %cst_8 {dimension_numbers = #tpu.dot_dimension_numbers<[1], [0], [0], [1], [0, 0, 1, 1], [], []>} : vector<256x128xbf16>, vector<128x128xbf16>, vector<256x128xf32> -> vector<256x128xf32>
    %16 = vector.shape_cast %15 : vector<256x128xf32> to vector<32x8x128xf32>
    %c0_9 = arith.constant 0 : index
    %c0_10 = arith.constant 0 : index
    %c0_11 = arith.constant 0 : index
    %17 = vector.load %arg8[%c0_9, %c0_10, %c0_11] : memref<1x8x128xf32, #tpu.memory_space<vmem>>, vector<1x8x128xf32>
    %18 = vector.shape_cast %17 : vector<1x8x128xf32> to vector<8x128xf32>
    %cst_12 = arith.constant dense<0.000000e+00> : vector<8x128xf32>
    %19 = vector.multi_reduction <add>, %16, %cst_12 [0] : vector<32x8x128xf32> to vector<8x128xf32>
    %20 = arith.addf %18, %19 : vector<8x128xf32>
    %c0_13 = arith.constant 0 : index
    %c0_14 = arith.constant 0 : index
    %c0_15 = arith.constant 0 : index
    %21 = vector.load %arg8[%c0_13, %c0_14, %c0_15] : memref<1x8x128xf32, #tpu.memory_space<vmem>>, vector<1x8x128xf32>
    %22 = vector.shape_cast %21 : vector<1x8x128xf32> to vector<8x128xf32>
    %23 = vector.shape_cast %20 : vector<8x128xf32> to vector<1x8x128xf32>
    tpu.vector_store %arg8[%c0_13, %c0_14, %c0_15], %23 {strides = array<i32>} : memref<1x8x128xf32, #tpu.memory_space<vmem>>, vector<1x8x128xf32>,
    %c0_16 = arith.constant 0 : index
    %c0_17 = arith.constant 0 : index
    %c0_18 = arith.constant 0 : index
    %24 = vector.load %arg9[%c0_16, %c0_17, %c0_18] : memref<1x8x128xf32, #tpu.memory_space<vmem>>, vector<1x8x128xf32>
    %25 = vector.shape_cast %24 : vector<1x8x128xf32> to vector<8x128xf32>
    %26 = arith.mulf %16, %16 : vector<32x8x128xf32>
    %cst_19 = arith.constant dense<0.000000e+00> : vector<8x128xf32>
    %27 = vector.multi_reduction <add>, %26, %cst_19 [0] : vector<32x8x128xf32> to vector<8x128xf32>
    %28 = arith.addf %25, %27 : vector<8x128xf32>
    %c0_20 = arith.constant 0 : index
    %c0_21 = arith.constant 0 : index
    %c0_22 = arith.constant 0 : index
    %29 = vector.load %arg9[%c0_20, %c0_21, %c0_22] : memref<1x8x128xf32, #tpu.memory_space<vmem>>, vector<1x8x128xf32>
    %30 = vector.shape_cast %29 : vector<1x8x128xf32> to vector<8x128xf32>
    %31 = vector.shape_cast %28 : vector<8x128xf32> to vector<1x8x128xf32>
    tpu.vector_store %arg9[%c0_20, %c0_21, %c0_22], %31 {strides = array<i32>} : memref<1x8x128xf32, #tpu.memory_space<vmem>>, vector<1x8x128xf32>,
    %c0_23 = arith.constant 0 : index
    %c0_24 = arith.constant 0 : index
    %32 = vector.load %arg6[%c0_23, %c0_24] : memref<256x128xbf16, #tpu.memory_space<vmem>>, vector<256x128xbf16>
    %c0_25 = arith.constant 0 : index
    %c0_26 = arith.constant 0 : index
    %33 = vector.load %arg7[%c0_25, %c0_26] : memref<128x128xbf16, #tpu.memory_space<vmem>>, vector<128x128xbf16>
    %cst_27 = arith.constant dense<0.000000e+00> : vector<256x128xf32>
    %34 = tpu.matmul %32, %33, %cst_27 {dimension_numbers = #tpu.dot_dimension_numbers<[1], [0], [0], [1], [0, 0, 1, 1], [], []>} : vector<256x128xbf16>, vector<128x128xbf16>, vector<256x128xf32> -> vector<256x128xf32>
    %35 = vector.shape_cast %34 : vector<256x128xf32> to vector<32x8x128xf32>
    %c0_28 = arith.constant 0 : index
    %c0_29 = arith.constant 0 : index
    %c0_30 = arith.constant 0 : index
    %36 = vector.load %arg10[%c0_28, %c0_29, %c0_30] : memref<1x8x128xf32, #tpu.memory_space<vmem>>, vector<1x8x128xf32>
    %37 = vector.shape_cast %36 : vector<1x8x128xf32> to vector<8x128xf32>
    %cst_31 = arith.constant dense<0.000000e+00> : vector<8x128xf32>
    %38 = vector.multi_reduction <add>, %35, %cst_31 [0] : vector<32x8x128xf32> to vector<8x128xf32>
    %39 = arith.addf %37, %38 : vector<8x128xf32>
    %c0_32 = arith.constant 0 : index
    %c0_33 = arith.constant 0 : index
    %c0_34 = arith.constant 0 : index
    %40 = vector.load %arg10[%c0_32, %c0_33, %c0_34] : memref<1x8x128xf32, #tpu.memory_space<vmem>>, vector<1x8x128xf32>
    %41 = vector.shape_cast %40 : vector<1x8x128xf32> to vector<8x128xf32>
    %42 = vector.shape_cast %39 : vector<8x128xf32> to vector<1x8x128xf32>
    tpu.vector_store %arg10[%c0_32, %c0_33, %c0_34], %42 {strides = array<i32>} : memref<1x8x128xf32, #tpu.memory_space<vmem>>, vector<1x8x128xf32>,
    %c0_35 = arith.constant 0 : index
    %c0_36 = arith.constant 0 : index
    %c0_37 = arith.constant 0 : index
    %43 = vector.load %arg11[%c0_35, %c0_36, %c0_37] : memref<1x8x128xf32, #tpu.memory_space<vmem>>, vector<1x8x128xf32>
    %44 = vector.shape_cast %43 : vector<1x8x128xf32> to vector<8x128xf32>
    %45 = arith.mulf %35, %35 : vector<32x8x128xf32>
    %cst_38 = arith.constant dense<0.000000e+00> : vector<8x128xf32>
    %46 = vector.multi_reduction <add>, %45, %cst_38 [0] : vector<32x8x128xf32> to vector<8x128xf32>
    %47 = arith.addf %44, %46 : vector<8x128xf32>
    %c0_39 = arith.constant 0 : index
    %c0_40 = arith.constant 0 : index
    %c0_41 = arith.constant 0 : index
    %48 = vector.load %arg11[%c0_39, %c0_40, %c0_41] : memref<1x8x128xf32, #tpu.memory_space<vmem>>, vector<1x8x128xf32>
    %49 = vector.shape_cast %48 : vector<1x8x128xf32> to vector<8x128xf32>
    %50 = vector.shape_cast %47 : vector<8x128xf32> to vector<1x8x128xf32>
    tpu.vector_store %arg11[%c0_39, %c0_40, %c0_41], %50 {strides = array<i32>} : memref<1x8x128xf32, #tpu.memory_space<vmem>>, vector<1x8x128xf32>,
    return
  }
  func.func @transform_0(%arg0: i32, %arg1: i32) -> (i32, i32) {
    %c1_i32 = arith.constant 1 : i32
    %0 = arith.muli %arg0, %c1_i32 : i32
    %1 = arith.addi %0, %arg1 : i32
    %c0_i32 = arith.constant 0 : i32
    %c0_i32_0 = arith.constant 0 : i32
    return %1, %c0_i32 : i32, i32
  }
  func.func @transform_1(%arg0: i32, %arg1: i32) -> (i32, i32) {
    %c0_i32 = arith.constant 0 : i32
    %c0_i32_0 = arith.constant 0 : i32
    %c0_i32_1 = arith.constant 0 : i32
    return %c0_i32, %c0_i32_0 : i32, i32
  }
  func.func @transform_2(%arg0: i32, %arg1: i32) -> (i32, i32) {
    %c0_i32 = arith.constant 0 : i32
    %c0_i32_0 = arith.constant 0 : i32
    %c0_i32_1 = arith.constant 0 : i32
    return %c0_i32, %c0_i32_0 : i32, i32
  }
  func.func @transform_3(%arg0: i32, %arg1: i32) -> (i32, i32) {
    %c0_i32 = arith.constant 0 : i32
    %c0_i32_0 = arith.constant 0 : i32
    %c0_i32_1 = arith.constant 0 : i32
    return %c0_i32, %c0_i32_0 : i32, i32
  }
  func.func @transform_4(%arg0: i32, %arg1: i32) -> (i32, i32) {
    %c1_i32 = arith.constant 1 : i32
    %0 = arith.muli %arg0, %c1_i32 : i32
    %1 = arith.addi %0, %arg1 : i32
    %c0_i32 = arith.constant 0 : i32
    %c0_i32_0 = arith.constant 0 : i32
    return %1, %c0_i32 : i32, i32
  }
  func.func @transform_5(%arg0: i32, %arg1: i32) -> (i32, i32) {
    %c0_i32 = arith.constant 0 : i32
    %c0_i32_0 = arith.constant 0 : i32
    %c0_i32_1 = arith.constant 0 : i32
    return %c0_i32, %c0_i32_0 : i32, i32
  }
  func.func @transform_6(%arg0: i32, %arg1: i32) -> (i32, i32, i32) {
    %c0_i32 = arith.constant 0 : i32
    %c0_i32_0 = arith.constant 0 : i32
    %c0_i32_1 = arith.constant 0 : i32
    return %arg0, %c0_i32, %c0_i32_0 : i32, i32, i32
  }
  func.func @transform_7(%arg0: i32, %arg1: i32) -> (i32, i32, i32) {
    %c0_i32 = arith.constant 0 : i32
    %c0_i32_0 = arith.constant 0 : i32
    %c0_i32_1 = arith.constant 0 : i32
    return %arg0, %c0_i32, %c0_i32_0 : i32, i32, i32
  }
  func.func @transform_8(%arg0: i32, %arg1: i32) -> (i32, i32, i32) {
    %c0_i32 = arith.constant 0 : i32
    %c0_i32_0 = arith.constant 0 : i32
    %c0_i32_1 = arith.constant 0 : i32
    return %arg0, %c0_i32, %c0_i32_0 : i32, i32, i32
  }
  func.func @transform_9(%arg0: i32, %arg1: i32) -> (i32, i32, i32) {
    %c0_i32 = arith.constant 0 : i32
    %c0_i32_0 = arith.constant 0 : i32
    %c0_i32_1 = arith.constant 0 : i32
    return %arg0, %c0_i32, %c0_i32_0 : i32, i32, i32
  }
}

module attributes {stable_mosaic.version = 11 : i64} {
  func.func @_final_sc_kernel(%arg0: i32, %arg1: memref<256x128xbf16, #tpu.memory_space<vmem>>, %arg2: memref<1x128xf32, #tpu.memory_space<vmem>>, %arg3: memref<1x128xf32, #tpu.memory_space<vmem>>, %arg4: memref<128x128xbf16, #tpu.memory_space<vmem>>, %arg5: memref<256x128xbf16, #tpu.memory_space<vmem>>, %arg6: memref<128x128xbf16, #tpu.memory_space<vmem>>, %arg7: memref<1x128xf32, #tpu.memory_space<vmem>>, %arg8: memref<256x128xf32, #tpu.memory_space<vmem>>) attributes {dimension_semantics = [#tpu.dimension_semantics<parallel>], iteration_bounds = array<i64: 2>, scalar_prefetch = 0 : i64, scratch_operands = 0 : i64, tpu.core_type = #tpu.core_type<tc>, window_params = [{transform_indices = @transform_0, window_bounds = array<i64: 256, 128>}, {pipeline_mode = #tpu.pipeline_mode<synchronous>, transform_indices = @transform_1, window_bounds = array<i64: 1, 128>}, {pipeline_mode = #tpu.pipeline_mode<synchronous>, transform_indices = @transform_2, window_bounds = array<i64: 1, 128>}, {pipeline_mode = #tpu.pipeline_mode<synchronous>, transform_indices = @transform_3, window_bounds = array<i64: 128, 128>}, {transform_indices = @transform_4, window_bounds = array<i64: 256, 128>}, {pipeline_mode = #tpu.pipeline_mode<synchronous>, transform_indices = @transform_5, window_bounds = array<i64: 128, 128>}, {pipeline_mode = #tpu.pipeline_mode<synchronous>, transform_indices = @transform_6, window_bounds = array<i64: 1, 128>}, {transform_indices = @transform_7, window_bounds = array<i64: 256, 128>}]} {
    %c0 = arith.constant 0 : index
    %c0_0 = arith.constant 0 : index
    %0 = vector.load %arg1[%c0, %c0_0] : memref<256x128xbf16, #tpu.memory_space<vmem>>, vector<256x128xbf16>
    %1 = arith.extf %0 : vector<256x128xbf16> to vector<256x128xf32>
    %c0_1 = arith.constant 0 : index
    %c0_2 = arith.constant 0 : index
    %2 = vector.load %arg2[%c0_1, %c0_2] : memref<1x128xf32, #tpu.memory_space<vmem>>, vector<1x128xf32>
    %3 = vector.broadcast %2 : vector<1x128xf32> to vector<256x128xf32>
    %4 = arith.mulf %1, %3 : vector<256x128xf32>
    %c0_3 = arith.constant 0 : index
    %c0_4 = arith.constant 0 : index
    %5 = vector.load %arg3[%c0_3, %c0_4] : memref<1x128xf32, #tpu.memory_space<vmem>>, vector<1x128xf32>
    %6 = vector.broadcast %5 : vector<1x128xf32> to vector<256x128xf32>
    %7 = arith.addf %4, %6 : vector<256x128xf32>
    %cst = arith.constant 0.000000e+00 : f32
    %8 = vector.broadcast %cst : f32 to vector<256x128xf32>
    %9 = arith.maximumf %7, %8 : vector<256x128xf32>
    %10 = arith.truncf %9 : vector<256x128xf32> to vector<256x128xbf16>
    %c0_5 = arith.constant 0 : index
    %c0_6 = arith.constant 0 : index
    %11 = vector.load %arg4[%c0_5, %c0_6] : memref<128x128xbf16, #tpu.memory_space<vmem>>, vector<128x128xbf16>
    %cst_7 = arith.constant dense<0.000000e+00> : vector<256x128xf32>
    %12 = tpu.matmul %10, %11, %cst_7 {dimension_numbers = #tpu.dot_dimension_numbers<[1], [0], [0], [1], [0, 0, 1, 1], [], []>} : vector<256x128xbf16>, vector<128x128xbf16>, vector<256x128xf32> -> vector<256x128xf32>
    %c0_8 = arith.constant 0 : index
    %c0_9 = arith.constant 0 : index
    %13 = vector.load %arg5[%c0_8, %c0_9] : memref<256x128xbf16, #tpu.memory_space<vmem>>, vector<256x128xbf16>
    %c0_10 = arith.constant 0 : index
    %c0_11 = arith.constant 0 : index
    %14 = vector.load %arg6[%c0_10, %c0_11] : memref<128x128xbf16, #tpu.memory_space<vmem>>, vector<128x128xbf16>
    %cst_12 = arith.constant dense<0.000000e+00> : vector<256x128xf32>
    %15 = tpu.matmul %13, %14, %cst_12 {dimension_numbers = #tpu.dot_dimension_numbers<[1], [0], [0], [1], [0, 0, 1, 1], [], []>} : vector<256x128xbf16>, vector<128x128xbf16>, vector<256x128xf32> -> vector<256x128xf32>
    %16 = arith.addf %12, %15 : vector<256x128xf32>
    %c0_13 = arith.constant 0 : index
    %c0_14 = arith.constant 0 : index
    %17 = vector.load %arg7[%c0_13, %c0_14] : memref<1x128xf32, #tpu.memory_space<vmem>>, vector<1x128xf32>
    %18 = vector.broadcast %17 : vector<1x128xf32> to vector<256x128xf32>
    %19 = arith.addf %16, %18 : vector<256x128xf32>
    %cst_15 = arith.constant 0.000000e+00 : f32
    %20 = vector.broadcast %cst_15 : f32 to vector<256x128xf32>
    %21 = arith.maximumf %19, %20 : vector<256x128xf32>
    %c0_16 = arith.constant 0 : index
    %c0_17 = arith.constant 0 : index
    %22 = vector.load %arg8[%c0_16, %c0_17] : memref<256x128xf32, #tpu.memory_space<vmem>>, vector<256x128xf32>
    tpu.vector_store %arg8[%c0_16, %c0_17], %21 {strides = array<i32>} : memref<256x128xf32, #tpu.memory_space<vmem>>, vector<256x128xf32>,
    return
  }
  func.func @transform_0(%arg0: i32) -> (i32, i32) {
    %c0_i32 = arith.constant 0 : i32
    %c0_i32_0 = arith.constant 0 : i32
    return %arg0, %c0_i32 : i32, i32
  }
  func.func @transform_1(%arg0: i32) -> (i32, i32) {
    %c0_i32 = arith.constant 0 : i32
    %c0_i32_0 = arith.constant 0 : i32
    %c0_i32_1 = arith.constant 0 : i32
    return %c0_i32, %c0_i32_0 : i32, i32
  }
  func.func @transform_2(%arg0: i32) -> (i32, i32) {
    %c0_i32 = arith.constant 0 : i32
    %c0_i32_0 = arith.constant 0 : i32
    %c0_i32_1 = arith.constant 0 : i32
    return %c0_i32, %c0_i32_0 : i32, i32
  }
  func.func @transform_3(%arg0: i32) -> (i32, i32) {
    %c0_i32 = arith.constant 0 : i32
    %c0_i32_0 = arith.constant 0 : i32
    %c0_i32_1 = arith.constant 0 : i32
    return %c0_i32, %c0_i32_0 : i32, i32
  }
  func.func @transform_4(%arg0: i32) -> (i32, i32) {
    %c0_i32 = arith.constant 0 : i32
    %c0_i32_0 = arith.constant 0 : i32
    return %arg0, %c0_i32 : i32, i32
  }
  func.func @transform_5(%arg0: i32) -> (i32, i32) {
    %c0_i32 = arith.constant 0 : i32
    %c0_i32_0 = arith.constant 0 : i32
    %c0_i32_1 = arith.constant 0 : i32
    return %c0_i32, %c0_i32_0 : i32, i32
  }
  func.func @transform_6(%arg0: i32) -> (i32, i32) {
    %c0_i32 = arith.constant 0 : i32
    %c0_i32_0 = arith.constant 0 : i32
    %c0_i32_1 = arith.constant 0 : i32
    return %c0_i32, %c0_i32_0 : i32, i32
  }
  func.func @transform_7(%arg0: i32) -> (i32, i32) {
    %c0_i32 = arith.constant 0 : i32
    %c0_i32_0 = arith.constant 0 : i32
    return %arg0, %c0_i32 : i32, i32
  }
}

</mosaic_0001>

<bundles_post_ra>
// kernel: unordered_bottleneck_forward.4
= control target key start
LH: loop header
LB: loop body
LE: loop exit
PB: predicated region body
PF: predicated region fallthrough
CT: control target
= control target key end

     0   :  { %s1378_s15 = smov 0   ;;  %s1380_s16 = smov 0   ;;  %s1579_s0 = inlined_call_operand.vmem [shape: bf16[512,128], index: 0, kind: input, shape index: {}]   ;;  %s1580_s1 = inlined_call_operand.vmem [shape: bf16[128,128], index: 1, kind: input, shape index: {}]   ;;  %s1581_s2 = inlined_call_operand.vmem [shape: bf16[512,128], index: 2, kind: output, shape index: {0}]   ;;  %s1582_s3 = inlined_call_operand.vmem [shape: f32[2,8,128], index: 3, kind: output, shape index: {1}]   ;;  %s1583_s4 = inlined_call_operand.vmem [shape: f32[2,8,128], index: 4, kind: output, shape index: {2}]  }
   0x1   :  { %s1382_s17 = smov 0  }
   0x2 LB: > { %s27_s18 = sadd.s32 1, %s1347_s16  ;;  %p1000_p0 = scmp.ge.s32.totalorder %s1351_s17, 1  ;;  %s1351_s17 = sphi %s1382_s17, %s15_s17   ;;  %s1347_s16 = sphi %s1380_s16, %s1585_s16   ;;  %s1343_s15 = sphi %s1378_s15, %s1584_s15  }
   0x3   : > { %p29_p1 = scmp.ge.s32.totalorder %s27_s18, 2  ;;  %p186_p2 = scmp.lt.s32.totalorder %s1351_s17, 3 }
   0x5   : > { %s1587_s18 = smov (%p29_p1, %s27_s18), 0  ;;  %p187_p3 = pnand %p1000_p0, %p186_p2 }
   0x6   : > { %s1001_s21 = sshll.u32 (!%p187_p3), %s1343_s15, 5  ;;  %p238_p5 = scmp.lt.s32.totalorder (!%p187_p3), %s1343_s15, 1 }
   0x7   : > { %190 = sbr.rel (%p187_p3) target bundleno = 309 (0x135), region = 28  ;;  %p224_p4 = scmp.lt.s32.totalorder (!%p187_p3), %s1001_s21, 63 }
   0xc   : > { %v1305_v0 = vld [vmem:[%s1580_s1 + $0x38] sm:$0xff]   ;;  %v1306_v1 = vld [vmem:[%s1580_s1 + $0x30] sm:$0xff]   ;;  %s1589_s21 = smov (!%p224_p4, %s1001_s21), 63  ;;  %v1307_v2 = vld [vmem:[%s1580_s1 + $0x28] sm:$0xff]   ;;  %s1591_s15 = smov (!%p238_p5, %s1343_s15), 1 }
   0xd   : > { %1216 = vmatprep.subr.bf16.mxu0 %v1305_v0  ;;  %1264 = vmatprep.subr.bf16.mxu1 %v1305_v0  ;;  %s1002_s26 = sshll.u32 %s1589_s21, 2  ;;  %v1308_v3 = vld [vmem:[%s1580_s1 + $0x20] sm:$0xff]   ;;  %v1309_v5 = vld [vmem:[%s1580_s1 + $0x18] sm:$0xff]   ;;  %v1310_v6 = vld [vmem:[%s1580_s1 + $0x10] sm:$0xff]   ;;  %s1005_s21 = sshll.u32 %s1591_s15, 3 }
   0xe   : > { %1217 = vmatpush3.bf16.msra.mxu0 %v1305_v0  ;;  %1272 = vmatpush3.bf16.msra.mxu1 %v1305_v0  ;;  %s1416_s29 = scalar_lea.vmem %s1579_s0, %s1002_s26  ;;  %v1311_v8 = vld [vmem:[%s1580_s1 + $0x8] sm:$0xff]   ;;  %v1312_v9 = vld [vmem:[%s1580_s1] sm:$0xff]   ;;  %s1458_s20 = scalar_lea.vmem %s1581_s2, %s1002_s26 }
   0xf   : > { %1218 = vmatprep.subr.bf16.mxu0 %v1306_v1  ;;  %1265 = vmatprep.subr.bf16.mxu1 %v1306_v1  ;;  %v1313_v4 = vld [vmem:[%s1416_s29] sm:$0xff]   ;;  %v1314_v10 = vld [vmem:[%s1416_s29 + $0x8] sm:$0xff]   ;;  %v1315_v12 = vld [vmem:[%s1416_s29 + $0x10] sm:$0xff]   ;;  %s241_s24 = scalar_lea.vmem %s1582_s3, %s1005_s21  ;;  %s245_s27 = scalar_lea.vmem %s1583_s4, %s1005_s21 }
  0x10   : > { %1232 = vmatprep.mubr.bf16.mxu0 %v1313_v4  ;;  %v1321_v7 = vld [vmem:[%s1416_s29 + $0x40] sm:$0xff]   ;;  %v1322_v11 = vld [vmem:[%s1416_s29 + $0x48] sm:$0xff]   ;;  %v1323_v13 = vld [vmem:[%s1416_s29 + $0x50] sm:$0xff]  }
  0x11   : > { %1248 = vmatprep.mubr.bf16.mxu1 %v1321_v7  ;;  %v1316_v14 = vld [vmem:[%s1416_s29 + $0x18] sm:$0xff]   ;;  %v1317_v16 = vld [vmem:[%s1416_s29 + $0x20] sm:$0xff]   ;;  %v1318_v18 = vld [vmem:[%s1416_s29 + $0x28] sm:$0xff]  }
  0x12   : > { %1219 = vmatpush3.bf16.msra.mxu0 %v1306_v1  ;;  %1273 = vmatpush3.bf16.msra.mxu1 %v1306_v1  ;;  %v1324_v15 = vld [vmem:[%s1416_s29 + $0x58] sm:$0xff]   ;;  %v1325_v17 = vld [vmem:[%s1416_s29 + $0x60] sm:$0xff]   ;;  %v1326_v19 = vld [vmem:[%s1416_s29 + $0x68] sm:$0xff]  }
  0x13   : > { %1220 = vmatprep.subr.bf16.mxu0 %v1307_v2  ;;  %1266 = vmatprep.subr.bf16.mxu1 %v1307_v2  ;;  %v1319_v20 = vld [vmem:[%s1416_s29 + $0x30] sm:$0xff]   ;;  %v1320_v22 = vld [vmem:[%s1416_s29 + $0x38] sm:$0xff]  }
  0x14   : > { %v1327_v21 = vld [vmem:[%s1416_s29 + $0x70] sm:$0xff]   ;;  %v1328_v23 = vld [vmem:[%s1416_s29 + $0x78] sm:$0xff]  }
  0x16   : > { %1221 = vmatpush3.bf16.msra.mxu0 %v1307_v2  ;;  %1274 = vmatpush3.bf16.msra.mxu1 %v1307_v2 }
  0x17   : > { %1222 = vmatprep.subr.bf16.mxu0 %v1308_v3  ;;  %1267 = vmatprep.subr.bf16.mxu1 %v1308_v3 }
  0x1a   : > { %1223 = vmatpush3.bf16.msra.mxu0 %v1308_v3  ;;  %1275 = vmatpush3.bf16.msra.mxu1 %v1308_v3 }
  0x1b   : > { %1224 = vmatprep.subr.bf16.mxu0 %v1309_v5  ;;  %1268 = vmatprep.subr.bf16.mxu1 %v1309_v5 }
  0x1e   : > { %1225 = vmatpush3.bf16.msra.mxu0 %v1309_v5  ;;  %1276 = vmatpush3.bf16.msra.mxu1 %v1309_v5 }
  0x1f   : > { %1226 = vmatprep.subr.bf16.mxu0 %v1310_v6  ;;  %1269 = vmatprep.subr.bf16.mxu1 %v1310_v6 }
  0x22   : > { %1227 = vmatpush3.bf16.msra.mxu0 %v1310_v6  ;;  %1277 = vmatpush3.bf16.msra.mxu1 %v1310_v6 }
  0x23   : > { %1228 = vmatprep.subr.bf16.mxu0 %v1311_v8  ;;  %1270 = vmatprep.subr.bf16.mxu1 %v1311_v8 }
  0x26   : > { %1229 = vmatpush3.bf16.msra.mxu0 %v1311_v8  ;;  %1278 = vmatpush3.bf16.msra.mxu1 %v1311_v8 }
  0x27   : > { %1230 = vmatprep.subr.bf16.mxu0 %v1312_v9  ;;  %1271 = vmatprep.subr.bf16.mxu1 %v1312_v9 }
  0x2a   : > { %1231 = vmatpush3.bf16.msra.mxu0 %v1312_v9  ;;  %1279 = vmatpush3.bf16.msra.mxu1 %v1312_v9 }
  0x2d   : > { %1233 = vmatmul.mubr.bf16.vlgmr.msra.gmra.mxu0 %v1314_v10  ;;  %1249 = vmatmul.mubr.bf16.vlgmr.msra.gmra.mxu1 %v1322_v11 }
  0x2e   : > { %1236 = vmatprep.mubr.bf16.mxu0 %v1315_v12  ;;  %1252 = vmatprep.mubr.bf16.mxu1 %v1323_v13 }
  0x35   : > { %1237 = vmatmul.mubr.bf16.gmra.mxu0 %v1316_v14  ;;  %1253 = vmatmul.mubr.bf16.gmra.mxu1 %v1324_v15 }
  0x36   : > { %1240 = vmatprep.mubr.bf16.mxu0 %v1317_v16  ;;  %1256 = vmatprep.mubr.bf16.mxu1 %v1325_v17 }
  0x3d   : > { %1241 = vmatmul.mubr.bf16.gmra.mxu0 %v1318_v18  ;;  %1257 = vmatmul.mubr.bf16.gmra.mxu1 %v1326_v19 }
  0x3e   : > { %1244 = vmatprep.mubr.bf16.mxu0 %v1319_v20  ;;  %1260 = vmatprep.mubr.bf16.mxu1 %v1327_v21 }
  0x45   : > { %1245 = vmatmul.mubr.bf16.gmra.mxu0 %v1320_v22  ;;  %1261 = vmatmul.mubr.bf16.gmra.mxu1 %v1328_v23 }
  0xed   : > { %v1234_v24 = vpop.f32.mrf.mxu0  ;;  %v1449_v25 = vpop.f32.mrf.mxu1 }
  0xee   : > { %v643_v41 = vmul.f32 %v1234_v24, %v1234_v24 }
  0xef   : > { %v479_v26 = vpop.f32.mrf.mxu0  ;;  %v1451_v27 = vpop.f32.mrf.mxu1 }
  0xf0   : > { %v641_v34 = vmul.f32 %v479_v26, %v479_v26 }
  0xf1   : > { %v1235_v28 = vpop.f32.mrf.mxu0  ;;  %v1460_v29 = vpop.f32.mrf.mxu1 }
  0xf2   : > { %v1105_v30 = vpack.c.bf16 %v1235_v28, %v1234_v24  ;;  %v1145_v31 = vpack.c.bf16 %v1460_v29, %v1449_v25  ;;  %v644_v46 = vmul.f32 %v1235_v28, %v1235_v28 }
  0xf3   : > { %v482_v32 = vpop.f32.mrf.mxu0  ;;  %v1464_v33 = vpop.f32.mrf.mxu1 }
  0xf4   : > { %1177 = vst [vmem:[%s1458_s20 + $0x8] sm:$0xff] %v1105_v30   ;;  %v607_v35 = vadd.f32 %v482_v32, %v479_v26  ;;  %v642_v36 = vmul.f32 %v482_v32, %v482_v32  ;;  %v1100_v37 = vpack.c.bf16 %v482_v32, %v479_v26  ;;  %1185 = vst [vmem:[%s1458_s20 + $0x48] sm:$0xff] %v1145_v31  }
  0xf5   : > { %v1238_v38 = vpop.f32.mrf.mxu0  ;;  %v1140_v39 = vpack.c.bf16 %v1464_v33, %v1451_v27  ;;  %v1470_v40 = vpop.f32.mrf.mxu1 }
  0xf6   : > { %v608_v42 = vadd.f32 %v1234_v24, %v607_v35  ;;  %v673_v43 = vadd.f32 %v642_v36, %v641_v34  ;;  %1101 = vst [vmem:[%s1458_s20] sm:$0xff] %v1100_v37   ;;  %v647_v1 = vmul.f32 %v1238_v38, %v1238_v38 }
  0xf7   : > { %v495_v44 = vpop.f32.mrf.mxu0  ;;  %1184 = vst [vmem:[%s1458_s20 + $0x40] sm:$0xff] %v1140_v39   ;;  %v1474_v45 = vpop.f32.mrf.mxu1 }
  0xf8   : > { %v674_v47 = vadd.f32 %v673_v43, %v643_v41  ;;  %v609_v48 = vadd.f32 %v1235_v28, %v608_v42  ;;  %v645_v52 = vmul.f32 %v495_v44, %v495_v44 }
  0xf9   : > { %v1239_v49 = vpop.f32.mrf.mxu0  ;;  %v1476_v50 = vpop.f32.mrf.mxu1 }
  0xfa   : > { %v610_v51 = vadd.f32 %v609_v48, %v495_v44  ;;  %v675_v53 = vadd.f32 %v674_v47, %v644_v46  ;;  %v1115_v54 = vpack.c.bf16 %v1239_v49, %v1238_v38  ;;  %v1155_v56 = vpack.c.bf16 %v1476_v50, %v1470_v40 }
  0xfb   : > { %v498_v55 = vpop.f32.mrf.mxu0  ;;  %v1480_v57 = vpop.f32.mrf.mxu1  ;;  %v648_v6 = vmul.f32 %v1239_v49, %v1239_v49 }
  0xfc   : > { %v676_v58 = vadd.f32 %v675_v53, %v645_v52  ;;  %1179 = vst [vmem:[%s1458_s20 + $0x18] sm:$0xff] %v1115_v54   ;;  %v611_v59 = vadd.f32 %v610_v51, %v498_v55  ;;  %v646_v60 = vmul.f32 %v498_v55, %v498_v55  ;;  %v1110_v61 = vpack.c.bf16 %v498_v55, %v495_v44 }
  0xfd   : > { %v1242_v62 = vpop.f32.mrf.mxu0  ;;  %1187 = vst [vmem:[%s1458_s20 + $0x58] sm:$0xff] %v1155_v56   ;;  %v1150_v63 = vpack.c.bf16 %v1480_v57, %v1474_v45  ;;  %v1486_v0 = vpop.f32.mrf.mxu1 }
  0xfe   : > { %v612_v2 = vadd.f32 %v1238_v38, %v611_v59  ;;  %v677_v3 = vadd.f32 %v676_v58, %v646_v60  ;;  %1178 = vst [vmem:[%s1458_s20 + $0x10] sm:$0xff] %v1110_v61   ;;  %v651_v26 = vmul.f32 %v1242_v62, %v1242_v62  ;;  %v657_v61 = vmul.f32 %v1451_v27, %v1451_v27 }
  0xff   : > { %v511_v4 = vpop.f32.mrf.mxu0  ;;  %1186 = vst [vmem:[%s1458_s20 + $0x50] sm:$0xff] %v1150_v63   ;;  %v1490_v5 = vpop.f32.mrf.mxu1 }
 0x100   : > { %v678_v7 = vadd.f32 %v677_v3, %v647_v1  ;;  %v613_v8 = vadd.f32 %v1239_v49, %v612_v2  ;;  %v649_v12 = vmul.f32 %v511_v4, %v511_v4  ;;  %v658_v2 = vmul.f32 %v1464_v33, %v1464_v33 }
 0x101   : > { %v1243_v9 = vpop.f32.mrf.mxu0  ;;  %v1492_v10 = vpop.f32.mrf.mxu1 }
 0x102   : > { %v614_v11 = vadd.f32 %v613_v8, %v511_v4  ;;  %v679_v13 = vadd.f32 %v678_v7, %v648_v6  ;;  %v1125_v14 = vpack.c.bf16 %v1243_v9, %v1242_v62  ;;  %v1165_v16 = vpack.c.bf16 %v1492_v10, %v1486_v0 }
 0x103   : > { %v514_v15 = vpop.f32.mrf.mxu0  ;;  %v1496_v17 = vpop.f32.mrf.mxu1  ;;  %v652_v34 = vmul.f32 %v1243_v9, %v1243_v9  ;;  %v660_v8 = vmul.f32 %v1460_v29, %v1460_v29 }
 0x104   : > { %v680_v18 = vadd.f32 %v679_v13, %v649_v12  ;;  %1181 = vst [vmem:[%s1458_s20 + $0x28] sm:$0xff] %v1125_v14   ;;  %v615_v19 = vadd.f32 %v614_v11, %v514_v15  ;;  %v650_v20 = vmul.f32 %v514_v15, %v514_v15  ;;  %v1120_v21 = vpack.c.bf16 %v514_v15, %v511_v4 }
 0x105   : > { %v1246_v22 = vpop.f32.mrf.mxu0  ;;  %1189 = vst [vmem:[%s1458_s20 + $0x68] sm:$0xff] %v1165_v16   ;;  %v1160_v23 = vpack.c.bf16 %v1496_v17, %v1490_v5  ;;  %v1502_v24 = vpop.f32.mrf.mxu1  ;;  %v659_v4 = vmul.f32 %v1449_v25, %v1449_v25  ;;  %v661_v12 = vmul.f32 %v1474_v45, %v1474_v45  ;;  %v662_v15 = vmul.f32 %v1480_v57, %v1480_v57 }
 0x106   : > { %v616_v28 = vadd.f32 %v1242_v62, %v615_v19  ;;  %v681_v30 = vadd.f32 %v680_v18, %v650_v20  ;;  %1180 = vst [vmem:[%s1458_s20 + $0x20] sm:$0xff] %v1120_v21   ;;  %v655_v54 = vmul.f32 %v1246_v22, %v1246_v22  ;;  %v665_v21 = vmul.f32 %v1490_v5, %v1490_v5 }
 0x107   : > { %v527_v31 = vpop.f32.mrf.mxu0  ;;  %1188 = vst [vmem:[%s1458_s20 + $0x60] sm:$0xff] %v1160_v23   ;;  %v1506_v32 = vpop.f32.mrf.mxu1 }
 0x108   : > { %v682_v35 = vadd.f32 %v681_v30, %v651_v26  ;;  %v617_v36 = vadd.f32 %v1243_v9, %v616_v28  ;;  %v653_v41 = vmul.f32 %v527_v31, %v527_v31  ;;  %v667_v26 = vmul.f32 %v1486_v0, %v1486_v0 }
 0x109   : > { %v1247_v37 = vpop.f32.mrf.mxu0  ;;  %v1508_v38 = vpop.f32.mrf.mxu1 }
 0x10a   : > { %v618_v39 = vadd.f32 %v617_v36, %v527_v31  ;;  %v683_v42 = vadd.f32 %v682_v35, %v652_v34  ;;  %v1135_v43 = vpack.c.bf16 %v1247_v37, %v1246_v22  ;;  %v1175_v46 = vpack.c.bf16 %v1508_v38, %v1502_v24 }
 0x10b   : > { %v530_v44 = vpop.f32.mrf.mxu0  ;;  %v594_v47 = vpop.f32.mrf.mxu1  ;;  %v656_v58 = vmul.f32 %v1247_v37, %v1247_v37  ;;  %v669_v35 = vmul.f32 %v1506_v32, %v1506_v32 }
 0x10c   : > { %v684_v48 = vadd.f32 %v683_v42, %v653_v41  ;;  %1183 = vst [vmem:[%s1458_s20 + $0x38] sm:$0xff] %v1135_v43   ;;  %v619_v49 = vadd.f32 %v618_v39, %v530_v44  ;;  %v654_v51 = vmul.f32 %v530_v44, %v530_v44  ;;  %v1130_v52 = vpack.c.bf16 %v530_v44, %v527_v31 }
 0x10d   : > { %1191 = vst [vmem:[%s1458_s20 + $0x78] sm:$0xff] %v1175_v46   ;;  %v1170_v53 = vpack.c.bf16 %v594_v47, %v1506_v32  ;;  %v670_v39 = vmul.f32 %v594_v47, %v594_v47 }
 0x10e   : > { %v620_v55 = vadd.f32 %v1246_v22, %v619_v49  ;;  %v685_v56 = vadd.f32 %v684_v48, %v654_v51  ;;  %1182 = vst [vmem:[%s1458_s20 + $0x30] sm:$0xff] %v1130_v52  }
 0x10f   : > { %1190 = vst [vmem:[%s1458_s20 + $0x70] sm:$0xff] %v1170_v53  }
 0x110   : > { %v621_v59 = vadd.f32 %v1247_v37, %v620_v55  ;;  %v686_v60 = vadd.f32 %v685_v56, %v655_v54 }
 0x112   : > { %v687_v62 = vadd.f32 %v686_v60, %v656_v58  ;;  %v622_v63 = vadd.f32 %v621_v59, %v1451_v27 }
 0x114   : > { %v623_v1 = vadd.f32 %v622_v63, %v1464_v33  ;;  %v688_v3 = vadd.f32 %v687_v62, %v657_v61 }
 0x116   : > { %v624_v6 = vadd.f32 %v1449_v25, %v623_v1  ;;  %v689_v7 = vadd.f32 %v688_v3, %v658_v2  ;;  %v663_v25 = vmul.f32 %v1470_v40, %v1470_v40 }
 0x118   : > { %v690_v9 = vadd.f32 %v689_v7, %v659_v4  ;;  %v625_v11 = vadd.f32 %v1460_v29, %v624_v6  ;;  %v664_v29 = vmul.f32 %v1476_v50, %v1476_v50 }
 0x11a   : > { %v626_v27 = vadd.f32 %v625_v11, %v1474_v45  ;;  %v691_v13 = vadd.f32 %v690_v9, %v660_v8 }
 0x11c   : > { %v692_v33 = vadd.f32 %v691_v13, %v661_v12  ;;  %v627_v14 = vadd.f32 %v626_v27, %v1480_v57 }
 0x11e   : > { %v628_v16 = vadd.f32 %v1470_v40, %v627_v14  ;;  %v693_v18 = vadd.f32 %v692_v33, %v662_v15  ;;  %v666_v40 = vmul.f32 %v1496_v17, %v1496_v17 }
 0x120   : > { %v694_v19 = vadd.f32 %v693_v18, %v663_v25  ;;  %v629_v45 = vadd.f32 %v1476_v50, %v628_v16  ;;  %v668_v50 = vmul.f32 %v1492_v10, %v1492_v10 }
 0x122   : > { %v630_v20 = vadd.f32 %v629_v45, %v1490_v5  ;;  %v695_v57 = vadd.f32 %v694_v19, %v664_v29 }
 0x124   : > { %v696_v22 = vadd.f32 %v695_v57, %v665_v21  ;;  %v631_v23 = vadd.f32 %v630_v20, %v1496_v17 }
 0x126   : > { %v632_v28 = vadd.f32 %v1486_v0, %v631_v23  ;;  %v697_v30 = vadd.f32 %v696_v22, %v666_v40  ;;  %v671_v0 = vmul.f32 %v1502_v24, %v1502_v24 }
 0x128   : > { %v698_v31 = vadd.f32 %v697_v30, %v667_v26  ;;  %v633_v5 = vadd.f32 %v1492_v10, %v632_v28  ;;  %v672_v10 = vmul.f32 %v1508_v38, %v1508_v38 }
 0x12a   : > { %v634_v34 = vadd.f32 %v633_v5, %v1506_v32  ;;  %v699_v36 = vadd.f32 %v698_v31, %v668_v50 }
 0x12c   : > { %v700_v17 = vadd.f32 %v699_v36, %v669_v35  ;;  %v635_v37 = vadd.f32 %v634_v34, %v594_v47 }
 0x12e   : > { %v636_v41 = vadd.f32 %v1502_v24, %v635_v37  ;;  %v701_v42 = vadd.f32 %v700_v17, %v670_v39 }
 0x130   : > { %v637_v43 = vadd.f32 %v1508_v38, %v636_v41  ;;  %v702_v44 = vadd.f32 %v701_v42, %v671_v0 }
 0x132   : > { %v703_v32 = vadd.f32 %v702_v44, %v672_v10  ;;  %639 = vst [vmem:[%s241_s24] sm:$0xff] %v637_v43 }
 0x134   : > { %705 = vst [vmem:[%s245_s27] sm:$0xff] %v703_v32 }
 0x135 PF: > { %s15_s17 = sadd.s32 1, %s1351_s17   ;;  %s1584_s15 = smov %s1347_s16 }
 0x136   : > { %p12_p6 = scmp.ge.s32.totalorder %s15_s17, 4   ;;  %s1585_s16 = smov %s1587_s18 }
 0x138   :  { %14 = sbr.rel (!%p12_p6) target bundleno = 2 (0x2), region = 86 }

// kernel: unordered_bottleneck_forward.6
= control target key start
LH: loop header
LB: loop body
LE: loop exit
PB: predicated region body
PF: predicated region fallthrough
CT: control target
= control target key end

     0   :  { %s1958_s30 = smov 0   ;;  %s1960_s10 = smov 0   ;;  %s2168_s0 = inlined_call_operand.vmem [shape: bf16[512,128], index: 0, kind: input, shape index: {}]   ;;  %s2169_s1 = inlined_call_operand.vmem [shape: f32[1,128], index: 1, kind: input, shape index: {}]   ;;  %s2170_s2 = inlined_call_operand.vmem [shape: f32[1,128], index: 2, kind: input, shape index: {}]   ;;  %s2171_s3 = inlined_call_operand.vmem [shape: bf16[128,128], index: 3, kind: input, shape index: {}]   ;;  %s2172_s4 = inlined_call_operand.vmem [shape: bf16[512,128], index: 4, kind: input, shape index: {}]   ;;  %s2173_s5 = inlined_call_operand.vmem [shape: bf16[128,128], index: 5, kind: input, shape index: {}]   ;;  %s2174_s6 = inlined_call_operand.vmem [shape: f32[2,8,128], index: 6, kind: output, shape index: {0}]   ;;  %s2175_s7 = inlined_call_operand.vmem [shape: f32[2,8,128], index: 7, kind: output, shape index: {1}]   ;;  %s2176_s8 = inlined_call_operand.vmem [shape: f32[2,8,128], index: 8, kind: output, shape index: {2}]   ;;  %s2177_s9 = inlined_call_operand.vmem [shape: f32[2,8,128], index: 9, kind: output, shape index: {3}]  }
   0x1   :  { %s1962_s11 = smov 0  }
   0x2 LB: > { %s32_s12 = sadd.s32 1, %s1902_s10  ;;  %p1559_p0 = scmp.ge.s32.totalorder %s1906_s11, 1  ;;  %s1906_s11 = sphi %s1962_s11, %s20_s11   ;;  %s1902_s10 = sphi %s1960_s10, %s2179_s10   ;;  %s1898_s30 = sphi %s1958_s30, %s2178_s30  }
   0x3   : > { %p34_p1 = scmp.ge.s32.totalorder %s32_s12, 2  ;;  %p326_p2 = scmp.lt.s32.totalorder %s1906_s11, 3 }
   0x5   : > { %s2181_s12 = smov (%p34_p1, %s32_s12), 0  ;;  %p327_p3 = pnand %p1559_p0, %p326_p2 }
   0x6   : > { %s1560_s15 = sshll.u32 (!%p327_p3), %s1898_s30, 5  ;;  %p396_p5 = scmp.lt.s32.totalorder (!%p327_p3), %s1898_s30, 1 }
   0x7   : > { %330 = sbr.rel (%p327_p3) target bundleno = 310 (0x136), region = 44  ;;  %p382_p4 = scmp.lt.s32.totalorder (!%p327_p3), %s1560_s15, 63 }
   0xc   : > { %v1852_v0 = vld [vmem:[%s2171_s3 + $0x38] sm:$0xff]   ;;  %v1854_v2 = vld [vmem:[%s2171_s3 + $0x30] sm:$0xff]   ;;  %v1856_v4 = vld [vmem:[%s2171_s3 + $0x28] sm:$0xff]   ;;  %s2183_s15 = smov (!%p382_p4, %s1560_s15), 63  ;;  %s2185_s30 = smov (!%p396_p5, %s1898_s30), 1 }
   0xd   : > { %v1853_v1 = vld [vmem:[%s2173_s5 + $0x38] sm:$0xff]   ;;  %1731 = vmatprep.subr.bf16.mxu0 %v1852_v0  ;;  %v1855_v3 = vld [vmem:[%s2173_s5 + $0x30] sm:$0xff]   ;;  %v1857_v5 = vld [vmem:[%s2173_s5 + $0x28] sm:$0xff]   ;;  %s1561_s13 = sshll.u32 %s2183_s15, 2 }
   0xe   : > { %1779 = vmatprep.subr.bf16.mxu1 %v1853_v1  ;;  %1732 = vmatpush3.bf16.msra.mxu0 %v1852_v0  ;;  %v1858_v6 = vld [vmem:[%s2171_s3 + $0x20] sm:$0xff]   ;;  %v1860_v8 = vld [vmem:[%s2171_s3 + $0x18] sm:$0xff]   ;;  %s2012_s21 = scalar_lea.vmem %s2168_s0, %s1561_s13  ;;  %v1862_v10 = vld [vmem:[%s2171_s3 + $0x10] sm:$0xff]   ;;  %s2020_s25 = scalar_lea.vmem %s2172_s4, %s1561_s13 }
   0xf   : > { %1780 = vmatpush3.bf16.msra.mxu1 %v1853_v1  ;;  %1733 = vmatprep.subr.bf16.mxu0 %v1854_v2  ;;  %v1859_v7 = vld [vmem:[%s2173_s5 + $0x20] sm:$0xff]   ;;  %v1861_v9 = vld [vmem:[%s2173_s5 + $0x18] sm:$0xff]   ;;  %v1863_v11 = vld [vmem:[%s2173_s5 + $0x10] sm:$0xff]  }
  0x10   : > { %1781 = vmatprep.subr.bf16.mxu1 %v1855_v3  ;;  %v1605_v12 = vld [vmem:[%s2012_s21] sm:$0xff]   ;;  %v1668_v18 = vld [vmem:[%s2012_s21 + $0x8] sm:$0xff]   ;;  %v1669_v23 = vld [vmem:[%s2012_s21 + $0x10] sm:$0xff]  }
  0x11   : > { %v2029_v13 = vld [vmem:[%s2169_s1] ss:$0 sm:$0xff]  ;;  %v1606_v15 = vunpack.c.l.bf16 %v1605_v12  ;;  %v1607_v16 = vunpack.c.h.bf16 %v1605_v12  ;;  %v1610_v21 = vunpack.c.l.bf16 %v1668_v18  ;;  %v1611_v22 = vunpack.c.h.bf16 %v1668_v18  ;;  %v1864_v24 = vld [vmem:[%s2171_s3 + $0x8] sm:$0xff]   ;;  %v1670_v27 = vld [vmem:[%s2012_s21 + $0x18] sm:$0xff]  }
  0x12   : > { %1734 = vmatpush3.bf16.msra.mxu0 %v1854_v2  ;;  %v2034_v14 = vld [vmem:[%s2170_s2] ss:$0 sm:$0xff]  ;;  %v1614_v25 = vunpack.c.l.bf16 %v1669_v23  ;;  %v1615_v26 = vunpack.c.h.bf16 %v1669_v23  ;;  %v1865_v28 = vld [vmem:[%s2173_s5 + $0x8] sm:$0xff]   ;;  %v1618_v35 = vunpack.c.l.bf16 %v1670_v27  ;;  %v1619_v36 = vunpack.c.h.bf16 %v1670_v27  ;;  %v1673_v58 = vld [vmem:[%s2012_s21 + $0x30] sm:$0xff]  }
  0x13   : > { %1782 = vmatpush3.bf16.msra.mxu1 %v1855_v3  ;;  %1735 = vmatprep.subr.bf16.mxu0 %v1856_v4  ;;  %v1868_v17 = vld [vmem:[%s2020_s25] sm:$0xff]   ;;  %v492_v19 = vmul.f32 %v1606_v15, %v2029_v13  ;;  %v493_v20 = vmul.f32 %v1607_v16, %v2029_v13  ;;  %v494_v31 = vmul.f32 %v1610_v21, %v2029_v13  ;;  %v1672_v55 = vld [vmem:[%s2012_s21 + $0x28] sm:$0xff]  }
  0x14   : > { %1783 = vmatprep.subr.bf16.mxu1 %v1857_v5  ;;  %1795 = vmatprep.mubr.bf16.mxu1 %v1868_v17  ;;  %v495_v32 = vmul.f32 %v1611_v22, %v2029_v13  ;;  %v496_v33 = vmul.f32 %v1614_v25, %v2029_v13  ;;  %v497_v34 = vmul.f32 %v1615_v26, %v2029_v13  ;;  %v1671_v37 = vld [vmem:[%s2012_s21 + $0x20] sm:$0xff]   ;;  %v1626_v59 = vunpack.c.l.bf16 %v1672_v55  ;;  %v1869_v1 = vld [vmem:[%s2020_s25 + $0x8] sm:$0xff]   ;;  %v1871_v25 = vld [vmem:[%s2020_s25 + $0x18] sm:$0xff]  }
  0x15   : > { %v531_v29 = vadd.f32 %v2034_v14, %v492_v19  ;;  %v532_v30 = vadd.f32 %v2034_v14, %v493_v20  ;;  %v533_v40 = vadd.f32 %v2034_v14, %v494_v31  ;;  %v1866_v42 = vld [vmem:[%s2171_s3] sm:$0xff]   ;;  %v1622_v46 = vunpack.c.l.bf16 %v1671_v37 }
  0x16   : > { %1736 = vmatpush3.bf16.msra.mxu0 %v1856_v4  ;;  %v534_v41 = vadd.f32 %v2034_v14, %v495_v32  ;;  %v1867_v43 = vld [vmem:[%s2173_s5] sm:$0xff]   ;;  %v535_v44 = vadd.f32 %v2034_v14, %v496_v33  ;;  %v536_v45 = vadd.f32 %v2034_v14, %v497_v34  ;;  %v498_v50 = vmul.f32 %v1618_v35, %v2029_v13 }
  0x17   : > { %1784 = vmatpush3.bf16.msra.mxu1 %v1857_v5  ;;  %1737 = vmatprep.subr.bf16.mxu0 %v1858_v6  ;;  %v563_v38 = vmax.f32 %v531_v29, 0.0  ;;  %v564_v39 = vmax.f32 %v532_v30, 0.0  ;;  %v565_v48 = vmax.f32 %v533_v40, 0.0  ;;  %v499_v53 = vmul.f32 %v1619_v36, %v2029_v13  ;;  %v1675_v18 = vld [vmem:[%s2012_s21 + $0x40] sm:$0xff]   ;;  %v1677_v40 = vld [vmem:[%s2012_s21 + $0x50] sm:$0xff]  }
  0x18   : > { %1785 = vmatprep.subr.bf16.mxu1 %v1859_v7  ;;  %v566_v49 = vmax.f32 %v534_v41, 0.0  ;;  %v567_v51 = vmax.f32 %v535_v44, 0.0  ;;  %v568_v52 = vmax.f32 %v536_v45, 0.0  ;;  %v1623_v54 = vunpack.c.h.bf16 %v1671_v37  ;;  %v1872_v30 = vld [vmem:[%s2020_s25 + $0x20] sm:$0xff]  }
  0x19   : > { %v595_v47 = vpack.c.bf16 %v564_v39, %v563_v38  ;;  %v500_v56 = vmul.f32 %v1622_v46, %v2029_v13  ;;  %v1627_v60 = vunpack.c.h.bf16 %v1672_v55  ;;  %v537_v63 = vadd.f32 %v2034_v14, %v498_v50  ;;  %v1676_v39 = vld [vmem:[%s2012_s21 + $0x48] sm:$0xff]  }
  0x1a   : > { %1738 = vmatpush3.bf16.msra.mxu0 %v1858_v6  ;;  %v501_v57 = vmul.f32 %v1623_v54, %v2029_v13  ;;  %v596_v61 = vpack.c.bf16 %v566_v49, %v565_v48  ;;  %v597_v62 = vpack.c.bf16 %v568_v52, %v567_v51  ;;  %v538_v0 = vadd.f32 %v2034_v14, %v499_v53  ;;  %v1870_v6 = vld [vmem:[%s2020_s25 + $0x10] sm:$0xff]  }
  0x1b   : > { %1786 = vmatpush3.bf16.msra.mxu1 %v1859_v7  ;;  %1739 = vmatprep.subr.bf16.mxu0 %v1860_v8  ;;  %v539_v2 = vadd.f32 %v2034_v14, %v500_v56  ;;  %v1630_v4 = vunpack.c.l.bf16 %v1673_v58  ;;  %v1631_v5 = vunpack.c.h.bf16 %v1673_v58  ;;  %v502_v7 = vmul.f32 %v1626_v59, %v2029_v13  ;;  %v1874_v52 = vld [vmem:[%s2020_s25 + $0x30] sm:$0xff]  }
  0x1c   : > { %1787 = vmatprep.subr.bf16.mxu1 %v1861_v9  ;;  %1747 = vmatprep.mubr.bf16.mxu0 %v595_v47  ;;  %v540_v3 = vadd.f32 %v2034_v14, %v501_v57  ;;  %v1639_v29 = vunpack.c.h.bf16 %v1675_v18  ;;  %v1642_v45 = vunpack.c.l.bf16 %v1676_v39  ;;  %v1643_v46 = vunpack.c.h.bf16 %v1676_v39  ;;  %v1873_v47 = vld [vmem:[%s2020_s25 + $0x28] sm:$0xff]   ;;  %v1678_v57 = vld [vmem:[%s2012_s21 + $0x58] sm:$0xff]  }
  0x1d   : > { %v571_v12 = vmax.f32 %v539_v2, 0.0  ;;  %v504_v16 = vmul.f32 %v1630_v4, %v2029_v13  ;;  %v505_v17 = vmul.f32 %v1631_v5, %v2029_v13  ;;  %v541_v19 = vadd.f32 %v2034_v14, %v502_v7  ;;  %v1875_v5 = vld [vmem:[%s2020_s25 + $0x38] sm:$0xff]  }
  0x1e   : > { %1740 = vmatpush3.bf16.msra.mxu0 %v1860_v8  ;;  %v503_v8 = vmul.f32 %v1627_v60, %v2029_v13  ;;  %v572_v15 = vmax.f32 %v540_v3, 0.0  ;;  %v509_v38 = vmul.f32 %v1639_v29, %v2029_v13  ;;  %v1646_v50 = vunpack.c.l.bf16 %v1677_v40  ;;  %v1877_v29 = vld [vmem:[%s2020_s25 + $0x48] sm:$0xff]  }
  0x1f   : > { %1788 = vmatpush3.bf16.msra.mxu1 %v1861_v9  ;;  %1741 = vmatprep.subr.bf16.mxu0 %v1862_v10  ;;  %v569_v9 = vmax.f32 %v537_v63, 0.0  ;;  %v543_v27 = vadd.f32 %v2034_v14, %v504_v16  ;;  %v573_v31 = vmax.f32 %v541_v19, 0.0  ;;  %v1647_v51 = vunpack.c.h.bf16 %v1677_v40 }
  0x20   : > { %1789 = vmatprep.subr.bf16.mxu1 %v1863_v11  ;;  %v542_v20 = vadd.f32 %v2034_v14, %v503_v8  ;;  %v599_v26 = vpack.c.bf16 %v572_v15, %v571_v12  ;;  %v548_v49 = vadd.f32 %v2034_v14, %v509_v38  ;;  %v510_v55 = vmul.f32 %v1642_v45, %v2029_v13 }
  0x21   : > { %v575_v36 = vmax.f32 %v543_v27, 0.0  ;;  %v511_v56 = vmul.f32 %v1643_v46, %v2029_v13  ;;  %v512_v60 = vmul.f32 %v1646_v50, %v2029_v13  ;;  %v1650_v63 = vunpack.c.l.bf16 %v1678_v57 }
  0x22   : > { %1742 = vmatpush3.bf16.msra.mxu0 %v1862_v10  ;;  %v570_v10 = vmax.f32 %v538_v0, 0.0  ;;  %v574_v32 = vmax.f32 %v542_v20, 0.0  ;;  %v580_v59 = vmax.f32 %v548_v49, 0.0  ;;  %v1651_v0 = vunpack.c.h.bf16 %v1678_v57  ;;  %v1879_v49 = vld [vmem:[%s2020_s25 + $0x58] sm:$0xff]  }
  0x23   : > { %1790 = vmatpush3.bf16.msra.mxu1 %v1863_v11  ;;  %1743 = vmatprep.subr.bf16.mxu0 %v1864_v24  ;;  %v1674_v11 = vld [vmem:[%s2012_s21 + $0x38] sm:$0xff]   ;;  %v549_v2 = vadd.f32 %v2034_v14, %v510_v55  ;;  %v550_v3 = vadd.f32 %v2034_v14, %v511_v56  ;;  %v551_v7 = vadd.f32 %v2034_v14, %v512_v60 }
  0x24   : > { %1791 = vmatprep.subr.bf16.mxu1 %v1865_v28  ;;  %v1634_v21 = vunpack.c.l.bf16 %v1674_v11  ;;  %v598_v22 = vpack.c.bf16 %v570_v10, %v569_v9  ;;  %v1635_v23 = vunpack.c.h.bf16 %v1674_v11  ;;  %v600_v41 = vpack.c.bf16 %v574_v32, %v573_v31  ;;  %v1876_v10 = vld [vmem:[%s2020_s25 + $0x40] sm:$0xff]  }
  0x25   : > { %v514_v11 = vmul.f32 %v1650_v63, %v2029_v13  ;;  %v515_v12 = vmul.f32 %v1651_v0, %v2029_v13  ;;  %v581_v15 = vmax.f32 %v549_v2, 0.0  ;;  %v582_v16 = vmax.f32 %v550_v3, 0.0  ;;  %v1881_v63 = vld [vmem:[%s2020_s25 + $0x68] sm:$0xff]  }
  0x26   : > { %1744 = vmatpush3.bf16.msra.mxu0 %v1864_v24  ;;  %v1638_v24 = vunpack.c.l.bf16 %v1675_v18  ;;  %v506_v33 = vmul.f32 %v1634_v21, %v2029_v13  ;;  %v507_v34 = vmul.f32 %v1635_v23, %v2029_v13  ;;  %v583_v18 = vmax.f32 %v551_v7, 0.0  ;;  %v1680_v21 = vld [vmem:[%s2012_s21 + $0x68] sm:$0xff]  }
  0x27   : > { %1792 = vmatpush3.bf16.msra.mxu1 %v1865_v28  ;;  %1745 = vmatprep.subr.bf16.mxu0 %v1866_v42  ;;  %v544_v28 = vadd.f32 %v2034_v14, %v505_v17  ;;  %v553_v23 = vadd.f32 %v2034_v14, %v514_v11  ;;  %v1658_v27 = vunpack.c.l.bf16 %v1680_v21 }
  0x28   : > { %1793 = vmatprep.subr.bf16.mxu1 %v1867_v43  ;;  %v508_v35 = vmul.f32 %v1638_v24, %v2029_v13  ;;  %v554_v24 = vadd.f32 %v2034_v14, %v515_v12 }
  0x29   : > { %v576_v37 = vmax.f32 %v544_v28, 0.0  ;;  %v1659_v28 = vunpack.c.h.bf16 %v1680_v21 }
  0x2a   : > { %1746 = vmatpush3.bf16.msra.mxu0 %v1866_v42  ;;  %v545_v42 = vadd.f32 %v2034_v14, %v506_v33  ;;  %v547_v44 = vadd.f32 %v2034_v14, %v508_v35  ;;  %v585_v35 = vmax.f32 %v553_v23, 0.0 }
  0x2b   : > { %1794 = vmatpush3.bf16.msra.mxu1 %v1867_v43  ;;  %v546_v43 = vadd.f32 %v2034_v14, %v507_v34  ;;  %v601_v48 = vpack.c.bf16 %v576_v37, %v575_v36  ;;  %v1878_v34 = vld [vmem:[%s2020_s25 + $0x50] sm:$0xff]   ;;  %v586_v36 = vmax.f32 %v554_v24, 0.0  ;;  %v518_v37 = vmul.f32 %v1658_v27, %v2029_v13 }
  0x2c   : > { %v577_v53 = vmax.f32 %v545_v42, 0.0  ;;  %v579_v58 = vmax.f32 %v547_v44, 0.0  ;;  %v519_v38 = vmul.f32 %v1659_v28, %v2029_v13 }
  0x2d   : > { %1748 = vmatmul.mubr.bf16.vlgmr.msra.gmra.mxu0 %v596_v61  ;;  %v578_v54 = vmax.f32 %v546_v43, 0.0  ;;  %v513_v61 = vmul.f32 %v1647_v51, %v2029_v13  ;;  %v1682_v43 = vld [vmem:[%s2012_s21 + $0x78] sm:$0xff]   ;;  %v606_v44 = vpack.c.bf16 %v586_v36, %v585_v35  ;;  %v557_v45 = vadd.f32 %v2034_v14, %v518_v37 }
  0x2e   : > { %1796 = vmatmul.mubr.bf16.vlgmr.msra.gmra.mxu1 %v1869_v1  ;;  %1751 = vmatprep.mubr.bf16.mxu0 %v597_v62  ;;  %v1679_v62 = vld [vmem:[%s2012_s21 + $0x60] sm:$0xff]   ;;  %v558_v46 = vadd.f32 %v2034_v14, %v519_v38 }
  0x2f   : > { %1799 = vmatprep.mubr.bf16.mxu1 %v1870_v6  ;;  %v602_v1 = vpack.c.bf16 %v578_v54, %v577_v53  ;;  %v1654_v4 = vunpack.c.l.bf16 %v1679_v62  ;;  %v603_v6 = vpack.c.bf16 %v580_v59, %v579_v58  ;;  %v552_v8 = vadd.f32 %v2034_v14, %v513_v61  ;;  %v1880_v53 = vld [vmem:[%s2020_s25 + $0x60] sm:$0xff]  }
  0x30   : > { %v1655_v9 = vunpack.c.h.bf16 %v1679_v62  ;;  %v589_v54 = vmax.f32 %v557_v45, 0.0  ;;  %v590_v55 = vmax.f32 %v558_v46, 0.0 }
  0x31   : > { %v516_v17 = vmul.f32 %v1654_v4, %v2029_v13  ;;  %v584_v19 = vmax.f32 %v552_v8, 0.0  ;;  %v1883_v4 = vld [vmem:[%s2020_s25 + $0x78] sm:$0xff]  }
  0x32   : > { %v517_v20 = vmul.f32 %v1655_v9, %v2029_v13  ;;  %v608_v60 = vpack.c.bf16 %v590_v55, %v589_v54 }
  0x34   : > { %v556_v31 = vadd.f32 %v2034_v14, %v517_v20 }
  0x35   : > { %1752 = vmatmul.mubr.bf16.gmra.mxu0 %v598_v22  ;;  %v1681_v22 = vld [vmem:[%s2012_s21 + $0x70] sm:$0xff]   ;;  %s1564_s21 = sshll.u32 %s2185_s30, 3 }
  0x36   : > { %1800 = vmatmul.mubr.bf16.gmra.mxu1 %v1871_v25  ;;  %1755 = vmatprep.mubr.bf16.mxu0 %v599_v26  ;;  %v604_v25 = vpack.c.bf16 %v582_v16, %v581_v15  ;;  %v555_v26 = vadd.f32 %v2034_v14, %v516_v17  ;;  %v1662_v32 = vunpack.c.l.bf16 %v1681_v22  ;;  %v1663_v33 = vunpack.c.h.bf16 %v1681_v22  ;;  %s399_s26 = scalar_lea.vmem %s2174_s6, %s1564_s21  ;;  %s407_s30 = scalar_lea.vmem %s2176_s8, %s1564_s21 }
  0x37   : > { %1803 = vmatprep.mubr.bf16.mxu1 %v1872_v30  ;;  %v605_v30 = vpack.c.bf16 %v584_v19, %v583_v18  ;;  %v588_v40 = vmax.f32 %v556_v31, 0.0  ;;  %s403_s16 = scalar_lea.vmem %s2175_s7, %s1564_s21  ;;  %s411_s18 = scalar_lea.vmem %s2177_s9, %s1564_s21 }
  0x38   : > { %v587_v39 = vmax.f32 %v555_v26, 0.0  ;;  %v521_v42 = vmul.f32 %v1663_v33, %v2029_v13 }
  0x3a   : > { %v607_v50 = vpack.c.bf16 %v588_v40, %v587_v39 }
  0x3d   : > { %1756 = vmatmul.mubr.bf16.gmra.mxu0 %v600_v41  ;;  %v520_v41 = vmul.f32 %v1662_v32, %v2029_v13 }
  0x3e   : > { %1804 = vmatmul.mubr.bf16.gmra.mxu1 %v1873_v47  ;;  %1759 = vmatprep.mubr.bf16.mxu0 %v601_v48  ;;  %v1666_v47 = vunpack.c.l.bf16 %v1682_v43  ;;  %v1667_v48 = vunpack.c.h.bf16 %v1682_v43 }
  0x3f   : > { %1807 = vmatprep.mubr.bf16.mxu1 %v1874_v52  ;;  %v559_v51 = vadd.f32 %v2034_v14, %v520_v41  ;;  %v560_v52 = vadd.f32 %v2034_v14, %v521_v42 }
  0x40   : > { %v522_v56 = vmul.f32 %v1666_v47, %v2029_v13  ;;  %v523_v57 = vmul.f32 %v1667_v48, %v2029_v13 }
  0x41   : > { %v591_v58 = vmax.f32 %v559_v51, 0.0  ;;  %v592_v59 = vmax.f32 %v560_v52, 0.0 }
  0x42   : > { %v561_v61 = vadd.f32 %v2034_v14, %v522_v56  ;;  %v562_v62 = vadd.f32 %v2034_v14, %v523_v57 }
  0x43   : > { %v609_v0 = vpack.c.bf16 %v592_v59, %v591_v58 }
  0x44   : > { %v593_v2 = vmax.f32 %v561_v61, 0.0  ;;  %v594_v3 = vmax.f32 %v562_v62, 0.0 }
  0x45   : > { %1760 = vmatmul.mubr.bf16.gmra.mxu0 %v602_v1  ;;  %v1882_v1 = vld [vmem:[%s2020_s25 + $0x70] sm:$0xff]  }
  0x46   : > { %1808 = vmatmul.mubr.bf16.gmra.mxu1 %v1875_v5  ;;  %1763 = vmatprep.mubr.bf16.mxu0 %v603_v6  ;;  %v610_v13 = vpack.c.bf16 %v594_v3, %v593_v2 }
  0x47   : > { %1811 = vmatprep.mubr.bf16.mxu1 %v1876_v10 }
  0x4d   : > { %1764 = vmatmul.mubr.bf16.gmra.mxu0 %v604_v25 }
  0x4e   : > { %1812 = vmatmul.mubr.bf16.gmra.mxu1 %v1877_v29  ;;  %1767 = vmatprep.mubr.bf16.mxu0 %v605_v30 }
  0x4f   : > { %1815 = vmatprep.mubr.bf16.mxu1 %v1878_v34 }
  0x55   : > { %1768 = vmatmul.mubr.bf16.gmra.mxu0 %v606_v44 }
  0x56   : > { %1816 = vmatmul.mubr.bf16.gmra.mxu1 %v1879_v49  ;;  %1771 = vmatprep.mubr.bf16.mxu0 %v607_v50 }
  0x57   : > { %1819 = vmatprep.mubr.bf16.mxu1 %v1880_v53 }
  0x5d   : > { %1772 = vmatmul.mubr.bf16.gmra.mxu0 %v608_v60 }
  0x5e   : > { %1820 = vmatmul.mubr.bf16.gmra.mxu1 %v1881_v63  ;;  %1775 = vmatprep.mubr.bf16.mxu0 %v609_v0 }
  0x5f   : > { %1823 = vmatprep.mubr.bf16.mxu1 %v1882_v1 }
  0x65   : > { %1776 = vmatmul.mubr.bf16.gmra.mxu0 %v610_v13 }
  0x66   : > { %1824 = vmatmul.mubr.bf16.gmra.mxu1 %v1883_v4 }
  0xed   : > { %v1749_v5 = vpop.f32.mrf.mxu0 }
  0xee   : > { %v1797_v6 = vpop.f32.mrf.mxu1  ;;  %v873_v21 = vmul.f32 %v1749_v5, %v1749_v5 }
  0xef   : > { %v709_v7 = vpop.f32.mrf.mxu0  ;;  %v1326_v25 = vmul.f32 %v1797_v6, %v1797_v6 }
  0xf0   : > { %v1162_v8 = vpop.f32.mrf.mxu1  ;;  %v871_v11 = vmul.f32 %v709_v7, %v709_v7 }
  0xf1   : > { %v1750_v9 = vpop.f32.mrf.mxu0  ;;  %v1324_v17 = vmul.f32 %v1162_v8, %v1162_v8 }
  0xf2   : > { %v1798_v10 = vpop.f32.mrf.mxu1  ;;  %v874_v29 = vmul.f32 %v1750_v9, %v1750_v9 }
  0xf3   : > { %v712_v14 = vpop.f32.mrf.mxu0  ;;  %v1327_v33 = vmul.f32 %v1798_v10, %v1798_v10 }
  0xf4   : > { %v837_v12 = vadd.f32 %v712_v14, %v709_v7  ;;  %v872_v15 = vmul.f32 %v712_v14, %v712_v14  ;;  %v1165_v16 = vpop.f32.mrf.mxu1 }
  0xf5   : > { %v1290_v18 = vadd.f32 %v1165_v16, %v1162_v8  ;;  %v1325_v19 = vmul.f32 %v1165_v16, %v1165_v16  ;;  %v1753_v20 = vpop.f32.mrf.mxu0 }
  0xf6   : > { %v838_v22 = vadd.f32 %v1749_v5, %v837_v12  ;;  %v903_v23 = vadd.f32 %v872_v15, %v871_v11  ;;  %v1801_v24 = vpop.f32.mrf.mxu1  ;;  %v877_v53 = vmul.f32 %v1753_v20, %v1753_v20 }
  0xf7   : > { %v1291_v26 = vadd.f32 %v1797_v6, %v1290_v18  ;;  %v1356_v27 = vadd.f32 %v1325_v19, %v1324_v17  ;;  %v725_v28 = vpop.f32.mrf.mxu0  ;;  %v1330_v57 = vmul.f32 %v1801_v24, %v1801_v24 }
  0xf8   : > { %v904_v30 = vadd.f32 %v903_v23, %v873_v21  ;;  %v839_v31 = vadd.f32 %v1750_v9, %v838_v22  ;;  %v1178_v32 = vpop.f32.mrf.mxu1  ;;  %v875_v38 = vmul.f32 %v725_v28, %v725_v28 }
  0xf9   : > { %v1357_v34 = vadd.f32 %v1356_v27, %v1326_v25  ;;  %v1292_v35 = vadd.f32 %v1798_v10, %v1291_v26  ;;  %v1754_v36 = vpop.f32.mrf.mxu0  ;;  %v1328_v42 = vmul.f32 %v1178_v32, %v1178_v32 }
  0xfa   : > { %v840_v37 = vadd.f32 %v839_v31, %v725_v28  ;;  %v905_v39 = vadd.f32 %v904_v30, %v874_v29  ;;  %v1802_v40 = vpop.f32.mrf.mxu1  ;;  %v878_v61 = vmul.f32 %v1754_v36, %v1754_v36 }
  0xfb   : > { %v1293_v41 = vadd.f32 %v1292_v35, %v1178_v32  ;;  %v1358_v43 = vadd.f32 %v1357_v34, %v1327_v33  ;;  %v728_v44 = vpop.f32.mrf.mxu0  ;;  %v1331_v1 = vmul.f32 %v1802_v40, %v1802_v40 }
  0xfc   : > { %v906_v45 = vadd.f32 %v905_v39, %v875_v38  ;;  %v841_v46 = vadd.f32 %v840_v37, %v728_v44  ;;  %v876_v47 = vmul.f32 %v728_v44, %v728_v44  ;;  %v1181_v48 = vpop.f32.mrf.mxu1 }
  0xfd   : > { %v1359_v49 = vadd.f32 %v1358_v43, %v1328_v42  ;;  %v1294_v50 = vadd.f32 %v1293_v41, %v1181_v48  ;;  %v1329_v51 = vmul.f32 %v1181_v48, %v1181_v48  ;;  %v1757_v52 = vpop.f32.mrf.mxu0 }
  0xfe   : > { %v842_v54 = vadd.f32 %v1753_v20, %v841_v46  ;;  %v907_v55 = vadd.f32 %v906_v45, %v876_v47  ;;  %v1805_v56 = vpop.f32.mrf.mxu1  ;;  %v881_v21 = vmul.f32 %v1757_v52, %v1757_v52 }
  0xff   : > { %v1295_v58 = vadd.f32 %v1801_v24, %v1294_v50  ;;  %v1360_v59 = vadd.f32 %v1359_v49, %v1329_v51  ;;  %v741_v60 = vpop.f32.mrf.mxu0  ;;  %v1334_v25 = vmul.f32 %v1805_v56, %v1805_v56 }
 0x100   : > { %v908_v62 = vadd.f32 %v907_v55, %v877_v53  ;;  %v843_v63 = vadd.f32 %v1754_v36, %v842_v54  ;;  %v1194_v0 = vpop.f32.mrf.mxu1  ;;  %v879_v5 = vmul.f32 %v741_v60, %v741_v60 }
 0x101   : > { %v1361_v2 = vadd.f32 %v1360_v59, %v1330_v57  ;;  %v1296_v3 = vadd.f32 %v1802_v40, %v1295_v58  ;;  %v1758_v13 = vpop.f32.mrf.mxu0  ;;  %v1332_v9 = vmul.f32 %v1194_v0, %v1194_v0 }
 0x102   : > { %v844_v4 = vadd.f32 %v843_v63, %v741_v60  ;;  %v909_v6 = vadd.f32 %v908_v62, %v878_v61  ;;  %v1806_v7 = vpop.f32.mrf.mxu1  ;;  %v882_v29 = vmul.f32 %v1758_v13, %v1758_v13 }
 0x103   : > { %v1297_v8 = vadd.f32 %v1296_v3, %v1194_v0  ;;  %v1362_v10 = vadd.f32 %v1361_v2, %v1331_v1  ;;  %v744_v14 = vpop.f32.mrf.mxu0  ;;  %v1335_v33 = vmul.f32 %v1806_v7, %v1806_v7 }
 0x104   : > { %v910_v11 = vadd.f32 %v909_v6, %v879_v5  ;;  %v845_v12 = vadd.f32 %v844_v4, %v744_v14  ;;  %v880_v15 = vmul.f32 %v744_v14, %v744_v14  ;;  %v1197_v16 = vpop.f32.mrf.mxu1 }
 0x105   : > { %v1363_v17 = vadd.f32 %v1362_v10, %v1332_v9  ;;  %v1298_v18 = vadd.f32 %v1297_v8, %v1197_v16  ;;  %v1333_v19 = vmul.f32 %v1197_v16, %v1197_v16  ;;  %v1761_v20 = vpop.f32.mrf.mxu0 }
 0x106   : > { %v846_v22 = vadd.f32 %v1757_v52, %v845_v12  ;;  %v911_v23 = vadd.f32 %v910_v11, %v880_v15  ;;  %v1809_v24 = vpop.f32.mrf.mxu1  ;;  %v885_v53 = vmul.f32 %v1761_v20, %v1761_v20 }
 0x107   : > { %v1299_v26 = vadd.f32 %v1805_v56, %v1298_v18  ;;  %v1364_v27 = vadd.f32 %v1363_v17, %v1333_v19  ;;  %v757_v28 = vpop.f32.mrf.mxu0  ;;  %v1338_v57 = vmul.f32 %v1809_v24, %v1809_v24 }
 0x108   : > { %v912_v30 = vadd.f32 %v911_v23, %v881_v21  ;;  %v847_v31 = vadd.f32 %v1758_v13, %v846_v22  ;;  %v1210_v32 = vpop.f32.mrf.mxu1  ;;  %v883_v38 = vmul.f32 %v757_v28, %v757_v28 }
 0x109   : > { %v1365_v34 = vadd.f32 %v1364_v27, %v1334_v25  ;;  %v1300_v35 = vadd.f32 %v1806_v7, %v1299_v26  ;;  %v1762_v36 = vpop.f32.mrf.mxu0  ;;  %v1336_v42 = vmul.f32 %v1210_v32, %v1210_v32 }
 0x10a   : > { %v848_v37 = vadd.f32 %v847_v31, %v757_v28  ;;  %v913_v39 = vadd.f32 %v912_v30, %v882_v29  ;;  %v1810_v40 = vpop.f32.mrf.mxu1  ;;  %v886_v61 = vmul.f32 %v1762_v36, %v1762_v36 }
 0x10b   : > { %v1301_v41 = vadd.f32 %v1300_v35, %v1210_v32  ;;  %v1366_v43 = vadd.f32 %v1365_v34, %v1335_v33  ;;  %v760_v44 = vpop.f32.mrf.mxu0  ;;  %v1339_v1 = vmul.f32 %v1810_v40, %v1810_v40 }
 0x10c   : > { %v914_v45 = vadd.f32 %v913_v39, %v883_v38  ;;  %v849_v46 = vadd.f32 %v848_v37, %v760_v44  ;;  %v884_v47 = vmul.f32 %v760_v44, %v760_v44  ;;  %v1213_v48 = vpop.f32.mrf.mxu1 }
 0x10d   : > { %v1367_v49 = vadd.f32 %v1366_v43, %v1336_v42  ;;  %v1302_v50 = vadd.f32 %v1301_v41, %v1213_v48  ;;  %v1337_v51 = vmul.f32 %v1213_v48, %v1213_v48  ;;  %v1765_v52 = vpop.f32.mrf.mxu0 }
 0x10e   : > { %v850_v54 = vadd.f32 %v1761_v20, %v849_v46  ;;  %v915_v55 = vadd.f32 %v914_v45, %v884_v47  ;;  %v1813_v56 = vpop.f32.mrf.mxu1  ;;  %v889_v21 = vmul.f32 %v1765_v52, %v1765_v52 }
 0x10f   : > { %v1303_v58 = vadd.f32 %v1809_v24, %v1302_v50  ;;  %v1368_v59 = vadd.f32 %v1367_v49, %v1337_v51  ;;  %v773_v60 = vpop.f32.mrf.mxu0  ;;  %v1342_v25 = vmul.f32 %v1813_v56, %v1813_v56 }
 0x110   : > { %v916_v62 = vadd.f32 %v915_v55, %v885_v53  ;;  %v851_v63 = vadd.f32 %v1762_v36, %v850_v54  ;;  %v1226_v0 = vpop.f32.mrf.mxu1  ;;  %v887_v5 = vmul.f32 %v773_v60, %v773_v60 }
 0x111   : > { %v1369_v2 = vadd.f32 %v1368_v59, %v1338_v57  ;;  %v1304_v3 = vadd.f32 %v1810_v40, %v1303_v58  ;;  %v1766_v13 = vpop.f32.mrf.mxu0  ;;  %v1340_v9 = vmul.f32 %v1226_v0, %v1226_v0 }
 0x112   : > { %v852_v4 = vadd.f32 %v851_v63, %v773_v60  ;;  %v917_v6 = vadd.f32 %v916_v62, %v886_v61  ;;  %v1814_v7 = vpop.f32.mrf.mxu1  ;;  %v890_v29 = vmul.f32 %v1766_v13, %v1766_v13 }
 0x113   : > { %v1305_v8 = vadd.f32 %v1304_v3, %v1226_v0  ;;  %v1370_v10 = vadd.f32 %v1369_v2, %v1339_v1  ;;  %v776_v14 = vpop.f32.mrf.mxu0  ;;  %v1343_v33 = vmul.f32 %v1814_v7, %v1814_v7 }
 0x114   : > { %v918_v11 = vadd.f32 %v917_v6, %v887_v5  ;;  %v853_v12 = vadd.f32 %v852_v4, %v776_v14  ;;  %v888_v15 = vmul.f32 %v776_v14, %v776_v14  ;;  %v1229_v16 = vpop.f32.mrf.mxu1 }
 0x115   : > { %v1371_v17 = vadd.f32 %v1370_v10, %v1340_v9  ;;  %v1306_v18 = vadd.f32 %v1305_v8, %v1229_v16  ;;  %v1341_v19 = vmul.f32 %v1229_v16, %v1229_v16  ;;  %v1769_v20 = vpop.f32.mrf.mxu0 }
 0x116   : > { %v854_v22 = vadd.f32 %v1765_v52, %v853_v12  ;;  %v919_v23 = vadd.f32 %v918_v11, %v888_v15  ;;  %v1817_v24 = vpop.f32.mrf.mxu1  ;;  %v893_v53 = vmul.f32 %v1769_v20, %v1769_v20 }
 0x117   : > { %v1307_v26 = vadd.f32 %v1813_v56, %v1306_v18  ;;  %v1372_v27 = vadd.f32 %v1371_v17, %v1341_v19  ;;  %v789_v28 = vpop.f32.mrf.mxu0  ;;  %v1346_v57 = vmul.f32 %v1817_v24, %v1817_v24 }
 0x118   : > { %v920_v30 = vadd.f32 %v919_v23, %v889_v21  ;;  %v855_v31 = vadd.f32 %v1766_v13, %v854_v22  ;;  %v1242_v32 = vpop.f32.mrf.mxu1  ;;  %v891_v38 = vmul.f32 %v789_v28, %v789_v28 }
 0x119   : > { %v1373_v34 = vadd.f32 %v1372_v27, %v1342_v25  ;;  %v1308_v35 = vadd.f32 %v1814_v7, %v1307_v26  ;;  %v1770_v36 = vpop.f32.mrf.mxu0  ;;  %v1344_v42 = vmul.f32 %v1242_v32, %v1242_v32 }
 0x11a   : > { %v856_v37 = vadd.f32 %v855_v31, %v789_v28  ;;  %v921_v39 = vadd.f32 %v920_v30, %v890_v29  ;;  %v1818_v40 = vpop.f32.mrf.mxu1  ;;  %v894_v61 = vmul.f32 %v1770_v36, %v1770_v36 }
 0x11b   : > { %v1309_v41 = vadd.f32 %v1308_v35, %v1242_v32  ;;  %v1374_v43 = vadd.f32 %v1373_v34, %v1343_v33  ;;  %v792_v44 = vpop.f32.mrf.mxu0  ;;  %v1347_v1 = vmul.f32 %v1818_v40, %v1818_v40 }
 0x11c   : > { %v922_v45 = vadd.f32 %v921_v39, %v891_v38  ;;  %v857_v46 = vadd.f32 %v856_v37, %v792_v44  ;;  %v892_v47 = vmul.f32 %v792_v44, %v792_v44  ;;  %v1245_v48 = vpop.f32.mrf.mxu1 }
 0x11d   : > { %v1375_v49 = vadd.f32 %v1374_v43, %v1344_v42  ;;  %v1310_v50 = vadd.f32 %v1309_v41, %v1245_v48  ;;  %v1345_v51 = vmul.f32 %v1245_v48, %v1245_v48  ;;  %v1773_v52 = vpop.f32.mrf.mxu0 }
 0x11e   : > { %v858_v54 = vadd.f32 %v1769_v20, %v857_v46  ;;  %v923_v55 = vadd.f32 %v922_v45, %v892_v47  ;;  %v1821_v56 = vpop.f32.mrf.mxu1  ;;  %v897_v21 = vmul.f32 %v1773_v52, %v1773_v52 }
 0x11f   : > { %v1311_v58 = vadd.f32 %v1817_v24, %v1310_v50  ;;  %v1376_v59 = vadd.f32 %v1375_v49, %v1345_v51  ;;  %v805_v60 = vpop.f32.mrf.mxu0  ;;  %v1350_v25 = vmul.f32 %v1821_v56, %v1821_v56 }
 0x120   : > { %v924_v62 = vadd.f32 %v923_v55, %v893_v53  ;;  %v859_v63 = vadd.f32 %v1770_v36, %v858_v54  ;;  %v1258_v0 = vpop.f32.mrf.mxu1  ;;  %v895_v5 = vmul.f32 %v805_v60, %v805_v60 }
 0x121   : > { %v1377_v2 = vadd.f32 %v1376_v59, %v1346_v57  ;;  %v1312_v3 = vadd.f32 %v1818_v40, %v1311_v58  ;;  %v1774_v13 = vpop.f32.mrf.mxu0  ;;  %v1348_v9 = vmul.f32 %v1258_v0, %v1258_v0 }
 0x122   : > { %v860_v4 = vadd.f32 %v859_v63, %v805_v60  ;;  %v925_v6 = vadd.f32 %v924_v62, %v894_v61  ;;  %v1822_v7 = vpop.f32.mrf.mxu1  ;;  %v898_v29 = vmul.f32 %v1774_v13, %v1774_v13 }
 0x123   : > { %v1313_v8 = vadd.f32 %v1312_v3, %v1258_v0  ;;  %v1378_v10 = vadd.f32 %v1377_v2, %v1347_v1  ;;  %v808_v14 = vpop.f32.mrf.mxu0  ;;  %v1351_v33 = vmul.f32 %v1822_v7, %v1822_v7 }
 0x124   : > { %v926_v11 = vadd.f32 %v925_v6, %v895_v5  ;;  %v861_v12 = vadd.f32 %v860_v4, %v808_v14  ;;  %v896_v15 = vmul.f32 %v808_v14, %v808_v14  ;;  %v1261_v16 = vpop.f32.mrf.mxu1 }
 0x125   : > { %v1379_v17 = vadd.f32 %v1378_v10, %v1348_v9  ;;  %v1314_v18 = vadd.f32 %v1313_v8, %v1261_v16  ;;  %v1349_v19 = vmul.f32 %v1261_v16, %v1261_v16  ;;  %v1777_v20 = vpop.f32.mrf.mxu0 }
 0x126   : > { %v862_v22 = vadd.f32 %v1773_v52, %v861_v12  ;;  %v927_v23 = vadd.f32 %v926_v11, %v896_v15  ;;  %v1825_v24 = vpop.f32.mrf.mxu1  ;;  %v901_v52 = vmul.f32 %v1777_v20, %v1777_v20 }
 0x127   : > { %v1315_v26 = vadd.f32 %v1821_v56, %v1314_v18  ;;  %v1380_v27 = vadd.f32 %v1379_v17, %v1349_v19  ;;  %v821_v28 = vpop.f32.mrf.mxu0  ;;  %v1354_v55 = vmul.f32 %v1825_v24, %v1825_v24 }
 0x128   : > { %v928_v30 = vadd.f32 %v927_v23, %v897_v21  ;;  %v863_v31 = vadd.f32 %v1774_v13, %v862_v22  ;;  %v1274_v32 = vpop.f32.mrf.mxu1  ;;  %v899_v38 = vmul.f32 %v821_v28, %v821_v28 }
 0x129   : > { %v1381_v34 = vadd.f32 %v1380_v27, %v1350_v25  ;;  %v1316_v35 = vadd.f32 %v1822_v7, %v1315_v26  ;;  %v1778_v36 = vpop.f32.mrf.mxu0  ;;  %v1352_v42 = vmul.f32 %v1274_v32, %v1274_v32 }
 0x12a   : > { %v864_v37 = vadd.f32 %v863_v31, %v821_v28  ;;  %v929_v39 = vadd.f32 %v928_v30, %v898_v29  ;;  %v1826_v40 = vpop.f32.mrf.mxu1  ;;  %v902_v58 = vmul.f32 %v1778_v36, %v1778_v36 }
 0x12b   : > { %v1317_v41 = vadd.f32 %v1316_v35, %v1274_v32  ;;  %v1382_v43 = vadd.f32 %v1381_v34, %v1351_v33  ;;  %v824_v44 = vpop.f32.mrf.mxu0  ;;  %v1355_v61 = vmul.f32 %v1826_v40, %v1826_v40 }
 0x12c   : > { %v930_v45 = vadd.f32 %v929_v39, %v899_v38  ;;  %v865_v46 = vadd.f32 %v864_v37, %v824_v44  ;;  %v900_v47 = vmul.f32 %v824_v44, %v824_v44  ;;  %v1277_v48 = vpop.f32.mrf.mxu1 }
 0x12d   : > { %v1383_v49 = vadd.f32 %v1382_v43, %v1352_v42  ;;  %v1318_v50 = vadd.f32 %v1317_v41, %v1277_v48  ;;  %v1353_v51 = vmul.f32 %v1277_v48, %v1277_v48 }
 0x12e   : > { %v866_v53 = vadd.f32 %v1777_v20, %v865_v46  ;;  %v931_v54 = vadd.f32 %v930_v45, %v900_v47 }
 0x12f   : > { %v1319_v56 = vadd.f32 %v1825_v24, %v1318_v50  ;;  %v1384_v57 = vadd.f32 %v1383_v49, %v1353_v51 }
 0x130   : > { %v867_v59 = vadd.f32 %v1778_v36, %v866_v53  ;;  %v932_v60 = vadd.f32 %v931_v54, %v901_v52 }
 0x131   : > { %v1320_v62 = vadd.f32 %v1826_v40, %v1319_v56  ;;  %v1385_v63 = vadd.f32 %v1384_v57, %v1354_v55 }
 0x132   : > { %v933_v0 = vadd.f32 %v932_v60, %v902_v58  ;;  %869 = vst [vmem:[%s399_s26] sm:$0xff] %v867_v59 }
 0x133   : > { %v1386_v1 = vadd.f32 %v1385_v63, %v1355_v61  ;;  %1322 = vst [vmem:[%s407_s30] sm:$0xff] %v1320_v62 }
 0x134   : > { %935 = vst [vmem:[%s403_s16] sm:$0xff] %v933_v0 }
 0x135   : > { %1388 = vst [vmem:[%s411_s18] sm:$0xff] %v1386_v1 }
 0x136 PF: > { %s20_s11 = sadd.s32 1, %s1906_s11   ;;  %s2178_s30 = smov %s1902_s10 }
 0x137   : > { %p17_p6 = scmp.ge.s32.totalorder %s20_s11, 4   ;;  %s2179_s10 = smov %s2181_s12 }
 0x139   :  { %19 = sbr.rel (!%p17_p6) target bundleno = 2 (0x2), region = 117 }

// kernel: unordered_bottleneck_forward.7
= control target key start
LH: loop header
LB: loop body
LE: loop exit
PB: predicated region body
PF: predicated region fallthrough
CT: control target
= control target key end

     0   :  { %s1603_s24 = smov 0   ;;  %s1856_s0 = inlined_call_operand.vmem [shape: bf16[512,128], index: 0, kind: input, shape index: {}]   ;;  %s1857_s1 = inlined_call_operand.vmem [shape: f32[1,128], index: 1, kind: input, shape index: {}]   ;;  %s1858_s2 = inlined_call_operand.vmem [shape: f32[1,128], index: 2, kind: input, shape index: {}]   ;;  %s1859_s3 = inlined_call_operand.vmem [shape: bf16[128,128], index: 3, kind: input, shape index: {}]   ;;  %s1860_s4 = inlined_call_operand.vmem [shape: bf16[512,128], index: 4, kind: input, shape index: {}]   ;;  %s1861_s5 = inlined_call_operand.vmem [shape: bf16[128,128], index: 5, kind: input, shape index: {}]   ;;  %s1862_s6 = inlined_call_operand.vmem [shape: f32[1,128], index: 6, kind: input, shape index: {}]   ;;  %s1863_s7 = inlined_call_operand.vmem [shape: f32[512,128], index: 7, kind: output, shape index: {}]  }
   0x1 LB: > { %s1244_s25 = sadd.s32 4294967295, %s1561_s24   ;;  %p1248_p0 = scmp.ge.s32.totalorder %s1561_s24, 1  ;;  %s1561_s24 = sphi %s1603_s24, %s17_s24  }
   0x2   : > { %p249_p1 = scmp.lt.s32.totalorder %s1561_s24, 3 }
   0x4   : > { %p250_p2 = pnand %p1248_p0, %p249_p1 }
   0x5   : > { %s1249_s28 = sshll.u32 (!%p250_p2), %s1244_s25, 5 }
   0x6   : > { %253 = sbr.rel (%p250_p2) target bundleno = 307 (0x133), region = 48  ;;  %p287_p3 = scmp.lt.s32.totalorder (!%p250_p2), %s1249_s28, 63 }
   0xb   : > { %v1523_v0 = vld [vmem:[%s1861_s5 + $0x38] sm:$0xff]   ;;  %v1525_v2 = vld [vmem:[%s1861_s5 + $0x30] sm:$0xff]   ;;  %v1527_v4 = vld [vmem:[%s1861_s5 + $0x28] sm:$0xff]   ;;  %s1865_s28 = smov (!%p287_p3, %s1249_s28), 63 }
   0xc   : > { %v1524_v1 = vld [vmem:[%s1859_s3 + $0x38] sm:$0xff]   ;;  %1419 = vmatprep.subr.bf16.mxu0 %v1523_v0  ;;  %v1526_v3 = vld [vmem:[%s1859_s3 + $0x30] sm:$0xff]   ;;  %v1528_v5 = vld [vmem:[%s1859_s3 + $0x28] sm:$0xff]   ;;  %s1250_s20 = sshll.u32 %s1865_s28, 2  ;;  %s1254_s8 = sshll.u32 %s1865_s28, 3 }
   0xd   : > { %1467 = vmatprep.subr.bf16.mxu1 %v1524_v1  ;;  %1420 = vmatpush3.bf16.msra.mxu0 %v1523_v0  ;;  %v1529_v6 = vld [vmem:[%s1861_s5 + $0x20] sm:$0xff]   ;;  %v1531_v8 = vld [vmem:[%s1861_s5 + $0x18] sm:$0xff]   ;;  %s1647_s29 = scalar_lea.vmem %s1860_s4, %s1250_s20  ;;  %s1652_s9 = scalar_lea.vmem %s1856_s0, %s1250_s20  ;;  %v1533_v10 = vld [vmem:[%s1861_s5 + $0x10] sm:$0xff]  }
   0xe   : > { %1468 = vmatpush3.bf16.msra.mxu1 %v1524_v1  ;;  %1421 = vmatprep.subr.bf16.mxu0 %v1525_v2  ;;  %v1530_v7 = vld [vmem:[%s1859_s3 + $0x20] sm:$0xff]   ;;  %v1532_v9 = vld [vmem:[%s1859_s3 + $0x18] sm:$0xff]   ;;  %v1534_v12 = vld [vmem:[%s1859_s3 + $0x10] sm:$0xff]   ;;  %s1788_s10 = scalar_lea.vmem %s1863_s7, %s1254_s8 }
   0xf   : > { %1469 = vmatprep.subr.bf16.mxu1 %v1526_v3  ;;  %v1539_v11 = vld [vmem:[%s1647_s29] sm:$0xff]   ;;  %v1356_v18 = vld [vmem:[%s1652_s9 + $0x8] sm:$0xff]   ;;  %v1357_v24 = vld [vmem:[%s1652_s9 + $0x10] sm:$0xff]  }
  0x10   : > { %v1293_v13 = vld [vmem:[%s1652_s9] sm:$0xff]   ;;  %1435 = vmatprep.mubr.bf16.mxu0 %v1539_v11  ;;  %v1535_v19 = vld [vmem:[%s1861_s5 + $0x8] sm:$0xff]   ;;  %v1298_v22 = vunpack.c.l.bf16 %v1356_v18  ;;  %v1299_v23 = vunpack.c.h.bf16 %v1356_v18  ;;  %v1302_v26 = vunpack.c.l.bf16 %v1357_v24  ;;  %v1303_v27 = vunpack.c.h.bf16 %v1357_v24  ;;  %v1358_v28 = vld [vmem:[%s1652_s9 + $0x18] sm:$0xff]  }
  0x11   : > { %1422 = vmatpush3.bf16.msra.mxu0 %v1525_v2  ;;  %v1665_v14 = vld [vmem:[%s1857_s1] ss:$0 sm:$0xff]  ;;  %v1294_v15 = vunpack.c.l.bf16 %v1293_v13  ;;  %v1295_v16 = vunpack.c.h.bf16 %v1293_v13  ;;  %v1536_v25 = vld [vmem:[%s1859_s3 + $0x8] sm:$0xff]   ;;  %v1306_v35 = vunpack.c.l.bf16 %v1358_v28  ;;  %v1307_v36 = vunpack.c.h.bf16 %v1358_v28  ;;  %v1361_v57 = vld [vmem:[%s1652_s9 + $0x30] sm:$0xff]  }
  0x12   : > { %1470 = vmatpush3.bf16.msra.mxu1 %v1526_v3  ;;  %1423 = vmatprep.subr.bf16.mxu0 %v1527_v4  ;;  %v1670_v17 = vld [vmem:[%s1858_s2] ss:$0 sm:$0xff]  ;;  %v378_v31 = vmul.f32 %v1298_v22, %v1665_v14  ;;  %v379_v32 = vmul.f32 %v1299_v23, %v1665_v14  ;;  %v380_v33 = vmul.f32 %v1302_v26, %v1665_v14  ;;  %v1360_v56 = vld [vmem:[%s1652_s9 + $0x28] sm:$0xff]   ;;  %v1541_v63 = vld [vmem:[%s1647_s29 + $0x10] sm:$0xff]   ;;  %v1318_v2 = vunpack.c.l.bf16 %v1361_v57 }
  0x13   : > { %1471 = vmatprep.subr.bf16.mxu1 %v1528_v5  ;;  %v376_v20 = vmul.f32 %v1294_v15, %v1665_v14  ;;  %v377_v21 = vmul.f32 %v1295_v16, %v1665_v14  ;;  %v381_v34 = vmul.f32 %v1303_v27, %v1665_v14  ;;  %v1359_v37 = vld [vmem:[%s1652_s9 + $0x20] sm:$0xff]   ;;  %v382_v47 = vmul.f32 %v1306_v35, %v1665_v14  ;;  %v1540_v58 = vld [vmem:[%s1647_s29 + $0x8] sm:$0xff]  }
  0x14   : > { %v1537_v38 = vld [vmem:[%s1861_s5] sm:$0xff]   ;;  %v417_v41 = vadd.f32 %v1670_v17, %v378_v31  ;;  %v418_v42 = vadd.f32 %v1670_v17, %v379_v32  ;;  %v419_v44 = vadd.f32 %v1670_v17, %v380_v33  ;;  %v383_v48 = vmul.f32 %v1307_v36, %v1665_v14  ;;  %v1364_v35 = vld [vmem:[%s1652_s9 + $0x48] sm:$0xff]  }
  0x15   : > { %1424 = vmatpush3.bf16.msra.mxu0 %v1527_v4  ;;  %v415_v29 = vadd.f32 %v1670_v17, %v376_v20  ;;  %v416_v30 = vadd.f32 %v1670_v17, %v377_v21  ;;  %v1538_v43 = vld [vmem:[%s1859_s3] sm:$0xff]   ;;  %v420_v45 = vadd.f32 %v1670_v17, %v381_v34  ;;  %v1310_v49 = vunpack.c.l.bf16 %v1359_v37 }
  0x16   : > { %1472 = vmatpush3.bf16.msra.mxu1 %v1528_v5  ;;  %1425 = vmatprep.subr.bf16.mxu0 %v1529_v6  ;;  %v449_v50 = vmax.f32 %v417_v41, 0.0  ;;  %v450_v51 = vmax.f32 %v418_v42, 0.0  ;;  %v451_v52 = vmax.f32 %v419_v44, 0.0  ;;  %v1311_v54 = vunpack.c.h.bf16 %v1359_v37  ;;  %v1363_v18 = vld [vmem:[%s1652_s9 + $0x40] sm:$0xff]   ;;  %v1544_v41 = vld [vmem:[%s1647_s29 + $0x28] sm:$0xff]  }
  0x17   : > { %1473 = vmatprep.subr.bf16.mxu1 %v1530_v7  ;;  %v447_v39 = vmax.f32 %v415_v29, 0.0  ;;  %v448_v40 = vmax.f32 %v416_v30, 0.0  ;;  %v452_v53 = vmax.f32 %v420_v45, 0.0  ;;  %v384_v55 = vmul.f32 %v1310_v49, %v1665_v14  ;;  %v1543_v22 = vld [vmem:[%s1647_s29 + $0x20] sm:$0xff]  }
  0x18   : > { %v421_v59 = vadd.f32 %v1670_v17, %v382_v47  ;;  %v422_v60 = vadd.f32 %v1670_v17, %v383_v48  ;;  %v385_v61 = vmul.f32 %v1311_v54, %v1665_v14  ;;  %v480_v62 = vpack.c.bf16 %v450_v51, %v449_v50 }
  0x19   : > { %1426 = vmatpush3.bf16.msra.mxu0 %v1529_v6  ;;  %v479_v46 = vpack.c.bf16 %v448_v40, %v447_v39  ;;  %v1314_v0 = vunpack.c.l.bf16 %v1360_v56  ;;  %v1315_v1 = vunpack.c.h.bf16 %v1360_v56  ;;  %v481_v3 = vpack.c.bf16 %v452_v53, %v451_v52  ;;  %v1365_v40 = vld [vmem:[%s1652_s9 + $0x50] sm:$0xff]  }
  0x1a   : > { %1474 = vmatpush3.bf16.msra.mxu1 %v1530_v7  ;;  %1427 = vmatprep.subr.bf16.mxu0 %v1531_v8  ;;  %v423_v4 = vadd.f32 %v1670_v17, %v384_v55  ;;  %v424_v5 = vadd.f32 %v1670_v17, %v385_v61  ;;  %v1319_v6 = vunpack.c.h.bf16 %v1361_v57  ;;  %v453_v7 = vmax.f32 %v421_v59, 0.0  ;;  %v1366_v59 = vld [vmem:[%s1652_s9 + $0x58] sm:$0xff]  }
  0x1b   : > { %1475 = vmatprep.subr.bf16.mxu1 %v1532_v9  ;;  %1483 = vmatprep.mubr.bf16.mxu1 %v479_v46  ;;  %v388_v11 = vmul.f32 %v1318_v2, %v1665_v14  ;;  %v1326_v29 = vunpack.c.l.bf16 %v1363_v18  ;;  %v1327_v30 = vunpack.c.h.bf16 %v1363_v18  ;;  %v1331_v44 = vunpack.c.h.bf16 %v1364_v35  ;;  %v1545_v46 = vld [vmem:[%s1647_s29 + $0x30] sm:$0xff]  }
  0x1c   : > { %v455_v13 = vmax.f32 %v423_v4, 0.0  ;;  %v456_v15 = vmax.f32 %v424_v5, 0.0  ;;  %v389_v16 = vmul.f32 %v1319_v6, %v1665_v14  ;;  %v1334_v48 = vunpack.c.l.bf16 %v1365_v40  ;;  %v1547_v4 = vld [vmem:[%s1647_s29 + $0x40] sm:$0xff]  }
  0x1d   : > { %1428 = vmatpush3.bf16.msra.mxu0 %v1531_v8  ;;  %v454_v8 = vmax.f32 %v422_v60, 0.0  ;;  %v393_v39 = vmul.f32 %v1327_v30, %v1665_v14  ;;  %v1335_v49 = vunpack.c.h.bf16 %v1365_v40  ;;  %v395_v54 = vmul.f32 %v1331_v44, %v1665_v14  ;;  %v1550_v44 = vld [vmem:[%s1647_s29 + $0x58] sm:$0xff]  }
  0x1e   : > { %1476 = vmatpush3.bf16.msra.mxu1 %v1532_v9  ;;  %1429 = vmatprep.subr.bf16.mxu0 %v1533_v10  ;;  %v386_v9 = vmul.f32 %v1314_v0, %v1665_v14  ;;  %v483_v27 = vpack.c.bf16 %v456_v15, %v455_v13  ;;  %v428_v28 = vadd.f32 %v1670_v17, %v389_v16  ;;  %v1338_v2 = vunpack.c.l.bf16 %v1366_v59 }
  0x1f   : > { %1477 = vmatprep.subr.bf16.mxu1 %v1534_v12  ;;  %v482_v20 = vpack.c.bf16 %v454_v8, %v453_v7  ;;  %v432_v52 = vadd.f32 %v1670_v17, %v393_v39  ;;  %v396_v57 = vmul.f32 %v1334_v48, %v1665_v14  ;;  %v1339_v7 = vunpack.c.h.bf16 %v1366_v59  ;;  %v1370_v39 = vld [vmem:[%s1652_s9 + $0x78] sm:$0xff]  }
  0x20   : > { %v425_v23 = vadd.f32 %v1670_v17, %v386_v9  ;;  %v460_v37 = vmax.f32 %v428_v28, 0.0  ;;  %v398_v13 = vmul.f32 %v1338_v2, %v1665_v14 }
  0x21   : > { %1430 = vmatpush3.bf16.msra.mxu0 %v1533_v10  ;;  %v387_v10 = vmul.f32 %v1315_v1, %v1665_v14  ;;  %v464_v61 = vmax.f32 %v432_v52, 0.0  ;;  %v434_v1 = vadd.f32 %v1670_v17, %v395_v54  ;;  %v435_v5 = vadd.f32 %v1670_v17, %v396_v57 }
  0x22   : > { %1478 = vmatpush3.bf16.msra.mxu1 %v1534_v12  ;;  %1431 = vmatprep.subr.bf16.mxu0 %v1535_v19  ;;  %v1362_v12 = vld [vmem:[%s1652_s9 + $0x38] sm:$0xff]   ;;  %v457_v32 = vmax.f32 %v425_v23, 0.0  ;;  %v399_v18 = vmul.f32 %v1339_v7, %v1665_v14  ;;  %v1548_v23 = vld [vmem:[%s1647_s29 + $0x48] sm:$0xff]   ;;  %v1781_v7 = vld [vmem:[%s1862_s6] ss:$0 sm:$0xff] }
  0x23   : > { %1479 = vmatprep.subr.bf16.mxu1 %v1536_v25  ;;  %v1322_v21 = vunpack.c.l.bf16 %v1362_v12  ;;  %v426_v24 = vadd.f32 %v1670_v17, %v387_v10  ;;  %v1323_v26 = vunpack.c.h.bf16 %v1362_v12  ;;  %v466_v12 = vmax.f32 %v434_v1, 0.0 }
  0x24   : > { %v467_v15 = vmax.f32 %v435_v5, 0.0  ;;  %v438_v28 = vadd.f32 %v1670_v17, %v399_v18 }
  0x25   : > { %1432 = vmatpush3.bf16.msra.mxu0 %v1535_v19  ;;  %v1542_v19 = vld [vmem:[%s1647_s29 + $0x18] sm:$0xff]   ;;  %v390_v31 = vmul.f32 %v1322_v21, %v1665_v14  ;;  %v458_v33 = vmax.f32 %v426_v24, 0.0  ;;  %v391_v34 = vmul.f32 %v1323_v26, %v1665_v14  ;;  %v1368_v21 = vld [vmem:[%s1652_s9 + $0x68] sm:$0xff]   ;;  %v1549_v26 = vld [vmem:[%s1647_s29 + $0x50] sm:$0xff]  }
  0x26   : > { %1480 = vmatpush3.bf16.msra.mxu1 %v1536_v25  ;;  %1433 = vmatprep.subr.bf16.mxu0 %v1537_v38  ;;  %v427_v25 = vadd.f32 %v1670_v17, %v388_v11  ;;  %v1347_v30 = vunpack.c.h.bf16 %v1368_v21 }
  0x27   : > { %1481 = vmatprep.subr.bf16.mxu1 %v1538_v43  ;;  %v429_v42 = vadd.f32 %v1670_v17, %v390_v31  ;;  %v484_v45 = vpack.c.bf16 %v458_v33, %v457_v32  ;;  %v430_v47 = vadd.f32 %v1670_v17, %v391_v34 }
  0x28   : > { %v459_v36 = vmax.f32 %v427_v25, 0.0  ;;  %v437_v25 = vadd.f32 %v1670_v17, %v398_v13 }
  0x29   : > { %1434 = vmatpush3.bf16.msra.mxu0 %v1537_v38  ;;  %v392_v38 = vmul.f32 %v1326_v29, %v1665_v14  ;;  %v461_v55 = vmax.f32 %v429_v42, 0.0  ;;  %v462_v56 = vmax.f32 %v430_v47, 0.0  ;;  %v1346_v29 = vunpack.c.l.bf16 %v1368_v21  ;;  %v1551_v47 = vld [vmem:[%s1647_s29 + $0x60] sm:$0xff]  }
  0x2a   : > { %1482 = vmatpush3.bf16.msra.mxu1 %v1538_v43  ;;  %v1330_v43 = vunpack.c.l.bf16 %v1364_v35  ;;  %v485_v50 = vpack.c.bf16 %v460_v37, %v459_v36  ;;  %v469_v35 = vmax.f32 %v437_v25, 0.0  ;;  %v470_v36 = vmax.f32 %v438_v28, 0.0 }
  0x2b   : > { %v431_v51 = vadd.f32 %v1670_v17, %v392_v38  ;;  %v402_v37 = vmul.f32 %v1346_v29, %v1665_v14  ;;  %v403_v38 = vmul.f32 %v1347_v30, %v1665_v14 }
  0x2c   : > { %1436 = vmatmul.mubr.bf16.vlgmr.msra.gmra.mxu0 %v1540_v58  ;;  %v394_v53 = vmul.f32 %v1330_v43, %v1665_v14  ;;  %v397_v58 = vmul.f32 %v1335_v49, %v1665_v14 }
  0x2d   : > { %1484 = vmatmul.mubr.bf16.vlgmr.msra.gmra.mxu1 %v480_v62  ;;  %1439 = vmatprep.mubr.bf16.mxu0 %v1541_v63  ;;  %v463_v60 = vmax.f32 %v431_v51, 0.0  ;;  %v1367_v62 = vld [vmem:[%s1652_s9 + $0x60] sm:$0xff]   ;;  %v1546_v63 = vld [vmem:[%s1647_s29 + $0x38] sm:$0xff]   ;;  %v441_v48 = vadd.f32 %v1670_v17, %v402_v37  ;;  %v442_v49 = vadd.f32 %v1670_v17, %v403_v38 }
  0x2e   : > { %1487 = vmatprep.mubr.bf16.mxu1 %v481_v3  ;;  %v433_v0 = vadd.f32 %v1670_v17, %v394_v53  ;;  %v486_v3 = vpack.c.bf16 %v462_v56, %v461_v55  ;;  %v436_v6 = vadd.f32 %v1670_v17, %v397_v58  ;;  %v1342_v9 = vunpack.c.l.bf16 %v1367_v62 }
  0x2f   : > { %v487_v8 = vpack.c.bf16 %v464_v61, %v463_v60  ;;  %v1343_v10 = vunpack.c.h.bf16 %v1367_v62  ;;  %v473_v54 = vmax.f32 %v441_v48, 0.0  ;;  %v474_v55 = vmax.f32 %v442_v49, 0.0  ;;  %v1552_v60 = vld [vmem:[%s1647_s29 + $0x68] sm:$0xff]   ;;  %v1553_v62 = vld [vmem:[%s1647_s29 + $0x70] sm:$0xff]  }
  0x30   : > { %v465_v11 = vmax.f32 %v433_v0, 0.0  ;;  %v468_v16 = vmax.f32 %v436_v6, 0.0 }
  0x31   : > { %v492_v61 = vpack.c.bf16 %v474_v55, %v473_v54 }
  0x32   : > { %v488_v24 = vpack.c.bf16 %v466_v12, %v465_v11 }
  0x34   : > { %1440 = vmatmul.mubr.bf16.gmra.mxu0 %v1542_v19  ;;  %v400_v19 = vmul.f32 %v1342_v9, %v1665_v14 }
  0x35   : > { %1488 = vmatmul.mubr.bf16.gmra.mxu1 %v482_v20  ;;  %1443 = vmatprep.mubr.bf16.mxu0 %v1543_v22  ;;  %v401_v20 = vmul.f32 %v1343_v10, %v1665_v14  ;;  %v1369_v22 = vld [vmem:[%s1652_s9 + $0x70] sm:$0xff]  }
  0x36   : > { %1491 = vmatprep.mubr.bf16.mxu1 %v483_v27  ;;  %v489_v27 = vpack.c.bf16 %v468_v16, %v467_v15  ;;  %v439_v31 = vadd.f32 %v1670_v17, %v400_v19  ;;  %v1350_v33 = vunpack.c.l.bf16 %v1369_v22  ;;  %v1351_v34 = vunpack.c.h.bf16 %v1369_v22 }
  0x37   : > { %v440_v32 = vadd.f32 %v1670_v17, %v401_v20 }
  0x38   : > { %v471_v40 = vmax.f32 %v439_v31, 0.0  ;;  %v404_v42 = vmul.f32 %v1350_v33, %v1665_v14  ;;  %v405_v43 = vmul.f32 %v1351_v34, %v1665_v14 }
  0x3a   : > { %v443_v52 = vadd.f32 %v1670_v17, %v404_v42  ;;  %v444_v53 = vadd.f32 %v1670_v17, %v405_v43 }
  0x3c   : > { %1444 = vmatmul.mubr.bf16.gmra.mxu0 %v1544_v41  ;;  %v472_v41 = vmax.f32 %v440_v32, 0.0  ;;  %v475_v58 = vmax.f32 %v443_v52, 0.0  ;;  %v476_v59 = vmax.f32 %v444_v53, 0.0 }
  0x3d   : > { %1492 = vmatmul.mubr.bf16.gmra.mxu1 %v484_v45  ;;  %1447 = vmatprep.mubr.bf16.mxu0 %v1545_v46  ;;  %v1354_v45 = vunpack.c.l.bf16 %v1370_v39  ;;  %v490_v46 = vpack.c.bf16 %v470_v36, %v469_v35 }
  0x3e   : > { %1495 = vmatprep.mubr.bf16.mxu1 %v485_v50  ;;  %v1355_v50 = vunpack.c.h.bf16 %v1370_v39  ;;  %v491_v51 = vpack.c.bf16 %v472_v41, %v471_v40  ;;  %v493_v1 = vpack.c.bf16 %v476_v59, %v475_v58 }
  0x3f   : > { %v406_v56 = vmul.f32 %v1354_v45, %v1665_v14 }
  0x40   : > { %v407_v57 = vmul.f32 %v1355_v50, %v1665_v14  ;;  %v1554_v14 = vld [vmem:[%s1647_s29 + $0x78] sm:$0xff]  }
  0x42   : > { %v446_v0 = vadd.f32 %v1670_v17, %v407_v57 }
  0x44   : > { %1448 = vmatmul.mubr.bf16.gmra.mxu0 %v1546_v63  ;;  %v445_v63 = vadd.f32 %v1670_v17, %v406_v56 }
  0x45   : > { %1496 = vmatmul.mubr.bf16.gmra.mxu1 %v486_v3  ;;  %1451 = vmatprep.mubr.bf16.mxu0 %v1547_v4  ;;  %v478_v3 = vmax.f32 %v446_v0, 0.0 }
  0x46   : > { %1499 = vmatprep.mubr.bf16.mxu1 %v487_v8  ;;  %v477_v2 = vmax.f32 %v445_v63, 0.0 }
  0x48   : > { %v494_v4 = vpack.c.bf16 %v478_v3, %v477_v2 }
  0x4c   : > { %1452 = vmatmul.mubr.bf16.gmra.mxu0 %v1548_v23 }
  0x4d   : > { %1500 = vmatmul.mubr.bf16.gmra.mxu1 %v488_v24  ;;  %1455 = vmatprep.mubr.bf16.mxu0 %v1549_v26 }
  0x4e   : > { %1503 = vmatprep.mubr.bf16.mxu1 %v489_v27 }
  0x54   : > { %1456 = vmatmul.mubr.bf16.gmra.mxu0 %v1550_v44 }
  0x55   : > { %1504 = vmatmul.mubr.bf16.gmra.mxu1 %v490_v46  ;;  %1459 = vmatprep.mubr.bf16.mxu0 %v1551_v47 }
  0x56   : > { %1507 = vmatprep.mubr.bf16.mxu1 %v491_v51 }
  0x5c   : > { %1460 = vmatmul.mubr.bf16.gmra.mxu0 %v1552_v60 }
  0x5d   : > { %1508 = vmatmul.mubr.bf16.gmra.mxu1 %v492_v61  ;;  %1463 = vmatprep.mubr.bf16.mxu0 %v1553_v62 }
  0x5e   : > { %1511 = vmatprep.mubr.bf16.mxu1 %v493_v1 }
  0x64   : > { %1464 = vmatmul.mubr.bf16.gmra.mxu0 %v1554_v14 }
  0x65   : > { %1512 = vmatmul.mubr.bf16.gmra.mxu1 %v494_v4 }
  0xec   : > { %v1437_v5 = vpop.f32.mrf.mxu0 }
  0xed   : > { %v1485_v6 = vpop.f32.mrf.mxu1 }
  0xee   : > { %v955_v17 = vadd.f32 %v1485_v6, %v1437_v5  ;;  %v737_v8 = vpop.f32.mrf.mxu0 }
  0xef   : > { %v946_v9 = vpop.f32.mrf.mxu1 }
  0xf0   : > { %v1082_v10 = vadd.f32 %v1781_v7, %v955_v17  ;;  %v947_v11 = vadd.f32 %v946_v9, %v737_v8  ;;  %v1438_v12 = vpop.f32.mrf.mxu0 }
  0xf1   : > { %v1486_v13 = vpop.f32.mrf.mxu1 }
  0xf2   : > { %v1114_v15 = vmax.f32 %v1082_v10, 0.0  ;;  %v1080_v16 = vadd.f32 %v1781_v7, %v947_v11  ;;  %v958_v18 = vadd.f32 %v1486_v13, %v1438_v12  ;;  %v740_v19 = vpop.f32.mrf.mxu0 }
  0xf3   : > { %v949_v20 = vpop.f32.mrf.mxu1 }
  0xf4   : > { %1146 = vst [vmem:[%s1788_s10 + $0x10] sm:$0xff] %v1114_v15  ;;  %v1112_v21 = vmax.f32 %v1080_v16, 0.0  ;;  %v1083_v22 = vadd.f32 %v1781_v7, %v958_v18  ;;  %v950_v23 = vadd.f32 %v949_v20, %v740_v19  ;;  %v1441_v24 = vpop.f32.mrf.mxu0 }
  0xf5   : > { %v1489_v25 = vpop.f32.mrf.mxu1 }
  0xf6   : > { %1144 = vst [vmem:[%s1788_s10] sm:$0xff] %v1112_v21  ;;  %v1115_v26 = vmax.f32 %v1083_v22, 0.0  ;;  %v1081_v27 = vadd.f32 %v1781_v7, %v950_v23  ;;  %v971_v28 = vadd.f32 %v1489_v25, %v1441_v24  ;;  %v753_v29 = vpop.f32.mrf.mxu0 }
  0xf7   : > { %v962_v30 = vpop.f32.mrf.mxu1 }
  0xf8   : > { %1147 = vst [vmem:[%s1788_s10 + $0x18] sm:$0xff] %v1115_v26  ;;  %v1113_v31 = vmax.f32 %v1081_v27, 0.0  ;;  %v1086_v32 = vadd.f32 %v1781_v7, %v971_v28  ;;  %v963_v33 = vadd.f32 %v962_v30, %v753_v29  ;;  %v1442_v34 = vpop.f32.mrf.mxu0 }
  0xf9   : > { %v1490_v35 = vpop.f32.mrf.mxu1 }
  0xfa   : > { %1145 = vst [vmem:[%s1788_s10 + $0x8] sm:$0xff] %v1113_v31  ;;  %v1118_v36 = vmax.f32 %v1086_v32, 0.0  ;;  %v1084_v37 = vadd.f32 %v1781_v7, %v963_v33  ;;  %v974_v38 = vadd.f32 %v1490_v35, %v1442_v34  ;;  %v756_v39 = vpop.f32.mrf.mxu0 }
  0xfb   : > { %v965_v40 = vpop.f32.mrf.mxu1 }
  0xfc   : > { %1150 = vst [vmem:[%s1788_s10 + $0x30] sm:$0xff] %v1118_v36  ;;  %v1116_v41 = vmax.f32 %v1084_v37, 0.0  ;;  %v1087_v42 = vadd.f32 %v1781_v7, %v974_v38  ;;  %v966_v43 = vadd.f32 %v965_v40, %v756_v39  ;;  %v1445_v44 = vpop.f32.mrf.mxu0 }
  0xfd   : > { %v1493_v45 = vpop.f32.mrf.mxu1 }
  0xfe   : > { %1148 = vst [vmem:[%s1788_s10 + $0x20] sm:$0xff] %v1116_v41  ;;  %v1119_v46 = vmax.f32 %v1087_v42, 0.0  ;;  %v1085_v47 = vadd.f32 %v1781_v7, %v966_v43  ;;  %v987_v48 = vadd.f32 %v1493_v45, %v1445_v44  ;;  %v769_v49 = vpop.f32.mrf.mxu0 }
  0xff   : > { %v978_v50 = vpop.f32.mrf.mxu1 }
 0x100   : > { %1151 = vst [vmem:[%s1788_s10 + $0x38] sm:$0xff] %v1119_v46  ;;  %v1117_v51 = vmax.f32 %v1085_v47, 0.0  ;;  %v1090_v52 = vadd.f32 %v1781_v7, %v987_v48  ;;  %v979_v53 = vadd.f32 %v978_v50, %v769_v49  ;;  %v1446_v54 = vpop.f32.mrf.mxu0 }
 0x101   : > { %v1494_v55 = vpop.f32.mrf.mxu1 }
 0x102   : > { %1149 = vst [vmem:[%s1788_s10 + $0x28] sm:$0xff] %v1117_v51  ;;  %v1122_v56 = vmax.f32 %v1090_v52, 0.0  ;;  %v1088_v57 = vadd.f32 %v1781_v7, %v979_v53  ;;  %v990_v58 = vadd.f32 %v1494_v55, %v1446_v54  ;;  %v772_v59 = vpop.f32.mrf.mxu0 }
 0x103   : > { %v981_v60 = vpop.f32.mrf.mxu1 }
 0x104   : > { %1154 = vst [vmem:[%s1788_s10 + $0x50] sm:$0xff] %v1122_v56  ;;  %v1120_v61 = vmax.f32 %v1088_v57, 0.0  ;;  %v1091_v62 = vadd.f32 %v1781_v7, %v990_v58  ;;  %v982_v63 = vadd.f32 %v981_v60, %v772_v59  ;;  %v1449_v0 = vpop.f32.mrf.mxu0 }
 0x105   : > { %v1497_v1 = vpop.f32.mrf.mxu1 }
 0x106   : > { %1152 = vst [vmem:[%s1788_s10 + $0x40] sm:$0xff] %v1120_v61  ;;  %v1123_v2 = vmax.f32 %v1091_v62, 0.0  ;;  %v1089_v3 = vadd.f32 %v1781_v7, %v982_v63  ;;  %v1003_v14 = vadd.f32 %v1497_v1, %v1449_v0  ;;  %v785_v4 = vpop.f32.mrf.mxu0 }
 0x107   : > { %v994_v5 = vpop.f32.mrf.mxu1 }
 0x108   : > { %1155 = vst [vmem:[%s1788_s10 + $0x58] sm:$0xff] %v1123_v2  ;;  %v1121_v6 = vmax.f32 %v1089_v3, 0.0  ;;  %v1094_v17 = vadd.f32 %v1781_v7, %v1003_v14  ;;  %v995_v8 = vadd.f32 %v994_v5, %v785_v4  ;;  %v1450_v9 = vpop.f32.mrf.mxu0 }
 0x109   : > { %v1498_v10 = vpop.f32.mrf.mxu1 }
 0x10a   : > { %1153 = vst [vmem:[%s1788_s10 + $0x48] sm:$0xff] %v1121_v6  ;;  %v1126_v11 = vmax.f32 %v1094_v17, 0.0  ;;  %v1092_v12 = vadd.f32 %v1781_v7, %v995_v8  ;;  %v1006_v13 = vadd.f32 %v1498_v10, %v1450_v9  ;;  %v788_v15 = vpop.f32.mrf.mxu0 }
 0x10b   : > { %v997_v16 = vpop.f32.mrf.mxu1 }
 0x10c   : > { %1158 = vst [vmem:[%s1788_s10 + $0x70] sm:$0xff] %v1126_v11  ;;  %v1124_v18 = vmax.f32 %v1092_v12, 0.0  ;;  %v1095_v19 = vadd.f32 %v1781_v7, %v1006_v13  ;;  %v998_v20 = vadd.f32 %v997_v16, %v788_v15  ;;  %v1453_v21 = vpop.f32.mrf.mxu0 }
 0x10d   : > { %v1501_v22 = vpop.f32.mrf.mxu1 }
 0x10e   : > { %1156 = vst [vmem:[%s1788_s10 + $0x60] sm:$0xff] %v1124_v18  ;;  %v1127_v23 = vmax.f32 %v1095_v19, 0.0  ;;  %v1093_v24 = vadd.f32 %v1781_v7, %v998_v20  ;;  %v1019_v25 = vadd.f32 %v1501_v22, %v1453_v21  ;;  %v801_v26 = vpop.f32.mrf.mxu0 }
 0x10f   : > { %v1010_v27 = vpop.f32.mrf.mxu1 }
 0x110   : > { %1159 = vst [vmem:[%s1788_s10 + $0x78] sm:$0xff] %v1127_v23  ;;  %v1125_v28 = vmax.f32 %v1093_v24, 0.0  ;;  %v1098_v29 = vadd.f32 %v1781_v7, %v1019_v25  ;;  %v1011_v30 = vadd.f32 %v1010_v27, %v801_v26  ;;  %v1454_v31 = vpop.f32.mrf.mxu0 }
 0x111   : > { %v1502_v32 = vpop.f32.mrf.mxu1 }
 0x112   : > { %1157 = vst [vmem:[%s1788_s10 + $0x68] sm:$0xff] %v1125_v28  ;;  %v1130_v33 = vmax.f32 %v1098_v29, 0.0  ;;  %v1096_v34 = vadd.f32 %v1781_v7, %v1011_v30  ;;  %v1022_v35 = vadd.f32 %v1502_v32, %v1454_v31  ;;  %v804_v36 = vpop.f32.mrf.mxu0 }
 0x113   : > { %v1013_v37 = vpop.f32.mrf.mxu1 }
 0x114   : > { %1162 = vst [vmem:[%s1788_s10 + $0x90] sm:$0xff] %v1130_v33  ;;  %v1128_v38 = vmax.f32 %v1096_v34, 0.0  ;;  %v1099_v39 = vadd.f32 %v1781_v7, %v1022_v35  ;;  %v1014_v40 = vadd.f32 %v1013_v37, %v804_v36  ;;  %v1457_v41 = vpop.f32.mrf.mxu0 }
 0x115   : > { %v1505_v42 = vpop.f32.mrf.mxu1 }
 0x116   : > { %1160 = vst [vmem:[%s1788_s10 + $0x80] sm:$0xff] %v1128_v38  ;;  %v1131_v43 = vmax.f32 %v1099_v39, 0.0  ;;  %v1097_v44 = vadd.f32 %v1781_v7, %v1014_v40  ;;  %v1035_v45 = vadd.f32 %v1505_v42, %v1457_v41  ;;  %v817_v46 = vpop.f32.mrf.mxu0 }
 0x117   : > { %v1026_v47 = vpop.f32.mrf.mxu1 }
 0x118   : > { %1163 = vst [vmem:[%s1788_s10 + $0x98] sm:$0xff] %v1131_v43  ;;  %v1129_v48 = vmax.f32 %v1097_v44, 0.0  ;;  %v1102_v49 = vadd.f32 %v1781_v7, %v1035_v45  ;;  %v1027_v50 = vadd.f32 %v1026_v47, %v817_v46  ;;  %v1458_v51 = vpop.f32.mrf.mxu0 }
 0x119   : > { %v1506_v52 = vpop.f32.mrf.mxu1 }
 0x11a   : > { %1161 = vst [vmem:[%s1788_s10 + $0x88] sm:$0xff] %v1129_v48  ;;  %v1134_v53 = vmax.f32 %v1102_v49, 0.0  ;;  %v1100_v54 = vadd.f32 %v1781_v7, %v1027_v50  ;;  %v1038_v55 = vadd.f32 %v1506_v52, %v1458_v51  ;;  %v820_v56 = vpop.f32.mrf.mxu0 }
 0x11b   : > { %v1029_v57 = vpop.f32.mrf.mxu1 }
 0x11c   : > { %1166 = vst [vmem:[%s1788_s10 + $0xb0] sm:$0xff] %v1134_v53  ;;  %v1132_v58 = vmax.f32 %v1100_v54, 0.0  ;;  %v1103_v59 = vadd.f32 %v1781_v7, %v1038_v55  ;;  %v1030_v60 = vadd.f32 %v1029_v57, %v820_v56  ;;  %v1461_v61 = vpop.f32.mrf.mxu0 }
 0x11d   : > { %v1509_v62 = vpop.f32.mrf.mxu1 }
 0x11e   : > { %1164 = vst [vmem:[%s1788_s10 + $0xa0] sm:$0xff] %v1132_v58  ;;  %v1135_v63 = vmax.f32 %v1103_v59, 0.0  ;;  %v1101_v0 = vadd.f32 %v1781_v7, %v1030_v60  ;;  %v1051_v1 = vadd.f32 %v1509_v62, %v1461_v61  ;;  %v833_v2 = vpop.f32.mrf.mxu0 }
 0x11f   : > { %v1042_v3 = vpop.f32.mrf.mxu1 }
 0x120   : > { %1167 = vst [vmem:[%s1788_s10 + $0xb8] sm:$0xff] %v1135_v63  ;;  %v1133_v14 = vmax.f32 %v1101_v0, 0.0  ;;  %v1106_v4 = vadd.f32 %v1781_v7, %v1051_v1  ;;  %v1043_v5 = vadd.f32 %v1042_v3, %v833_v2  ;;  %v1462_v6 = vpop.f32.mrf.mxu0 }
 0x121   : > { %v1510_v17 = vpop.f32.mrf.mxu1 }
 0x122   : > { %1165 = vst [vmem:[%s1788_s10 + $0xa8] sm:$0xff] %v1133_v14  ;;  %v1138_v8 = vmax.f32 %v1106_v4, 0.0  ;;  %v1104_v9 = vadd.f32 %v1781_v7, %v1043_v5  ;;  %v1054_v10 = vadd.f32 %v1510_v17, %v1462_v6  ;;  %v836_v11 = vpop.f32.mrf.mxu0 }
 0x123   : > { %v1045_v12 = vpop.f32.mrf.mxu1 }
 0x124   : > { %1170 = vst [vmem:[%s1788_s10 + $0xd0] sm:$0xff] %v1138_v8  ;;  %v1136_v13 = vmax.f32 %v1104_v9, 0.0  ;;  %v1107_v15 = vadd.f32 %v1781_v7, %v1054_v10  ;;  %v1046_v16 = vadd.f32 %v1045_v12, %v836_v11  ;;  %v1465_v18 = vpop.f32.mrf.mxu0 }
 0x125   : > { %v1513_v19 = vpop.f32.mrf.mxu1 }
 0x126   : > { %1168 = vst [vmem:[%s1788_s10 + $0xc0] sm:$0xff] %v1136_v13  ;;  %v1139_v20 = vmax.f32 %v1107_v15, 0.0  ;;  %v1105_v21 = vadd.f32 %v1781_v7, %v1046_v16  ;;  %v1067_v22 = vadd.f32 %v1513_v19, %v1465_v18  ;;  %v849_v23 = vpop.f32.mrf.mxu0 }
 0x127   : > { %v1058_v24 = vpop.f32.mrf.mxu1 }
 0x128   : > { %1171 = vst [vmem:[%s1788_s10 + $0xd8] sm:$0xff] %v1139_v20  ;;  %v1137_v25 = vmax.f32 %v1105_v21, 0.0  ;;  %v1110_v26 = vadd.f32 %v1781_v7, %v1067_v22  ;;  %v1059_v27 = vadd.f32 %v1058_v24, %v849_v23  ;;  %v1466_v28 = vpop.f32.mrf.mxu0 }
 0x129   : > { %v1514_v29 = vpop.f32.mrf.mxu1 }
 0x12a   : > { %1169 = vst [vmem:[%s1788_s10 + $0xc8] sm:$0xff] %v1137_v25  ;;  %v1142_v30 = vmax.f32 %v1110_v26, 0.0  ;;  %v1108_v31 = vadd.f32 %v1781_v7, %v1059_v27  ;;  %v1070_v32 = vadd.f32 %v1514_v29, %v1466_v28  ;;  %v852_v33 = vpop.f32.mrf.mxu0 }
 0x12b   : > { %v1061_v34 = vpop.f32.mrf.mxu1 }
 0x12c   : > { %1174 = vst [vmem:[%s1788_s10 + $0xf0] sm:$0xff] %v1142_v30  ;;  %v1140_v35 = vmax.f32 %v1108_v31, 0.0  ;;  %v1111_v36 = vadd.f32 %v1781_v7, %v1070_v32  ;;  %v1062_v37 = vadd.f32 %v1061_v34, %v852_v33 }
 0x12e   : > { %1172 = vst [vmem:[%s1788_s10 + $0xe0] sm:$0xff] %v1140_v35  ;;  %v1143_v38 = vmax.f32 %v1111_v36, 0.0  ;;  %v1109_v39 = vadd.f32 %v1781_v7, %v1062_v37 }
 0x130   : > { %1175 = vst [vmem:[%s1788_s10 + $0xf8] sm:$0xff] %v1143_v38  ;;  %v1141_v40 = vmax.f32 %v1109_v39, 0.0 }
 0x132   : > { %1173 = vst [vmem:[%s1788_s10 + $0xe8] sm:$0xff] %v1141_v40 }
 0x133 PF: > { %s17_s24 = sadd.s32 1, %s1561_s24  }
 0x134   : > { %p14_p4 = scmp.ge.s32.totalorder %s17_s24, 4  }
 0x136   :  { %16 = sbr.rel (!%p14_p4) target bundleno = 1 (0x1), region = 81 }

// kernel: unordered_bottleneck_forward.5
= control target key start
LH: loop header
LB: loop body
LE: loop exit
PB: predicated region body
PF: predicated region fallthrough
CT: control target
= control target key end

     0   :  { %s5980_s21 = smov 0   ;;  %s5982_s22 = smov 0   ;;  %s7516_s0 = inlined_call_operand.vmem [shape: bf16[2,16,16,128], index: 0, kind: input, shape index: {}]   ;;  %s7517_s1 = inlined_call_operand.vmem [shape: f32[1,128], index: 1, kind: input, shape index: {}]   ;;  %s7518_s2 = inlined_call_operand.vmem [shape: f32[1,128], index: 2, kind: input, shape index: {}]   ;;  %s7519_s3 = inlined_call_operand.vmem [shape: bf16[3,384,128], index: 3, kind: input, shape index: {}]   ;;  %s7520_s4 = inlined_call_operand.vmem [shape: bf16[2,16,16,128], index: 4, kind: output, shape index: {0}]   ;;  %s7521_s5 = inlined_call_operand.vmem [shape: f32[2,8,128], index: 5, kind: output, shape index: {1}]   ;;  %s7522_s6 = inlined_call_operand.vmem [shape: f32[2,8,128], index: 6, kind: output, shape index: {2}]  }
   0x1   :  { %s5984_s23 = smov 0  }
   0x2 LB: > { %s29_s24 = sadd.s32 1, %s5938_s22  ;;  %p4475_p0 = scmp.ge.s32.totalorder %s5942_s23, 1  ;;  %s5942_s23 = sphi %s5984_s23, %s17_s23   ;;  %s5938_s22 = sphi %s5982_s22, %s7588_s22   ;;  %s5934_s21 = sphi %s5980_s21, %s7587_s21  }
   0x3   : > { %p31_p1 = scmp.ge.s32.totalorder %s29_s24, 2  ;;  %p231_p2 = scmp.lt.s32.totalorder %s5942_s23, 3 }
   0x5   : > { %s7590_s24 = smov (%p31_p1, %s29_s24), 0  ;;  %p232_p3 = pnand %p4475_p0, %p231_p2 }
   0x7   : > { %235 = sbr.rel (%p232_p3) target bundleno = 590 (0x24e), region = 36 }
   0xc   : > { %v5744_v0 = vld [vmem:[%s7519_s3 + $0x138] sm:$0xff]   ;;  %v5746_v2 = vld [vmem:[%s7519_s3 + $0x130] sm:$0xff]   ;;  %p274_p4 = scmp.lt.s32.totalorder %s5934_s21, 1  ;;  %v5944_v3 = vmov 0   ;;  %v5748_v5 = vld [vmem:[%s7519_s3 + $0x128] sm:$0xff]   ;;  %vm953_vm0 = vcmask 1043456  }
   0xd   : > { %v5745_v1 = vld [vmem:[%s7519_s3 + $0xf8] sm:$0xff]   ;;  %5702 = vmatprep.subr.bf16.mxu1 %v5744_v0  ;;  %5150 = vmatprep.subr.bf16.mxu0 %v5744_v0  ;;  %308 = vst [vmem:[#allocation2 + $0xc] sm:$0xf] %v5944_v3  ;;  %309 = vst [vmem:[#allocation2 + $0x10] sm:$0xf] %v5944_v3  ;;  %v5747_v4 = vld [vmem:[%s7519_s3 + $0xf0] sm:$0xff]  }
   0xe   : > { %310 = vst [vmem:[#allocation2 + $0x14] sm:$0x1] %v5944_v3  ;;  %305 = vst [vmem:[#allocation2] sm:$0xf] %v5944_v3  ;;  %5710 = vmatpush3.bf16.msra.mxu1 %v5745_v1  ;;  %5151 = vmatpush3.bf16.msra.mxu0 %v5745_v1  ;;  %s7592_s21 = smov (!%p274_p4, %s5934_s21), 1  ;;  %v5749_v6 = vld [vmem:[%s7519_s3 + $0xe8] sm:$0xff]  }
   0xf   : > { %306 = vst [vmem:[#allocation2 + $0x4] sm:$0xf] %v5944_v3  ;;  %307 = vst [vmem:[#allocation2 + $0x8] sm:$0x1] %v5944_v3  ;;  %5703 = vmatprep.subr.bf16.mxu1 %v5746_v2  ;;  %5152 = vmatprep.subr.bf16.mxu0 %v5746_v2  ;;  %v5750_v7 = vld [vmem:[%s7519_s3 + $0x120] sm:$0xff]   ;;  %s4910_s15 = sshll.u32 %s7592_s21, 7 }
  0x10   : > { %311 = vst [vmem:[#allocation2 + $0x18] sm:$0xf] %v5944_v3  ;;  %312 = vst [vmem:[#allocation2 + $0x1c] sm:$0xf] %v5944_v3  ;;  %v5751_v8 = vld [vmem:[%s7519_s3 + $0xe0] sm:$0xff]   ;;  %v5752_v9 = vld [vmem:[%s7519_s3 + $0x118] sm:$0xff]   ;;  %s6039_s26 = scalar_lea.vmem %s7516_s0, %s4910_s15  ;;  %s7357_s9 = scalar_lea.vmem %s7520_s4, %s4910_s15 }
  0x11   : > { %313 = vst [vmem:[#allocation2 + $0x20] sm:$0x1] %v5944_v3  ;;  %314 = vst [vmem:[#allocation2 + $0x24] sm:$0xf] %v5944_v3  ;;  %v5753_v10 = vld [vmem:[%s7519_s3 + $0xd8] sm:$0xff]   ;;  %v5754_v11 = vld [vmem:[%s7519_s3 + $0x110] sm:$0xff]  }
  0x12   : > { %315 = vst [vmem:[#allocation2 + $0x28] sm:$0xf] %v5944_v3  ;;  %316 = vst [vmem:[#allocation2 + $0x2c] sm:$0x1] %v5944_v3  ;;  %5711 = vmatpush3.bf16.msra.mxu1 %v5747_v4  ;;  %5153 = vmatpush3.bf16.msra.mxu0 %v5747_v4  ;;  %v4977_v12 = vld [vmem:[%s6039_s26] sm:$0xff]   ;;  %v5755_v17 = vld [vmem:[%s7519_s3 + $0xd0] sm:$0xff]  }
  0x13   : > { %317 = vst [vmem:[#allocation2 + $0x30] sm:$0xf] %v5944_v3  ;;  %318 = vst [vmem:[#allocation2 + $0x34] sm:$0xf] %v5944_v3  ;;  %5704 = vmatprep.subr.bf16.mxu1 %v5748_v5  ;;  %5154 = vmatprep.subr.bf16.mxu0 %v5748_v5  ;;  %v6051_v13 = vld [vmem:[%s7517_s1] ss:$0 sm:$0xff]  ;;  %v4978_v14 = vunpack.c.l.bf16 %v4977_v12  ;;  %v4979_v15 = vunpack.c.h.bf16 %v4977_v12 }
  0x14   : > { %319 = vst [vmem:[#allocation2 + $0x38] sm:$0x1] %v5944_v3  ;;  %320 = vst [vmem:[#allocation2 + $0x3c] sm:$0xf] %v5944_v3  ;;  %v6056_v16 = vld [vmem:[%s7518_s2] ss:$0 sm:$0xff] }
  0x15   : > { %321 = vst [vmem:[#allocation2 + $0x40] sm:$0xf] %v5944_v3  ;;  %322 = vst [vmem:[#allocation2 + $0x44] sm:$0x1] %v5944_v3  ;;  %v430_v18 = vmul.f32 %v4978_v14, %v6051_v13  ;;  %v431_v19 = vmul.f32 %v4979_v15, %v6051_v13  ;;  %v5131_v20 = vld [vmem:[%s6039_s26 + $0x60] sm:$0xff]   ;;  %v5756_v21 = vld [vmem:[%s7519_s3 + $0x108] sm:$0xff]  }
  0x16   : > { %323 = vst [vmem:[#allocation2 + $0x48] sm:$0xf] %v5944_v3  ;;  %324 = vst [vmem:[#allocation2 + $0x4c] sm:$0xf] %v5944_v3  ;;  %5712 = vmatpush3.bf16.msra.mxu1 %v5749_v6  ;;  %5155 = vmatpush3.bf16.msra.mxu0 %v5749_v6  ;;  %vm960_vm1 = vcmask 1040384   ;;  %v5026_v22 = vunpack.c.l.bf16 %v5131_v20  ;;  %v5027_v23 = vunpack.c.h.bf16 %v5131_v20  ;;  %v5757_v28 = vld [vmem:[%s7519_s3 + $0xc8] sm:$0xff]  }
  0x17   : > { %325 = vst [vmem:[#allocation2 + $0x50] sm:$0x1] %v5944_v3  ;;  %326 = vst [vmem:[#allocation2 + $0x54] sm:$0xf] %v5944_v3  ;;  %5705 = vmatprep.subr.bf16.mxu1 %v5750_v7  ;;  %5156 = vmatprep.subr.bf16.mxu0 %v5750_v7  ;;  %v469_v24 = vadd.f32 %v6056_v16, %v430_v18  ;;  %v470_v25 = vadd.f32 %v6056_v16, %v431_v19  ;;  %vm629_vm2 = vsmask.f32 256 }
  0x18   : > { %327 = vst [vmem:[#allocation2 + $0x58] sm:$0xf] %v5944_v3  ;;  %328 = vst [vmem:[#allocation2 + $0x5c] sm:$0x1] %v5944_v3  ;;  %vm630_vm3 = vsmask.f32 4368  ;;  %v454_v26 = vmul.f32 %v5026_v22, %v6051_v13  ;;  %v455_v27 = vmul.f32 %v5027_v23, %v6051_v13 }
  0x19   : > { %329 = vst [vmem:[#allocation2 + $0x60] sm:$0xf] %v5944_v3  ;;  %330 = vst [vmem:[#allocation2 + $0x64] sm:$0xf] %v5944_v3  ;;  %v501_v29 = vmax.f32 %v469_v24, 0.0  ;;  %v502_v30 = vmax.f32 %v470_v25, 0.0 }
  0x1a   : > { %331 = vst [vmem:[#allocation2 + $0x68] sm:$0x1] %v5944_v3  ;;  %332 = vst [vmem:[#allocation2 + $0x6c] sm:$0xf] %v5944_v3  ;;  %5713 = vmatpush3.bf16.msra.mxu1 %v5751_v8  ;;  %5157 = vmatpush3.bf16.msra.mxu0 %v5751_v8  ;;  %v5120_v31 = vld [vmem:[%s6039_s26 + $0x8] sm:$0xff]   ;;  %v5758_v32 = vld [vmem:[%s7519_s3 + $0x100] sm:$0xff]   ;;  %v493_v33 = vadd.f32 %v6056_v16, %v454_v26  ;;  %v494_v34 = vadd.f32 %v6056_v16, %v455_v27 }
  0x1b   : > { %333 = vst [vmem:[#allocation2 + $0x70] sm:$0xf] %v5944_v3  ;;  %334 = vst [vmem:[#allocation2 + $0x74] sm:$0x1] %v5944_v3  ;;  %5706 = vmatprep.subr.bf16.mxu1 %v5752_v9  ;;  %5158 = vmatprep.subr.bf16.mxu0 %v5752_v9  ;;  %v4982_v35 = vunpack.c.l.bf16 %v5120_v31  ;;  %v4983_v36 = vunpack.c.h.bf16 %v5120_v31  ;;  %v5132_v37 = vld [vmem:[%s6039_s26 + $0x68] sm:$0xff]   ;;  %v5759_v38 = vld [vmem:[%s7519_s3 + $0xc0] sm:$0xff]   ;;  %v4912_v39 = vpack.c.bf16 %v501_v29, %v501_v29 }
  0x1c   : > { %335 = vst [vmem:[#allocation2 + $0x78] sm:$0xf] %v5944_v3  ;;  %336 = vst [vmem:[#allocation2 + $0x7c] sm:$0xf] %v5944_v3  ;;  %v4913_v40 = vpack.c.bf16 %v502_v30, %v502_v30  ;;  %vm954_vm4 = vsmask.f32 7938  ;;  %v5030_v41 = vunpack.c.l.bf16 %v5132_v37  ;;  %v5031_v56 = vunpack.c.h.bf16 %v5132_v37 }
  0x1d   : > { %337 = vst [vmem:[#allocation2 + $0x80] sm:$0x1] %v5944_v3  ;;  %338 = vst [vmem:[#allocation2 + $0x84] sm:$0xf] %v5944_v3  ;;  %v525_v42 = vmax.f32 %v493_v33, 0.0  ;;  %v526_v43 = vmax.f32 %v494_v34, 0.0  ;;  %v432_v46 = vmul.f32 %v4982_v35, %v6051_v13  ;;  %v433_v47 = vmul.f32 %v4983_v36, %v6051_v13 }
  0x1e   : > { %339 = vst [vmem:[#allocation2 + $0x88] sm:$0xf] %v5944_v3  ;;  %340 = vst [vmem:[#allocation2 + $0x8c] sm:$0x1] %v5944_v3  ;;  %5714 = vmatpush3.bf16.msra.mxu1 %v5753_v10  ;;  %5159 = vmatpush3.bf16.msra.mxu0 %v5753_v10  ;;  %v6087_v44 = vld [vmem:[%s7519_s3 + $0x178] sm:$0xff]   ;;  %v633_v49 = vshrl.u32 %v4912_v39, 16  ;;  %v456_v62 = vmul.f32 %v5030_v41, %v6051_v13 }
  0x1f   : > { %341 = vst [vmem:[#allocation2 + $0x90] sm:$0xf] %v5944_v3  ;;  %342 = vst [vmem:[#allocation2 + $0x94] sm:$0xf] %v5944_v3  ;;  %5707 = vmatprep.subr.bf16.mxu1 %v5754_v11  ;;  %5160 = vmatprep.subr.bf16.mxu0 %v5754_v11  ;;  %v6092_v45 = vld [vmem:[%s7519_s3 + $0xb8] sm:$0xff]   ;;  %v636_v50 = vshll.u32 %v4912_v39, 16  ;;  %v4936_v53 = vpack.c.bf16 %v525_v42, %v525_v42  ;;  %v4937_v54 = vpack.c.bf16 %v526_v43, %v526_v43 }
  0x20   : > { %343 = vst [vmem:[#allocation2 + $0x98] sm:$0x1] %v5944_v3  ;;  %344 = vst [vmem:[#allocation2 + $0x9c] sm:$0xf] %v5944_v3  ;;  %v641_v51 = vshrl.u32 %v4913_v40, 16  ;;  %v644_v52 = vshll.u32 %v4913_v40, 16  ;;  %v471_v55 = vadd.f32 %v6056_v16, %v432_v46  ;;  %v472_v61 = vadd.f32 %v6056_v16, %v433_v47 }
  0x21   : > { %345 = vst [vmem:[#allocation2 + $0xa0] sm:$0xf] %v5944_v3  ;;  %346 = vst [vmem:[#allocation2 + $0xa4] sm:$0x1] %v5944_v3  ;;  %v635_v57 = vrot.slane %v633_v49, 7  ;;  %v837_v1 = vshrl.u32 %v4936_v53, 16 }
  0x22   : > { %347 = vst [vmem:[#allocation2 + $0xa8] sm:$0xf] %v5944_v3  ;;  %348 = vst [vmem:[#allocation2 + $0xac] sm:$0xf] %v5944_v3  ;;  %5715 = vmatpush3.bf16.msra.mxu1 %v5755_v17  ;;  %5161 = vmatpush3.bf16.msra.mxu0 %v5755_v17  ;;  %v643_v58 = vrot.slane %v641_v51, 7  ;;  %v840_v2 = vshll.u32 %v4936_v53, 16 }
  0x23   : > { %349 = vst [vmem:[#allocation2 + $0xb0] sm:$0x1] %v5944_v3  ;;  %350 = vst [vmem:[#allocation2 + $0xb4] sm:$0xf] %v5944_v3  ;;  %5708 = vmatprep.subr.bf16.mxu1 %v5756_v21  ;;  %5162 = vmatprep.subr.bf16.mxu0 %v5756_v21  ;;  %v956_v60 = vld [vmem:[#allocation2 + $0xc] sm:$0xf]  ;;  %v638_v5 = vor.u32 %v636_v50, %v635_v57  ;;  %v457_v21 = vmul.f32 %v5031_v56, %v6051_v13 }
  0x24   : > { %351 = vst [vmem:[#allocation2 + $0xb8] sm:$0xf] %v5944_v3  ;;  %352 = vst [vmem:[#allocation2 + $0xbc] sm:$0x1] %v5944_v3  ;;  %v962_v0 = vld [vmem:[#allocation2 + $0x14] sm:$0x1]  ;;  %v646_v7 = vor.u32 %v644_v52, %v643_v58 }
  0x25   : > { %353 = vst [vmem:[#allocation2 + $0xc0] sm:$0xf] %v5944_v3  ;;  %354 = vst [vmem:[#allocation2 + $0xc4] sm:$0xf] %v5944_v3  ;;  %v848_v4 = vshll.u32 %v4937_v54, 16  ;;  %v639_v6 = vrot.slane %v635_v57, 4  ;;  %v496_v29 = vadd.f32 %v6056_v16, %v457_v21 }
  0x26   : > { %355 = vst [vmem:[#allocation2 + $0xc8] sm:$0x1] %v5944_v3  ;;  %356 = vst [vmem:[#allocation2 + $0xcc] sm:$0xf] %v5944_v3  ;;  %5716 = vmatpush3.bf16.msra.mxu1 %v5757_v28  ;;  %5163 = vmatpush3.bf16.msra.mxu0 %v5757_v28  ;;  %v648_v8 = vrot.slane %v643_v58, 4  ;;  %v839_v11 = vrot.slane %v837_v1, 7  ;;  %v495_v28 = vadd.f32 %v6056_v16, %v456_v62 }
  0x27   : > { %357 = vst [vmem:[#allocation2 + $0xd0] sm:$0xf] %v5944_v3  ;;  %358 = vst [vmem:[#allocation2 + $0xd4] sm:$0x1] %v5944_v3  ;;  %5709 = vmatprep.subr.bf16.mxu1 %v5758_v32  ;;  %5164 = vmatprep.subr.bf16.mxu0 %v5758_v32  ;;  %v845_v3 = vshrl.u32 %v4937_v54, 16  ;;  %v503_v14 = vmax.f32 %v471_v55, 0.0 }
  0x28   : > { %vm6098_vm5 = vmor %vm629_vm2, %vm630_vm3  ;;  %v1042_v9 = vld [vmem:[#allocation2 + $0x9c] sm:$0xf]  ;;  %v1046_v10 = vld [vmem:[#allocation2 + $0xa4] sm:$0x1]  ;;  %v504_v15 = vmax.f32 %v472_v61, 0.0  ;;  %v842_v22 = vor.u32 %v840_v2, %v839_v11  ;;  %v843_v23 = vrot.slane %v839_v11, 4 }
  0x29   : > { %vm6105_vm6 = vmand %vm953_vm0, %vm954_vm4  ;;  %v847_v12 = vrot.slane %v845_v3, 7  ;;  %v5121_v17 = vld [vmem:[%s6039_s26 + $0x10] sm:$0xff]   ;;  %v647_v18 = vsel %vm6098_vm5, %v639_v6, %v646_v7  ;;  %v4914_v26 = vpack.c.bf16 %v503_v14, %v503_v14  ;;  %v527_v39 = vmax.f32 %v495_v28, 0.0  ;;  %v6138_v43 = vld [vmem:[%s6039_s26 + $0x18] sm:$0xff]   ;;  %s4480_s15 = sshll.u32 %s7592_s21, 3 }
  0x2a   : > { %vm6113_vm7 = vmand %vm960_vm1, %vm629_vm2  ;;  %5717 = vmatpush3.bf16.msra.mxu1 %v5759_v38  ;;  %5165 = vmatpush3.bf16.msra.mxu0 %v5759_v38  ;;  %v957_v19 = vsel %vm6105_vm6, %v638_v5, %v956_v60  ;;  %959 = vst [vmem:[#allocation2 + $0x10] sm:$0xf] %v647_v18  ;;  %v4915_v27 = vpack.c.bf16 %v504_v15, %v504_v15  ;;  %v4986_v33 = vunpack.c.l.bf16 %v5121_v17  ;;  %v5133_v34 = vld [vmem:[%s6039_s26 + $0x70] sm:$0xff]   ;;  %v528_v40 = vmax.f32 %v496_v29, 0.0  ;;  %v965_v51 = vld [vmem:[#allocation2 + $0x18] sm:$0xf]  ;;  %s293_s12 = scalar_lea.vmem %s7521_s5, %s4480_s15  ;;  %s297_s16 = scalar_lea.vmem %s7522_s6, %s4480_s15 }
  0x2b   : > { %5558 = vmatprep.subr.bf16.mxu1 %v6087_v44  ;;  %5606 = vmatprep.subr.bf16.mxu0 %v6092_v45  ;;  %v963_v20 = vsel %vm6113_vm7, %v648_v8, %v962_v0  ;;  %958 = vst [vmem:[#allocation2 + $0xc] sm:$0xf] %v957_v19  ;;  %v850_v24 = vor.u32 %v848_v4, %v847_v12  ;;  %v852_v25 = vrot.slane %v847_v12, 4  ;;  %v650_v35 = vshrl.u32 %v4914_v26, 16  ;;  %v969_v52 = vld [vmem:[#allocation2 + $0x20] sm:$0x1] }
  0x2c   : > { %964 = vst [vmem:[#allocation2 + $0x14] sm:$0x1] %v963_v20  ;;  %v1043_v31 = vsel %vm6105_vm6, %v842_v22, %v1042_v9  ;;  %v653_v36 = vshll.u32 %v4914_v26, 16  ;;  %v658_v37 = vshrl.u32 %v4915_v27, 16  ;;  %v661_v38 = vshll.u32 %v4915_v27, 16 }
  0x2d   : > { %v851_v30 = vsel %vm6098_vm5, %v843_v23, %v850_v24  ;;  %v1047_v32 = vsel %vm6113_vm7, %v852_v25, %v1046_v10  ;;  %1044 = vst [vmem:[#allocation2 + $0x9c] sm:$0xf] %v1043_v31  ;;  %v4987_v41 = vunpack.c.h.bf16 %v5121_v17  ;;  %v434_v42 = vmul.f32 %v4986_v33, %v6051_v13  ;;  %v1049_v15 = vld [vmem:[#allocation2 + $0xa8] sm:$0xf] }
  0x2e   : > { %1045 = vst [vmem:[#allocation2 + $0xa0] sm:$0xf] %v851_v30  ;;  %1048 = vst [vmem:[#allocation2 + $0xa4] sm:$0x1] %v1047_v32  ;;  %vm1266_vm8 = vsmask.f32 7424  ;;  %v5034_v49 = vunpack.c.l.bf16 %v5133_v34  ;;  %v5035_v50 = vunpack.c.h.bf16 %v5133_v34  ;;  %v4938_v53 = vpack.c.bf16 %v527_v39, %v527_v39 }
  0x2f   : > { %v652_v46 = vrot.slane %v650_v35, 7  ;;  %v660_v47 = vrot.slane %v658_v37, 7  ;;  %v4939_v54 = vpack.c.bf16 %v528_v40, %v528_v40  ;;  %v435_v55 = vmul.f32 %v4987_v41, %v6051_v13  ;;  %v1053_v30 = vld [vmem:[#allocation2 + $0xb0] sm:$0x1] }
  0x30   : > { %v473_v56 = vadd.f32 %v6056_v16, %v434_v42  ;;  %v458_v60 = vmul.f32 %v5034_v49, %v6051_v13  ;;  %v459_v61 = vmul.f32 %v5035_v50, %v6051_v13  ;;  %v4990_v4 = vunpack.c.l.bf16 %v6138_v43  ;;  %v5773_v42 = vld [vmem:[%s7519_s3 + $0xb0] sm:$0xff]  }
  0x31   : > { %v655_v57 = vor.u32 %v653_v36, %v652_v46  ;;  %v663_v58 = vor.u32 %v661_v38, %v660_v47  ;;  %v656_v1 = vrot.slane %v652_v46, 4  ;;  %v665_v2 = vrot.slane %v660_v47, 4  ;;  %v5766_v49 = vld [vmem:[%s7519_s3 + $0x170] sm:$0xff]  }
  0x32   : > { %v6144_v62 = vld [vmem:[#allocation2 + $0xc] sm:$0xff]   ;;  %v474_v3 = vadd.f32 %v6056_v16, %v435_v55  ;;  %v854_v6 = vshrl.u32 %v4938_v53, 16  ;;  %v857_v7 = vshll.u32 %v4938_v53, 16  ;;  %v862_v8 = vshrl.u32 %v4939_v54, 16 }
  0x33   : > { %v6146_v0 = vld [vmem:[#allocation2 + $0x14] ss:$0 sps:$4 sm:$0x11]   ;;  %v966_v5 = vsel %vm6105_vm6, %v655_v57, %v965_v51  ;;  %v1785_v9 = vshrl.u32 %v6144_v62, 16  ;;  %v1787_v10 = vshll.u32 %v6144_v62, 16  ;;  %v664_v14 = vsel %vm6098_vm5, %v656_v1, %v663_v58 }
  0x34   : > { %v1792_v11 = vshll.u32 %v6146_v0, 16  ;;  %967 = vst [vmem:[#allocation2 + $0x18] sm:$0xf] %v966_v5  ;;  %968 = vst [vmem:[#allocation2 + $0x1c] sm:$0xf] %v664_v14  ;;  %v970_v17 = vsel %vm6113_vm7, %v665_v2, %v969_v52  ;;  %v856_v18 = vrot.slane %v854_v6, 7  ;;  %v497_v20 = vadd.f32 %v6056_v16, %v458_v60 }
  0x35   : > { %v5762_v12 = vld [vmem:[#allocation2 + $0x9c] sm:$0xff]   ;;  %v864_v19 = vrot.slane %v862_v8, 7  ;;  %v1789_v21 = vrot.slane %v1787_v10, 1  ;;  %v5763_v23 = vld [vmem:[#allocation2 + $0xa4] ss:$0 sps:$4 sm:$0x11]   ;;  %v498_v25 = vadd.f32 %v6056_v16, %v459_v61  ;;  %v4991_v57 = vunpack.c.h.bf16 %v6138_v43 }
  0x36   : > { %v1794_v22 = vrot.slane %v1792_v11, 1  ;;  %v1929_v24 = vshrl.u32 %v5762_v12, 16  ;;  %971 = vst [vmem:[#allocation2 + $0x20] sm:$0x1] %v970_v17  ;;  %v1931_v26 = vshll.u32 %v5762_v12, 16  ;;  %v859_v27 = vor.u32 %v857_v7, %v856_v18  ;;  %v5785_v43 = vld [vmem:[%s7519_s3 + $0xa8] sm:$0xff]  }
  0x37   : > { %v860_v28 = vrot.slane %v856_v18, 4  ;;  %v865_v29 = vshll.u32 %v4939_v54, 16  ;;  %v1790_v31 = vor.u32 %v1789_v21, %v1785_v9  ;;  %v1936_v32 = vshll.u32 %v5763_v23, 16  ;;  %v972_v1 = vld [vmem:[#allocation2 + $0x24] sm:$0xf]  ;;  %v5914_v48 = vld [vmem:[#allocation2 + $0x9c] sm:$0xff]  }
  0x38   : > { %v869_v33 = vrot.slane %v864_v19, 4  ;;  %v505_v34 = vmax.f32 %v473_v56, 0.0  ;;  %v1933_v35 = vrot.slane %v1931_v26, 1  ;;  %v1050_v37 = vsel %vm6105_vm6, %v859_v27, %v1049_v15  ;;  %v976_v10 = vld [vmem:[#allocation2 + $0x2c] sm:$0x1] }
  0x39   : > { %v867_v36 = vor.u32 %v865_v29, %v864_v19  ;;  %v506_v38 = vmax.f32 %v474_v3, 0.0  ;;  %v1795_v39 = vsel %vm1266_vm8, %v1790_v31, %v1794_v22  ;;  %v1938_v40 = vrot.slane %v1936_v32, 1  ;;  %1051 = vst [vmem:[#allocation2 + $0xa8] sm:$0xf] %v1050_v37  ;;  %v1056_v19 = vld [vmem:[#allocation2 + $0xb4] sm:$0xf] }
  0x3a   : > { %v1054_v41 = vsel %vm6113_vm7, %v869_v33, %v1053_v30  ;;  %v4916_v46 = vpack.c.bf16 %v505_v34, %v505_v34  ;;  %2281 = vmatprep.mubr.bf16.mxu0 %v1795_v39  ;;  %v1934_v47 = vor.u32 %v1933_v35, %v1929_v24  ;;  %v529_v52 = vmax.f32 %v497_v20, 0.0  ;;  %v1060_v34 = vld [vmem:[#allocation2 + $0xbc] sm:$0x1]  ;;  %v5791_v39 = vld [vmem:[%s7519_s3 + $0xa0] sm:$0xff]  }
  0x3b   : > { %v868_v50 = vsel %vm6098_vm5, %v860_v28, %v867_v36  ;;  %1055 = vst [vmem:[#allocation2 + $0xb0] sm:$0x1] %v1054_v41  ;;  %v4917_v51 = vpack.c.bf16 %v506_v38, %v506_v38  ;;  %2282 = vmatmul.mubr.bf16.vlgmr.msra.gmra.mxu0 %v6144_v62  ;;  %v6175_v53 = vld [vmem:[#allocation2 + $0x18] sm:$0xff]   ;;  %v530_v56 = vmax.f32 %v498_v25, 0.0  ;;  %v436_v3 = vmul.f32 %v4990_v4, %v6051_v13 }
  0x3c   : > { %1052 = vst [vmem:[#allocation2 + $0xac] sm:$0xf] %v868_v50  ;;  %v667_v54 = vshrl.u32 %v4916_v46, 16  ;;  %v670_v55 = vshll.u32 %v4916_v46, 16  ;;  %v1939_v58 = vsel %vm1266_vm8, %v1934_v47, %v1938_v40  ;;  %5607 = vmatpush3.bf16.msra.mxu0 %v6092_v45  ;;  %v4940_v2 = vpack.c.bf16 %v529_v52, %v529_v52  ;;  %v5134_v28 = vld [vmem:[%s6039_s26 + $0x78] sm:$0xff]  }
  0x3d   : > { %v6180_v60 = vld [vmem:[#allocation2 + $0x20] ss:$0 sps:$4 sm:$0x11]   ;;  %v675_v61 = vshrl.u32 %v4917_v51, 16  ;;  %2377 = vmatprep.mubr.bf16.mxu1 %v1939_v58  ;;  %v1797_v5 = vshrl.u32 %v6175_v53, 16  ;;  %v1799_v6 = vshll.u32 %v6175_v53, 16  ;;  %5608 = vmatprep.subr.bf16.mxu0 %v5773_v42  ;;  %v4941_v11 = vpack.c.bf16 %v530_v56, %v530_v56 }
  0x3e   : > { %v669_v7 = vrot.slane %v667_v54, 7  ;;  %v678_v8 = vshll.u32 %v4917_v51, 16  ;;  %2378 = vmatmul.mubr.bf16.vlgmr.msra.gmra.mxu1 %v5762_v12  ;;  %v1804_v45 = vshll.u32 %v6180_v60, 16  ;;  %v871_v14 = vshrl.u32 %v4940_v2, 16  ;;  %v5771_v12 = vld [vmem:[%s7519_s3 + $0x168] sm:$0xff]  }
  0x3f   : > { %v677_v9 = vrot.slane %v675_v61, 7  ;;  %5559 = vmatpush3.bf16.msra.mxu1 %v6087_v44  ;;  %v1801_v4 = vrot.slane %v1799_v6, 1  ;;  %v874_v18 = vshll.u32 %v4940_v2, 16  ;;  %v879_v26 = vshrl.u32 %v4941_v11, 16  ;;  %v5778_v6 = vld [vmem:[%s7519_s3 + $0x158] sm:$0xff]  }
  0x40   : > { %v672_v15 = vor.u32 %v670_v55, %v669_v7  ;;  %v673_v17 = vrot.slane %v669_v7, 4  ;;  %5560 = vmatprep.subr.bf16.mxu1 %v5766_v49  ;;  %v1806_v20 = vrot.slane %v1804_v45, 1  ;;  %5609 = vmatpush3.bf16.msra.mxu0 %v5773_v42  ;;  %v873_v23 = vrot.slane %v871_v14, 7  ;;  %v5772_v42 = vld [vmem:[%s7519_s3 + $0x160] sm:$0xff]   ;;  %v5800_v14 = vld [vmem:[%s7519_s3 + $0x98] sm:$0xff]  }
  0x41   : > { %v680_v21 = vor.u32 %v678_v8, %v677_v9  ;;  %v682_v22 = vrot.slane %v677_v9, 4  ;;  %v1802_v24 = vor.u32 %v1801_v4, %v1797_v5  ;;  %v437_v27 = vmul.f32 %v4991_v57, %v6051_v13  ;;  %5610 = vmatprep.subr.bf16.mxu0 %v5785_v43  ;;  %v5915_v63 = vld [vmem:[#allocation2 + $0xa4] ss:$0 sps:$4 sm:$0x11]  }
  0x42   : > { %v5770_v25 = vld [vmem:[#allocation2 + $0xb0] ss:$0 sps:$4 sm:$0x11]   ;;  %v973_v44 = vsel %vm6105_vm6, %v672_v15, %v972_v1  ;;  %v876_v32 = vor.u32 %v874_v18, %v873_v23  ;;  %v877_v33 = vrot.slane %v873_v23, 4  ;;  %v881_v37 = vrot.slane %v879_v26, 7 }
  0x43   : > { %v6197_v29 = vld [vmem:[#allocation2 + $0xa8] sm:$0xff]   ;;  %v681_v30 = vsel %vm6098_vm5, %v673_v17, %v680_v21  ;;  %974 = vst [vmem:[#allocation2 + $0x24] sm:$0xf] %v973_v44  ;;  %v977_v31 = vsel %vm6113_vm7, %v682_v22, %v976_v10  ;;  %5561 = vmatpush3.bf16.msra.mxu1 %v5766_v49  ;;  %v1807_v35 = vsel %vm1266_vm8, %v1802_v24, %v1806_v20  ;;  %v1948_v36 = vshll.u32 %v5770_v25, 16  ;;  %v5123_v49 = vld [vmem:[%s6039_s26 + $0x20] sm:$0xff]   ;;  %v5779_v17 = vld [vmem:[%s7519_s3 + $0x150] sm:$0xff]  }
  0x44   : > { %975 = vst [vmem:[#allocation2 + $0x28] sm:$0xf] %v681_v30  ;;  %978 = vst [vmem:[#allocation2 + $0x2c] sm:$0x1] %v977_v31  ;;  %v882_v38 = vshll.u32 %v4941_v11, 16  ;;  %2289 = vmatprep.mubr.bf16.mxu0 %v1807_v35  ;;  %v1941_v40 = vshrl.u32 %v6197_v29, 16  ;;  %5562 = vmatprep.subr.bf16.mxu1 %v5771_v12  ;;  %v1057_v46 = vsel %vm6105_vm6, %v876_v32, %v1056_v19  ;;  %v5038_v57 = vunpack.c.l.bf16 %v5134_v28 }
  0x45   : > { %v1943_v41 = vshll.u32 %v6197_v29, 16  ;;  %v475_v47 = vadd.f32 %v6056_v16, %v436_v3  ;;  %v1950_v50 = vrot.slane %v1948_v36, 1  ;;  %2290 = vmatmul.mubr.bf16.gmra.mxu0 %v6175_v53  ;;  %v886_v52 = vrot.slane %v881_v37, 4  ;;  %1058 = vst [vmem:[#allocation2 + $0xb4] sm:$0xf] %v1057_v46 }
  0x46   : > { %v884_v51 = vor.u32 %v882_v38, %v881_v37  ;;  %v476_v54 = vadd.f32 %v6056_v16, %v437_v27  ;;  %v5039_v58 = vunpack.c.h.bf16 %v5134_v28  ;;  %5611 = vmatpush3.bf16.msra.mxu0 %v5785_v43  ;;  %v4994_v3 = vunpack.c.l.bf16 %v5123_v49  ;;  %v979_v24 = vld [vmem:[#allocation2 + $0x30] sm:$0xf]  ;;  %v983_v32 = vld [vmem:[#allocation2 + $0x38] sm:$0x1]  ;;  %v5784_v38 = vld [vmem:[%s7519_s3 + $0x148] sm:$0xff]  }
  0x47   : > { %v1945_v55 = vrot.slane %v1943_v41, 1  ;;  %v507_v56 = vmax.f32 %v475_v47, 0.0  ;;  %5563 = vmatpush3.bf16.msra.mxu1 %v5771_v12  ;;  %v1061_v1 = vsel %vm6113_vm7, %v886_v52, %v1060_v34  ;;  %5612 = vmatprep.subr.bf16.mxu0 %v5791_v39  ;;  %v460_v8 = vmul.f32 %v5038_v57, %v6051_v13 }
  0x48   : > { %v885_v61 = vsel %vm6098_vm5, %v877_v33, %v884_v51  ;;  %v508_v2 = vmax.f32 %v476_v54, 0.0  ;;  %5564 = vmatprep.subr.bf16.mxu1 %v5772_v42  ;;  %1062 = vst [vmem:[#allocation2 + $0xbc] sm:$0x1] %v1061_v1  ;;  %v461_v43 = vmul.f32 %v5039_v58, %v6051_v13  ;;  %v4995_v9 = vunpack.c.h.bf16 %v5123_v49  ;;  %v5805_v54 = vld [vmem:[%s7519_s3 + $0x90] sm:$0xff]  }
  0x49   : > { %v1946_v5 = vor.u32 %v1945_v55, %v1941_v40  ;;  %1059 = vst [vmem:[#allocation2 + $0xb8] sm:$0xf] %v885_v61  ;;  %v4918_v7 = vpack.c.bf16 %v507_v56, %v507_v56  ;;  %v438_v10 = vmul.f32 %v4994_v3, %v6051_v13  ;;  %v1992_v11 = vrot.slane %v6144_v62, 1 }
  0x4a   : > { %v4919_v45 = vpack.c.bf16 %v508_v2, %v508_v2  ;;  %v499_v19 = vadd.f32 %v6056_v16, %v460_v8  ;;  %v500_v20 = vadd.f32 %v6056_v16, %v461_v43  ;;  %5613 = vmatpush3.bf16.msra.mxu0 %v5791_v39  ;;  %v439_v25 = vmul.f32 %v4995_v9, %v6051_v13  ;;  %v1063_v8 = vld [vmem:[#allocation2 + $0xc0] sm:$0xf] }
  0x4b   : > { %v1951_v4 = vsel %vm1266_vm8, %v1946_v5, %v1950_v50  ;;  %v6233_v15 = vld [vmem:[#allocation2 + $0x24] sm:$0xff]   ;;  %v684_v18 = vshrl.u32 %v4918_v7, 16  ;;  %5565 = vmatpush3.bf16.msra.mxu1 %v5772_v42  ;;  %v6240_v12 = vld [vmem:[#allocation2 + $0x2c] ss:$0 sps:$4 sm:$0x11]   ;;  %v687_v21 = vshll.u32 %v4918_v7, 16  ;;  %v477_v34 = vadd.f32 %v6056_v16, %v438_v10  ;;  %5614 = vmatprep.subr.bf16.mxu0 %v5800_v14 }
  0x4c   : > { %2385 = vmatprep.mubr.bf16.mxu1 %v1951_v4  ;;  %v692_v22 = vshrl.u32 %v4919_v45, 16  ;;  %v695_v23 = vshll.u32 %v4919_v45, 16  ;;  %v1809_v44 = vshrl.u32 %v6233_v15, 16  ;;  %v1811_v26 = vshll.u32 %v6233_v15, 16  ;;  %5566 = vmatprep.subr.bf16.mxu1 %v5778_v6 }
  0x4d   : > { %2386 = vmatmul.mubr.bf16.gmra.mxu1 %v6197_v29  ;;  %v686_v27 = vrot.slane %v684_v18, 7  ;;  %v531_v28 = vmax.f32 %v499_v19, 0.0  ;;  %v1816_v30 = vshll.u32 %v6240_v12, 16  ;;  %v532_v33 = vmax.f32 %v500_v20, 0.0 }
  0x4e   : > { %v694_v31 = vrot.slane %v692_v22, 7  ;;  %vm1475_vm9 = vcmask 1046528   ;;  %v1813_v35 = vrot.slane %v1811_v26, 1  ;;  %5615 = vmatpush3.bf16.msra.mxu0 %v5800_v14  ;;  %v478_v46 = vadd.f32 %v6056_v16, %v439_v25  ;;  %v5786_v14 = vld [vmem:[%s7519_s3 + $0x140] sm:$0xff]   ;;  %v1067_v22 = vld [vmem:[#allocation2 + $0xc8] sm:$0x1] }
  0x4f   : > { %v689_v36 = vor.u32 %v687_v21, %v686_v27  ;;  %v690_v37 = vrot.slane %v686_v27, 4  ;;  %v4942_v29 = vpack.c.bf16 %v531_v28, %v531_v28  ;;  %v1818_v39 = vrot.slane %v1816_v30, 1  ;;  %5567 = vmatpush3.bf16.msra.mxu1 %v5778_v6  ;;  %v5777_v49 = vld [vmem:[#allocation2 + $0xbc] ss:$0 sps:$4 sm:$0x11]   ;;  %5616 = vmatprep.subr.bf16.mxu0 %v5805_v54  ;;  %v5124_v30 = vld [vmem:[%s6039_s26 + $0x28] sm:$0xff]  }
  0x50   : > { %v6251_v40 = vld [vmem:[#allocation2 + $0xb4] sm:$0xff]   ;;  %v697_v41 = vor.u32 %v695_v23, %v694_v31  ;;  %v4943_v42 = vpack.c.bf16 %v532_v33, %v532_v33  ;;  %v1814_v47 = vor.u32 %v1813_v35, %v1809_v44  ;;  %5568 = vmatprep.subr.bf16.mxu1 %v5779_v17  ;;  %v699_v50 = vrot.slane %v694_v31, 4 }
  0x51   : > { %v980_v51 = vsel %vm6105_vm6, %v689_v36, %v979_v24  ;;  %v888_v52 = vshrl.u32 %v4942_v29, 16  ;;  %v1953_v55 = vshrl.u32 %v6251_v40, 16  ;;  %v1955_v56 = vshll.u32 %v6251_v40, 16  ;;  %v6278_v31 = vld [vmem:[%s6039_s26 + $0x30] sm:$0xff]  }
  0x52   : > { %v698_v57 = vsel %vm6098_vm5, %v690_v37, %v697_v41  ;;  %981 = vst [vmem:[#allocation2 + $0x30] sm:$0xf] %v980_v51  ;;  %v891_v58 = vshll.u32 %v4942_v29, 16  ;;  %v1819_v61 = vsel %vm1266_vm8, %v1814_v47, %v1818_v39  ;;  %v1960_v1 = vshll.u32 %v5777_v49, 16  ;;  %5617 = vmatpush3.bf16.msra.mxu0 %v5805_v54 }
  0x53   : > { %982 = vst [vmem:[#allocation2 + $0x34] sm:$0xf] %v698_v57  ;;  %v984_v2 = vsel %vm6113_vm7, %v699_v50, %v983_v32  ;;  %v890_v3 = vrot.slane %v888_v52, 7  ;;  %2297 = vmatprep.mubr.bf16.mxu0 %v1819_v61  ;;  %v1957_v5 = vrot.slane %v1955_v56, 1  ;;  %5569 = vmatpush3.bf16.msra.mxu1 %v5779_v17  ;;  %v896_v6 = vshrl.u32 %v4943_v42, 16 }
  0x54   : > { %985 = vst [vmem:[#allocation2 + $0x38] sm:$0x1] %v984_v2  ;;  %v899_v7 = vshll.u32 %v4943_v42, 16  ;;  %v509_v43 = vmax.f32 %v477_v34, 0.0  ;;  %v1962_v45 = vrot.slane %v1960_v1, 1  ;;  %2298 = vmatmul.mubr.bf16.gmra.mxu0 %v6233_v15  ;;  %5570 = vmatprep.subr.bf16.mxu1 %v5784_v38  ;;  %v510_v4 = vmax.f32 %v478_v46, 0.0 }
  0x55   : > { %v893_v9 = vor.u32 %v891_v58, %v890_v3  ;;  %v894_v10 = vrot.slane %v890_v3, 4  ;;  %v1958_v18 = vor.u32 %v1957_v5, %v1953_v55  ;;  %v898_v19 = vrot.slane %v896_v6, 7  ;;  %v986_v34 = vld [vmem:[#allocation2 + $0x3c] sm:$0xf]  ;;  %v990_v50 = vld [vmem:[#allocation2 + $0x44] sm:$0x1] }
  0x56   : > { %v4920_v17 = vpack.c.bf16 %v509_v43, %v509_v43  ;;  %v1993_v20 = vrot.slane %v6146_v0, 1  ;;  %v4921_v23 = vpack.c.bf16 %v510_v4, %v510_v4  ;;  %v1995_v24 = vrot.slane %v6175_v53, 1  ;;  %v5126_v6 = vld [vmem:[%s6039_s26 + $0x38] sm:$0xff]  }
  0x57   : > { %v1064_v21 = vsel %vm6105_vm6, %v893_v9, %v1063_v8  ;;  %v1996_v25 = vrot.slane %v6180_v60, 1  ;;  %v1963_v44 = vsel %vm1266_vm8, %v1958_v18, %v1962_v45  ;;  %v901_v26 = vor.u32 %v899_v7, %v898_v19  ;;  %5571 = vmatpush3.bf16.msra.mxu1 %v5784_v38  ;;  %v5789_v60 = vld [vmem:[%s7519_s3 + $0x78] sm:$0xff]   ;;  %v5818_v7 = vld [vmem:[%s7519_s3 + $0x88] sm:$0xff]  }
  0x58   : > { %v903_v27 = vrot.slane %v898_v19, 4  ;;  %1065 = vst [vmem:[#allocation2 + $0xc0] sm:$0xf] %v1064_v21  ;;  %v701_v28 = vshrl.u32 %v4920_v17, 16  ;;  %2393 = vmatprep.mubr.bf16.mxu1 %v1963_v44  ;;  %5572 = vmatprep.subr.bf16.mxu1 %v5786_v14  ;;  %v704_v0 = vshll.u32 %v4920_v17, 16  ;;  %v709_v32 = vshrl.u32 %v4921_v23, 16 }
  0x59   : > { %v712_v33 = vshll.u32 %v4921_v23, 16  ;;  %v6283_v53 = vsel %vm1475_vm9, %v1992_v11, %v1993_v20  ;;  %2394 = vmatmul.mubr.bf16.gmra.mxu1 %v6251_v40  ;;  %v902_v36 = vsel %vm6098_vm5, %v894_v10, %v901_v26  ;;  %v6294_v38 = vsel %vm1475_vm9, %v1995_v24, %v1996_v25  ;;  %5618 = vmatprep.subr.bf16.mxu0 %v5818_v7  ;;  %v6335_v24 = vld [vmem:[%s7518_s2] ss:$0 sm:$0xff] }
  0x5a   : > { %v5780_v35 = vld [vmem:[#allocation2 + $0x30] sm:$0xff]   ;;  %v1068_v37 = vsel %vm6113_vm7, %v903_v27, %v1067_v22  ;;  %v703_v29 = vrot.slane %v701_v28, 7  ;;  %1066 = vst [vmem:[#allocation2 + $0xc4] sm:$0xf] %v902_v36  ;;  %v711_v11 = vrot.slane %v709_v32, 7  ;;  %v4998_v39 = vunpack.c.l.bf16 %v5124_v30  ;;  %5619 = vmatpush3.bf16.msra.mxu0 %v5818_v7  ;;  %v6339_v44 = vld [vmem:[%s6039_s26 + $0x40] sm:$0xff]  }
  0x5b   : > { %v5781_v62 = vld [vmem:[#allocation2 + $0x38] ss:$0 sps:$4 sm:$0x11]   ;;  %1069 = vst [vmem:[#allocation2 + $0xc8] sm:$0x1] %v1068_v37  ;;  %v4999_v41 = vunpack.c.h.bf16 %v5124_v30  ;;  %v5002_v42 = vunpack.c.l.bf16 %v6278_v31  ;;  %v1821_v40 = vshrl.u32 %v5780_v35, 16  ;;  %5573 = vmatpush3.bf16.msra.mxu1 %v5786_v14  ;;  %v5003_v14 = vunpack.c.h.bf16 %v6278_v31 }
  0x5c   : > { %v1823_v46 = vshll.u32 %v5780_v35, 16  ;;  %v706_v47 = vor.u32 %v704_v0, %v703_v29  ;;  %v707_v49 = vrot.slane %v703_v29, 4  ;;  %v1828_v51 = vshll.u32 %v5781_v62, 16  ;;  %5286 = vmatprep.subr.bf16.mxu1 %v5789_v60 }
  0x5d   : > { %v714_v52 = vor.u32 %v712_v33, %v711_v11  ;;  %v716_v54 = vrot.slane %v711_v11, 4  ;;  %v440_v55 = vmul.f32 %v4998_v39, %v6051_v13  ;;  %v441_v58 = vmul.f32 %v4999_v41, %v6051_v13  ;;  %v993_v11 = vld [vmem:[#allocation2 + $0x48] sm:$0xf] }
  0x5e   : > { %v1825_v56 = vrot.slane %v1823_v46, 1  ;;  %v987_v57 = vsel %vm6105_vm6, %v706_v47, %v986_v34  ;;  %v1998_v61 = vrot.slane %v6233_v15, 1  ;;  %v1830_v1 = vrot.slane %v1828_v51, 1 }
  0x5f   : > { %v715_v2 = vsel %vm6098_vm5, %v707_v49, %v714_v52  ;;  %988 = vst [vmem:[#allocation2 + $0x3c] sm:$0xf] %v987_v57  ;;  %v991_v3 = vsel %vm6113_vm7, %v716_v54, %v990_v50  ;;  %v479_v5 = vadd.f32 %v6056_v16, %v440_v55  ;;  %v480_v15 = vadd.f32 %v6056_v16, %v441_v58  ;;  %v997_v49 = vld [vmem:[#allocation2 + $0x50] sm:$0x1] }
  0x60   : > { %v1826_v8 = vor.u32 %v1825_v56, %v1821_v40  ;;  %989 = vst [vmem:[#allocation2 + $0x40] sm:$0xf] %v715_v2  ;;  %992 = vst [vmem:[#allocation2 + $0x44] sm:$0x1] %v991_v3  ;;  %v1999_v43 = vrot.slane %v6240_v12, 1  ;;  %v2001_v45 = vrot.slane %v5780_v35, 1  ;;  %v442_v4 = vmul.f32 %v5002_v42, %v6051_v13 }
  0x61   : > { %v511_v9 = vmax.f32 %v479_v5, 0.0  ;;  %v2002_v10 = vrot.slane %v5781_v62, 1  ;;  %v6316_v19 = vld [vmem:[#allocation2 + $0xc0] sm:$0xff]   ;;  %v512_v17 = vmax.f32 %v480_v15, 0.0  ;;  %v5006_v16 = vunpack.c.l.bf16 %v5126_v6 }
  0x62   : > { %v1831_v18 = vsel %vm1266_vm8, %v1826_v8, %v1830_v1  ;;  %v6319_v20 = vsel %vm1475_vm9, %v1998_v61, %v1999_v43  ;;  %v6321_v12 = vld [vmem:[#allocation2 + $0xc8] ss:$0 sps:$4 sm:$0x11]   ;;  %v6329_v13 = vld [vmem:[%s7517_s1] ss:$0 sm:$0xff]  ;;  %v481_v25 = vadd.f32 %v6335_v24, %v442_v4  ;;  %v1965_v26 = vshrl.u32 %v6316_v19, 16 }
  0x63   : > { %2305 = vmatprep.mubr.bf16.mxu0 %v1831_v18  ;;  %v4922_v21 = vpack.c.bf16 %v511_v9, %v511_v9  ;;  %v6324_v22 = vsel %vm1475_vm9, %v2001_v45, %v2002_v10  ;;  %v443_v23 = vmul.f32 %v6329_v13, %v5003_v14  ;;  %v1967_v27 = vshll.u32 %v6316_v19, 16  ;;  %v5821_v56 = vld [vmem:[%s7519_s3 + $0x80] sm:$0xff]   ;;  %v1000_v4 = vld [vmem:[#allocation2 + $0x54] sm:$0xf] }
  0x64   : > { %2306 = vmatmul.mubr.bf16.gmra.mxu0 %v5780_v35  ;;  %v4923_v28 = vpack.c.bf16 %v512_v17, %v512_v17  ;;  %v5007_v30 = vunpack.c.h.bf16 %v5126_v6  ;;  %v1972_v31 = vshll.u32 %v6321_v12, 16  ;;  %v513_v37 = vmax.f32 %v481_v25, 0.0  ;;  %5620 = vmatprep.subr.bf16.mxu0 %v5821_v56 }
  0x65   : > { %v718_v0 = vshrl.u32 %v4922_v21, 16  ;;  %v721_v32 = vshll.u32 %v4922_v21, 16  ;;  %v482_v33 = vadd.f32 %v6335_v24, %v443_v23  ;;  %v1969_v34 = vrot.slane %v1967_v27, 1  ;;  %5621 = vmatpush3.bf16.msra.mxu0 %v5821_v56 }
  0x66   : > { %v726_v60 = vshrl.u32 %v4923_v28, 16  ;;  %v729_v36 = vshll.u32 %v4923_v28, 16  ;;  %v1974_v29 = vrot.slane %v1972_v31, 1  ;;  %v444_v39 = vmul.f32 %v6329_v13, %v5006_v16 }
  0x67   : > { %v5787_v62 = vld [vmem:[#allocation2 + $0x3c] sm:$0xff]   ;;  %v445_v41 = vmul.f32 %v6329_v13, %v5007_v30  ;;  %v5010_v35 = vunpack.c.l.bf16 %v6339_v44  ;;  %v1970_v42 = vor.u32 %v1969_v34, %v1965_v26  ;;  %v5788_v40 = vld [vmem:[#allocation2 + $0x44] ss:$0 sps:$4 sm:$0x11]   ;;  %v720_v46 = vrot.slane %v718_v0, 7  ;;  %v5128_v30 = vld [vmem:[%s6039_s26 + $0x48] sm:$0xff]  }
  0x68   : > { %v728_v47 = vrot.slane %v726_v60, 7  ;;  %v514_v50 = vmax.f32 %v482_v33, 0.0  ;;  %v1833_v51 = vshrl.u32 %v5787_v62, 16  ;;  %v1835_v52 = vshll.u32 %v5787_v62, 16  ;;  %v1004_v26 = vld [vmem:[#allocation2 + $0x5c] sm:$0x1] }
  0x69   : > { %v4924_v54 = vpack.c.bf16 %v513_v37, %v513_v37  ;;  %v2004_v55 = vrot.slane %v5787_v62, 1  ;;  %v1975_v57 = vsel %vm1266_vm8, %v1970_v42, %v1974_v29  ;;  %v1840_v58 = vshll.u32 %v5788_v40, 16  ;;  %v5794_v34 = vld [vmem:[%s7519_s3 + $0x70] sm:$0xff]  }
  0x6a   : > { %v723_v61 = vor.u32 %v721_v32, %v720_v46  ;;  %v724_v1 = vrot.slane %v720_v46, 4  ;;  %2401 = vmatprep.mubr.bf16.mxu1 %v1975_v57  ;;  %v1837_v2 = vrot.slane %v1835_v52, 1  ;;  %v731_v3 = vor.u32 %v729_v36, %v728_v47 }
  0x6b   : > { %v733_v5 = vrot.slane %v728_v47, 4  ;;  %v4925_v6 = vpack.c.bf16 %v514_v50, %v514_v50  ;;  %2402 = vmatmul.mubr.bf16.gmra.mxu1 %v6316_v19  ;;  %v1842_v7 = vrot.slane %v1840_v58, 1  ;;  %v735_v15 = vshrl.u32 %v4924_v54, 16  ;;  %v5798_v50 = vld [vmem:[%s7519_s3 + $0x68] sm:$0xff]   ;;  %v1007_v58 = vld [vmem:[#allocation2 + $0x60] sm:$0xf] }
  0x6c   : > { %v994_v8 = vsel %vm6105_vm6, %v723_v61, %v993_v11  ;;  %v738_v43 = vshll.u32 %v4924_v54, 16  ;;  %v1838_v45 = vor.u32 %v1837_v2, %v1833_v51  ;;  %5574 = vmatprep.mubr.bf16.mxu1 %v6283_v53  ;;  %v732_v9 = vsel %vm6098_vm5, %v724_v1, %v731_v3  ;;  %v5790_v53 = vld [vmem:[%s7519_s3 + $0x38] sm:$0xff]   ;;  %v6376_v11 = vld [vmem:[%s6039_s26 + $0x50] sm:$0xff]  }
  0x6d   : > { %995 = vst [vmem:[#allocation2 + $0x48] sm:$0xf] %v994_v8  ;;  %v998_v10 = vsel %vm6113_vm7, %v733_v5, %v997_v49  ;;  %v743_v14 = vshrl.u32 %v4925_v6, 16  ;;  %996 = vst [vmem:[#allocation2 + $0x4c] sm:$0xf] %v732_v9  ;;  %v737_v18 = vrot.slane %v735_v15, 7  ;;  %v483_v21 = vadd.f32 %v6335_v24, %v444_v39 }
  0x6e   : > { %999 = vst [vmem:[#allocation2 + $0x50] sm:$0x1] %v998_v10  ;;  %v746_v17 = vshll.u32 %v4925_v6, 16  ;;  %v2005_v16 = vrot.slane %v5788_v40, 1  ;;  %v1843_v23 = vsel %vm1266_vm8, %v1838_v45, %v1842_v7  ;;  %v484_v27 = vadd.f32 %v6335_v24, %v445_v41  ;;  %v5829_v49 = vld [vmem:[%s7519_s3 + $0x1f8] sm:$0xff]  }
  0x6f   : > { %v745_v25 = vrot.slane %v743_v14, 7  ;;  %v5011_v28 = vunpack.c.h.bf16 %v6339_v44  ;;  %2313 = vmatprep.mubr.bf16.mxu0 %v1843_v23  ;;  %v740_v31 = vor.u32 %v738_v43, %v737_v18  ;;  %v741_v0 = vrot.slane %v737_v18, 4  ;;  %v1011_v6 = vld [vmem:[#allocation2 + $0x68] sm:$0x1]  ;;  %5422 = vmatprep.subr.bf16.mxu0 %v5829_v49 }
  0x70   : > { %v6369_v32 = vsel %vm1475_vm9, %v2004_v55, %v2005_v16  ;;  %v515_v33 = vmax.f32 %v483_v21, 0.0  ;;  %2314 = vmatmul.mubr.bf16.gmra.mxu0 %v5787_v62  ;;  %v516_v37 = vmax.f32 %v484_v27, 0.0  ;;  %v446_v29 = vmul.f32 %v6329_v13, %v5010_v35  ;;  %v5795_v62 = vld [vmem:[%s7519_s3 + $0x30] sm:$0xff]   ;;  %v5803_v27 = vld [vmem:[%s7519_s3 + $0x60] sm:$0xff]  }
  0x71   : > { %v748_v60 = vor.u32 %v746_v17, %v745_v25  ;;  %v750_v36 = vrot.slane %v745_v25, 4  ;;  %v1001_v44 = vsel %vm6105_vm6, %v740_v31, %v1000_v4  ;;  %v447_v41 = vmul.f32 %v6329_v13, %v5011_v28  ;;  %v5799_v17 = vld [vmem:[%s7519_s3 + $0x28] sm:$0xff]  }
  0x72   : > { %v4926_v39 = vpack.c.bf16 %v515_v33, %v515_v33  ;;  %v5014_v42 = vunpack.c.l.bf16 %v5128_v30  ;;  %1002 = vst [vmem:[#allocation2 + $0x54] sm:$0xf] %v1001_v44  ;;  %v4927_v46 = vpack.c.bf16 %v516_v37, %v516_v37  ;;  %v485_v47 = vadd.f32 %v6335_v24, %v446_v29 }
  0x73   : > { %v749_v40 = vsel %vm6098_vm5, %v741_v0, %v748_v60  ;;  %v1005_v35 = vsel %vm6113_vm7, %v750_v36, %v1004_v26  ;;  %5575 = vmatmul.mubr.bf16.vlgmr.msra.gmra.mxu1 %v6294_v38  ;;  %v486_v54 = vadd.f32 %v6335_v24, %v447_v41  ;;  %v5015_v55 = vunpack.c.h.bf16 %v5128_v30 }
  0x74   : > { %1003 = vst [vmem:[#allocation2 + $0x58] sm:$0xf] %v749_v40  ;;  %1006 = vst [vmem:[#allocation2 + $0x5c] sm:$0x1] %v1005_v35  ;;  %v752_v51 = vshrl.u32 %v4926_v39, 16  ;;  %v755_v52 = vshll.u32 %v4926_v39, 16  ;;  %5287 = vmatpush3.bf16.msra.mxu1 %v5790_v53  ;;  %5578 = vmatprep.mubr.bf16.mxu1 %v6319_v20  ;;  %v448_v38 = vmul.f32 %v6329_v13, %v5014_v42  ;;  %v5018_v61 = vunpack.c.l.bf16 %v6376_v11 }
  0x75   : > { %v6397_v56 = vld [vmem:[#allocation2 + $0x48] sm:$0xff]   ;;  %v760_v57 = vshrl.u32 %v4927_v46, 16  ;;  %v5019_v1 = vunpack.c.h.bf16 %v6376_v11  ;;  %v5793_v2 = vld [vmem:[#allocation2 + $0x50] ss:$0 sps:$4 sm:$0x11]   ;;  %5288 = vmatprep.subr.bf16.mxu1 %v5794_v34  ;;  %v763_v5 = vshll.u32 %v4927_v46, 16  ;;  %v449_v8 = vmul.f32 %v6329_v13, %v5015_v55 }
  0x76   : > { %v754_v3 = vrot.slane %v752_v51, 7  ;;  %v517_v7 = vmax.f32 %v485_v47, 0.0  ;;  %v1845_v15 = vshrl.u32 %v6397_v56, 16  ;;  %v1847_v20 = vshll.u32 %v6397_v56, 16  ;;  %v1014_v40 = vld [vmem:[#allocation2 + $0x6c] sm:$0xf] }
  0x77   : > { %v2007_v43 = vrot.slane %v6397_v56, 1  ;;  %v762_v45 = vrot.slane %v760_v57, 7  ;;  %v1852_v9 = vshll.u32 %v5793_v2, 16  ;;  %v2008_v10 = vrot.slane %v5793_v2, 1  ;;  %v5808_v35 = vld [vmem:[%s7519_s3 + $0x58] sm:$0xff]  }
  0x78   : > { %v757_v14 = vor.u32 %v755_v52, %v754_v3  ;;  %v758_v4 = vrot.slane %v754_v3, 4  ;;  %v1849_v18 = vrot.slane %v1847_v20, 1  ;;  %5289 = vmatpush3.bf16.msra.mxu1 %v5795_v62  ;;  %v518_v23 = vmax.f32 %v486_v54, 0.0  ;;  %v5804_v62 = vld [vmem:[%s7519_s3 + $0x20] sm:$0xff]   ;;  %v6437_v46 = vld [vmem:[%s6039_s26 + $0x58] sm:$0xff]  }
  0x79   : > { %v765_v16 = vor.u32 %v763_v5, %v762_v45  ;;  %v767_v21 = vrot.slane %v762_v45, 4  ;;  %v1854_v53 = vrot.slane %v1852_v9, 1  ;;  %5290 = vmatprep.subr.bf16.mxu1 %v5798_v50  ;;  %v2009_v25 = vsel %vm1475_vm9, %v2007_v43, %v2008_v10 }
  0x7a   : > { %v1008_v26 = vsel %vm6105_vm6, %v757_v14, %v1007_v58  ;;  %v4928_v28 = vpack.c.bf16 %v517_v7, %v517_v7  ;;  %v1850_v30 = vor.u32 %v1849_v18, %v1845_v15  ;;  %v4929_v34 = vpack.c.bf16 %v518_v23, %v518_v23  ;;  %v5811_v15 = vld [vmem:[%s7519_s3 + $0x18] sm:$0xff]  }
  0x7b   : > { %v6416_v31 = vld [vmem:[#allocation2 + $0x54] sm:$0xff]   ;;  %v766_v0 = vsel %vm6098_vm5, %v758_v4, %v765_v16  ;;  %1009 = vst [vmem:[#allocation2 + $0x60] sm:$0xf] %v1008_v26  ;;  %v1012_v33 = vsel %vm6113_vm7, %v767_v21, %v1011_v6  ;;  %5579 = vmatmul.mubr.bf16.gmra.mxu1 %v6324_v22  ;;  %v5797_v60 = vld [vmem:[#allocation2 + $0x5c] ss:$0 sps:$4 sm:$0x11]   ;;  %v487_v29 = vadd.f32 %v6335_v24, %v448_v38  ;;  %v5022_v9 = vunpack.c.l.bf16 %v6437_v46 }
  0x7c   : > { %1010 = vst [vmem:[#allocation2 + $0x64] sm:$0xf] %v766_v0  ;;  %1013 = vst [vmem:[#allocation2 + $0x68] sm:$0x1] %v1012_v33  ;;  %v769_v36 = vshrl.u32 %v4928_v28, 16  ;;  %v772_v37 = vshll.u32 %v4928_v28, 16  ;;  %v488_v44 = vadd.f32 %v6335_v24, %v449_v8  ;;  %v1855_v39 = vsel %vm1266_vm8, %v1850_v30, %v1854_v53  ;;  %5582 = vmatprep.mubr.bf16.mxu1 %v6369_v32 }
  0x7d   : > { %v1857_v41 = vshrl.u32 %v6416_v31, 16  ;;  %v1859_v42 = vshll.u32 %v6416_v31, 16  ;;  %5291 = vmatpush3.bf16.msra.mxu1 %v5799_v17  ;;  %v2010_v22 = vrot.slane %v6416_v31, 1  ;;  %2321 = vmatprep.mubr.bf16.mxu0 %v1855_v39  ;;  %v1864_v47 = vshll.u32 %v5797_v60, 16  ;;  %v1018_v6 = vld [vmem:[#allocation2 + $0x74] sm:$0x1] }
  0x7e   : > { %v2011_v49 = vrot.slane %v5797_v60, 1  ;;  %5292 = vmatprep.subr.bf16.mxu1 %v5803_v27  ;;  %v771_v50 = vrot.slane %v769_v36, 7  ;;  %v777_v32 = vshrl.u32 %v4929_v34, 16  ;;  %2322 = vmatmul.mubr.bf16.gmra.mxu0 %v6397_v56  ;;  %v780_v52 = vshll.u32 %v4929_v34, 16  ;;  %v5814_v56 = vld [vmem:[%s7519_s3 + $0x50] sm:$0xff]   ;;  %v5819_v60 = vld [vmem:[%s7519_s3 + $0x48] sm:$0xff]  }
  0x7f   : > { %v1861_v51 = vrot.slane %v1859_v42, 1  ;;  %v519_v54 = vmax.f32 %v487_v29, 0.0  ;;  %v520_v55 = vmax.f32 %v488_v44, 0.0  ;;  %v1866_v57 = vrot.slane %v1864_v47, 1  ;;  %v1021_v28 = vld [vmem:[#allocation2 + $0x78] sm:$0xf] }
  0x80   : > { %v2012_v58 = vsel %vm1475_vm9, %v2010_v22, %v2011_v49  ;;  %v774_v38 = vor.u32 %v772_v37, %v771_v50  ;;  %v775_v2 = vrot.slane %v771_v50, 4  ;;  %v779_v5 = vrot.slane %v777_v32, 7 }
  0x81   : > { %v1862_v3 = vor.u32 %v1861_v51, %v1857_v41  ;;  %5293 = vmatpush3.bf16.msra.mxu1 %v5804_v62  ;;  %v4930_v7 = vpack.c.bf16 %v519_v54, %v519_v54  ;;  %v4931_v8 = vpack.c.bf16 %v520_v55, %v520_v55  ;;  %v450_v43 = vmul.f32 %v6329_v13, %v5018_v61  ;;  %v1025_v62 = vld [vmem:[#allocation2 + $0x80] sm:$0x1] }
  0x82   : > { %v1015_v20 = vsel %vm6105_vm6, %v774_v38, %v1014_v40  ;;  %5294 = vmatprep.subr.bf16.mxu1 %v5808_v35  ;;  %v451_v45 = vmul.f32 %v6329_v13, %v5019_v1  ;;  %v782_v4 = vor.u32 %v780_v52, %v779_v5  ;;  %v784_v18 = vrot.slane %v779_v5, 4  ;;  %v5820_v40 = vld [vmem:[%s7519_s3 + $0x8] sm:$0xff]   ;;  %v5822_v52 = vld [vmem:[%s7519_s3 + $0x40] sm:$0xff]  }
  0x83   : > { %v1867_v10 = vsel %vm1266_vm8, %v1862_v3, %v1866_v57  ;;  %v6457_v14 = vld [vmem:[#allocation2 + $0x60] sm:$0xff]   ;;  %1016 = vst [vmem:[#allocation2 + $0x6c] sm:$0xf] %v1015_v20  ;;  %v5023_v17 = vunpack.c.h.bf16 %v6437_v46  ;;  %5583 = vmatmul.mubr.bf16.gmra.mxu1 %v2009_v25  ;;  %v5802_v16 = vld [vmem:[#allocation2 + $0x68] ss:$0 sps:$4 sm:$0x11]   ;;  %v489_v11 = vadd.f32 %v6335_v24, %v450_v43  ;;  %v452_v32 = vmul.f32 %v6329_v13, %v5022_v9 }
  0x84   : > { %2329 = vmatprep.mubr.bf16.mxu0 %v1867_v10  ;;  %v786_v21 = vshrl.u32 %v4930_v7, 16  ;;  %v789_v61 = vshll.u32 %v4930_v7, 16  ;;  %v794_v23 = vshrl.u32 %v4931_v8, 16  ;;  %v1869_v1 = vshrl.u32 %v6457_v14, 16  ;;  %5586 = vmatprep.mubr.bf16.mxu1 %v2012_v58  ;;  %v5817_v25 = vld [vmem:[%s7519_s3 + $0x10] sm:$0xff]   ;;  %v5823_v38 = vld [vmem:[%s7519_s3] sm:$0xff]  }
  0x85   : > { %v1871_v53 = vshll.u32 %v6457_v14, 16  ;;  %v2013_v26 = vrot.slane %v6457_v14, 1  ;;  %v783_v27 = vsel %vm6098_vm5, %v775_v2, %v782_v4  ;;  %5295 = vmatpush3.bf16.msra.mxu1 %v5811_v15  ;;  %v1876_v30 = vshll.u32 %v5802_v16, 16  ;;  %v6499_v7 = vld [vmem:[%s7519_s3 + $0x238] sm:$0xff]   ;;  %v1032_v4 = vld [vmem:[#allocation2 + $0x8c] sm:$0x1] }
  0x86   : > { %v2014_v0 = vrot.slane %v5802_v16, 1  ;;  %1017 = vst [vmem:[#allocation2 + $0x70] sm:$0xf] %v783_v27  ;;  %v1019_v33 = vsel %vm6113_vm7, %v784_v18, %v1018_v6  ;;  %v788_v34 = vrot.slane %v786_v21, 7  ;;  %5296 = vmatprep.subr.bf16.mxu1 %v5814_v56  ;;  %2330 = vmatmul.mubr.bf16.gmra.mxu0 %v6416_v31  ;;  %v796_v37 = vrot.slane %v794_v23, 7 }
  0x87   : > { %v1873_v36 = vrot.slane %v1871_v53, 1  ;;  %1020 = vst [vmem:[#allocation2 + $0x74] sm:$0x1] %v1019_v33  ;;  %v797_v29 = vshll.u32 %v4931_v8, 16  ;;  %v490_v44 = vadd.f32 %v6335_v24, %v451_v45  ;;  %v1878_v39 = vrot.slane %v1876_v30, 1 }
  0x88   : > { %v2015_v41 = vsel %vm1475_vm9, %v2013_v26, %v2014_v0  ;;  %v791_v42 = vor.u32 %v789_v61, %v788_v34  ;;  %v792_v22 = vrot.slane %v788_v34, 4  ;;  %v801_v47 = vrot.slane %v796_v37, 4  ;;  %v1028_v56 = vld [vmem:[#allocation2 + $0x84] sm:$0xf] }
  0x89   : > { %v1874_v35 = vor.u32 %v1873_v36, %v1869_v1  ;;  %v799_v46 = vor.u32 %v797_v29, %v796_v37  ;;  %v521_v31 = vmax.f32 %v489_v11, 0.0  ;;  %5297 = vmatpush3.bf16.msra.mxu1 %v5817_v25  ;;  %v522_v50 = vmax.f32 %v490_v44, 0.0 }
  0x8a   : > { %v1022_v49 = vsel %vm6105_vm6, %v791_v42, %v1021_v28  ;;  %v453_v51 = vmul.f32 %v6329_v13, %v5023_v17  ;;  %5298 = vmatprep.subr.bf16.mxu1 %v5819_v60  ;;  %v1026_v57 = vsel %vm6113_vm7, %v801_v47, %v1025_v62  ;;  %v491_v6 = vadd.f32 %v6335_v24, %v452_v32  ;;  %v1035_v32 = vld [vmem:[#allocation2 + $0x90] sm:$0xf] }
  0x8b   : > { %v1879_v54 = vsel %vm1266_vm8, %v1874_v35, %v1878_v39  ;;  %v800_v55 = vsel %vm6098_vm5, %v792_v22, %v799_v46  ;;  %1023 = vst [vmem:[#allocation2 + $0x78] sm:$0xf] %v1022_v49  ;;  %v4932_v58 = vpack.c.bf16 %v521_v31, %v521_v31  ;;  %5587 = vmatmul.mubr.bf16.gmra.mxu1 %v2015_v41  ;;  %1027 = vst [vmem:[#allocation2 + $0x80] sm:$0x1] %v1026_v57 }
  0x8c   : > { %2337 = vmatprep.mubr.bf16.mxu0 %v1879_v54  ;;  %1024 = vst [vmem:[#allocation2 + $0x7c] sm:$0xf] %v800_v55  ;;  %v4933_v13 = vpack.c.bf16 %v522_v50, %v522_v50  ;;  %v492_v20 = vadd.f32 %v6335_v24, %v453_v51  ;;  %v523_v1 = vmax.f32 %v491_v6, 0.0  ;;  %v1039_v51 = vld [vmem:[#allocation2 + $0x98] sm:$0x1]  ;;  %v2037_v57 = vrot.slane %v6316_v19, 1 }
  0x8d   : > { %v5806_v2 = vld [vmem:[#allocation2 + $0x6c] sm:$0xff]   ;;  %v803_v3 = vshrl.u32 %v4932_v58, 16  ;;  %v806_v5 = vshll.u32 %v4932_v58, 16  ;;  %5299 = vmatpush3.bf16.msra.mxu1 %v5820_v40 }
  0x8e   : > { %v5807_v8 = vld [vmem:[#allocation2 + $0x74] ss:$0 sps:$4 sm:$0x11]   ;;  %v811_v15 = vshrl.u32 %v4933_v13, 16  ;;  %5300 = vmatprep.subr.bf16.mxu1 %v5822_v52  ;;  %2338 = vmatmul.mubr.bf16.gmra.mxu0 %v6457_v14  ;;  %v1881_v43 = vshrl.u32 %v5806_v2, 16  ;;  %v1883_v45 = vshll.u32 %v5806_v2, 16  ;;  %v4934_v0 = vpack.c.bf16 %v523_v1, %v523_v1 }
  0x8f   : > { %v2016_v9 = vrot.slane %v5806_v2, 1  ;;  %v805_v10 = vrot.slane %v803_v3, 7  ;;  %v1888_v18 = vshll.u32 %v5807_v8, 16  ;;  %v2017_v17 = vrot.slane %v5807_v8, 1 }
  0x90   : > { %v813_v16 = vrot.slane %v811_v15, 7  ;;  %v814_v21 = vshll.u32 %v4933_v13, 16  ;;  %v1885_v61 = vrot.slane %v1883_v45, 1  ;;  %v524_v30 = vmax.f32 %v492_v20, 0.0 }
  0x91   : > { %v808_v23 = vor.u32 %v806_v5, %v805_v10  ;;  %v809_v11 = vrot.slane %v805_v10, 4  ;;  %5301 = vmatpush3.bf16.msra.mxu1 %v5823_v38  ;;  %v1890_v53 = vrot.slane %v1888_v18, 1  ;;  %v2018_v24 = vsel %vm1475_vm9, %v2016_v9, %v2017_v17 }
  0x92   : > { %v816_v26 = vor.u32 %v814_v21, %v813_v16  ;;  %v818_v27 = vrot.slane %v813_v16, 4  ;;  %5654 = vmatprep.subr.bf16.mxu1 %v6499_v7  ;;  %v1886_v14 = vor.u32 %v1885_v61, %v1881_v43  ;;  %5590 = vmatprep.mubr.bf16.mxu1 %v2018_v24  ;;  %v5810_v33 = vld [vmem:[#allocation2 + $0x80] ss:$0 sps:$4 sm:$0x11]   ;;  %v4935_v42 = vpack.c.bf16 %v524_v30, %v524_v30 }
  0x93   : > { %v5809_v28 = vld [vmem:[#allocation2 + $0x78] sm:$0xff]   ;;  %v1029_v25 = vsel %vm6105_vm6, %v808_v23, %v1028_v56  ;;  %v2020_v39 = vrot.slane %v5810_v33, 1  ;;  %v1900_v41 = vshll.u32 %v5810_v33, 16  ;;  %v820_v22 = vshrl.u32 %v4934_v0, 16  ;;  %v6527_v24 = vld [vmem:[#allocation2] sm:$0xff]  }
  0x94   : > { %v817_v34 = vsel %vm6098_vm5, %v809_v11, %v816_v26  ;;  %1030 = vst [vmem:[#allocation2 + $0x84] sm:$0xf] %v1029_v25  ;;  %v1033_v60 = vsel %vm6113_vm7, %v818_v27, %v1032_v4  ;;  %v1891_v36 = vsel %vm1266_vm8, %v1886_v14, %v1890_v53  ;;  %v2019_v37 = vrot.slane %v5809_v28, 1  ;;  %v5825_v23 = vld [vmem:[#allocation2 + $0x8] ss:$0 sps:$4 sm:$0x11]  }
  0x95   : > { %v1893_v29 = vshrl.u32 %v5809_v28, 16  ;;  %v1895_v44 = vshll.u32 %v5809_v28, 16  ;;  %1031 = vst [vmem:[#allocation2 + $0x88] sm:$0xf] %v817_v34  ;;  %1034 = vst [vmem:[#allocation2 + $0x8c] sm:$0x1] %v1033_v60  ;;  %2345 = vmatprep.mubr.bf16.mxu0 %v1891_v36 }
  0x96   : > { %2346 = vmatmul.mubr.bf16.gmra.mxu0 %v5806_v2  ;;  %v823_v40 = vshll.u32 %v4934_v0, 16  ;;  %v2021_v35 = vsel %vm1475_vm9, %v2019_v37, %v2020_v39  ;;  %v1902_v46 = vrot.slane %v1900_v41, 1  ;;  %v822_v47 = vrot.slane %v820_v22, 7  ;;  %v6532_v34 = vld [vmem:[#allocation2 + $0xc] sm:$0xff]  }
  0x97   : > { %v1897_v62 = vrot.slane %v1895_v44, 1  ;;  %v828_v31 = vshrl.u32 %v4935_v42, 16  ;;  %5591 = vmatmul.mubr.bf16.gmra.mxu1 %v2021_v35  ;;  %v831_v50 = vshll.u32 %v4935_v42, 16  ;;  %v2038_v13 = vrot.slane %v6321_v12, 1  ;;  %v5916_v36 = vld [vmem:[#allocation2 + $0xa8] sm:$0xff]  }
  0x98   : > { %v825_v52 = vor.u32 %v823_v40, %v822_v47  ;;  %v826_v54 = vrot.slane %v822_v47, 4  ;;  %v2028_v17 = vrot.slane %v5914_v48, 1  ;;  %v2029_v21 = vrot.slane %v5915_v63, 1  ;;  %v6534_v60 = vld [vmem:[#allocation2 + $0x14] ss:$0 sps:$4 sm:$0x11]  }
  0x99   : > { %v1898_v49 = vor.u32 %v1897_v62, %v1893_v29  ;;  %v830_v55 = vrot.slane %v828_v31, 7  ;;  %v6519_v8 = vsel %vm1475_vm9, %v2037_v57, %v2038_v13  ;;  %v1476_v25 = vrot.slane %v6527_v24, 1  ;;  %v5917_v29 = vld [vmem:[#allocation2 + $0xb0] ss:$0 sps:$4 sm:$0x11]   ;;  %v5918_v62 = vld [vmem:[#allocation2 + $0xb4] sm:$0xff]  }
  0x9a   : > { %v1036_v5 = vsel %vm6105_vm6, %v825_v52, %v1035_v32  ;;  %v2030_v14 = vsel %vm1475_vm9, %v2028_v17, %v2029_v21  ;;  %v1477_v30 = vrot.slane %v5825_v23, 1  ;;  %v2031_v37 = vrot.slane %v5916_v36, 1  ;;  %v6537_v42 = vld [vmem:[#allocation2 + $0x20] ss:$0 sps:$4 sm:$0x11]   ;;  %v6541_v31 = vld [vmem:[#allocation2 + $0x18] sm:$0xff]  }
  0x9b   : > { %v1903_v58 = vsel %vm1266_vm8, %v1898_v49, %v1902_v46  ;;  %v833_v2 = vor.u32 %v831_v50, %v830_v55  ;;  %v835_v3 = vrot.slane %v830_v55, 4  ;;  %1037 = vst [vmem:[#allocation2 + $0x90] sm:$0xf] %v1036_v5  ;;  %v2032_v44 = vrot.slane %v5917_v29, 1  ;;  %v5830_v13 = vld [vmem:[%s7519_s3 + $0x1b8] sm:$0xff]  }
  0x9c   : > { %2353 = vmatprep.mubr.bf16.mxu0 %v1903_v58  ;;  %v5812_v38 = vld [vmem:[#allocation2 + $0x84] sm:$0xff]   ;;  %v5813_v6 = vld [vmem:[#allocation2 + $0x8c] ss:$0 sps:$4 sm:$0x11]   ;;  %v1270_v41 = vshll.u32 %v6527_v24, 16  ;;  %v2034_v40 = vrot.slane %v5918_v62, 1  ;;  %v1478_v47 = vsel %vm1475_vm9, %v1476_v25, %v1477_v30 }
  0x9d   : > { %v2022_v15 = vrot.slane %v5812_v38, 1  ;;  %v834_v19 = vsel %vm6098_vm5, %v826_v54, %v833_v2  ;;  %v1040_v56 = vsel %vm6113_vm7, %v835_v3, %v1039_v51  ;;  %v2023_v12 = vrot.slane %v5813_v6, 1  ;;  %v5919_v35 = vld [vmem:[#allocation2 + $0xbc] ss:$0 sps:$4 sm:$0x11]   ;;  %v5839_v25 = vld [vmem:[%s7519_s3 + $0x230] sm:$0xff]  }
  0x9e   : > { %2354 = vmatmul.mubr.bf16.gmra.mxu0 %v5809_v28  ;;  %1038 = vst [vmem:[#allocation2 + $0x94] sm:$0xf] %v834_v19  ;;  %1041 = vst [vmem:[#allocation2 + $0x98] sm:$0x1] %v1040_v56  ;;  %v1905_v20 = vshrl.u32 %v5812_v38, 16  ;;  %v1907_v43 = vshll.u32 %v5812_v38, 16  ;;  %v2033_v49 = vsel %vm1475_vm9, %v2031_v37, %v2032_v44 }
  0x9f   : > { %v1912_v59 = vshll.u32 %v5813_v6, 16  ;;  %v2024_v45 = vsel %vm1475_vm9, %v2022_v15, %v2023_v12  ;;  %v2035_v46 = vrot.slane %v5919_v35, 1  ;;  %v1268_v50 = vshrl.u32 %v6527_v24, 16  ;;  %v6555_v2 = vld [vmem:[#allocation2 + $0x2c] ss:$0 sps:$4 sm:$0x11]  }
  0xa0   : > { %v1909_v9 = vrot.slane %v1907_v43, 1  ;;  %5594 = vmatprep.mubr.bf16.mxu1 %v2024_v45  ;;  %v1272_v32 = vrot.slane %v1270_v41, 1  ;;  %v1275_v51 = vshll.u32 %v5825_v23, 16  ;;  %v1479_v52 = vrot.slane %v6532_v34, 1  ;;  %v6561_v15 = vld [vmem:[#allocation2 + $0x30] sm:$0xff]   ;;  %v6580_v63 = vld [vmem:[#allocation2 + $0x3c] sm:$0xff]  }
  0xa1   : > { %v1914_v10 = vrot.slane %v1912_v59, 1  ;;  %v1480_v54 = vrot.slane %v6534_v60, 1  ;;  %v2036_v55 = vsel %vm1475_vm9, %v2034_v40, %v2035_v46  ;;  %v1482_v57 = vrot.slane %v6541_v31, 1  ;;  %v6558_v5 = vld [vmem:[#allocation2 + $0x38] ss:$0 sps:$4 sm:$0x11]  }
  0xa2   : > { %v1910_v4 = vor.u32 %v1909_v9, %v1905_v20  ;;  %v1483_v58 = vrot.slane %v6537_v42, 1  ;;  %v1282_v3 = vshll.u32 %v6532_v34, 16  ;;  %v1273_v19 = vor.u32 %v1272_v32, %v1268_v50  ;;  %v5835_v20 = vld [vmem:[%s7519_s3 + $0x1f0] sm:$0xff]   ;;  %v6582_v21 = vld [vmem:[#allocation2 + $0x44] ss:$0 sps:$4 sm:$0x11]  }
  0xa3   : > { %v1481_v6 = vsel %vm1475_vm9, %v1479_v52, %v1480_v54  ;;  %v1277_v56 = vrot.slane %v1275_v51, 1  ;;  %v1280_v43 = vshrl.u32 %v6532_v34, 16  ;;  %v5836_v59 = vld [vmem:[%s7519_s3 + $0x1b0] sm:$0xff]   ;;  %v1287_v9 = vshll.u32 %v6534_v60, 16  ;;  %v6588_v23 = vld [vmem:[#allocation2 + $0x48] sm:$0xff]   ;;  %v5849_v30 = vld [vmem:[%s7519_s3 + $0x1a0] sm:$0xff]  }
  0xa4   : > { %v1915_v18 = vsel %vm1266_vm8, %v1910_v4, %v1914_v10  ;;  %v1484_v12 = vsel %vm1475_vm9, %v1482_v57, %v1483_v58  ;;  %v1284_v45 = vrot.slane %v1282_v3, 1  ;;  %v5842_v10 = vld [vmem:[%s7519_s3 + $0x1e8] sm:$0xff]   ;;  %v1488_v48 = vrot.slane %v6561_v15, 1  ;;  %v6613_v41 = vld [vmem:[#allocation2 + $0x5c] ss:$0 sps:$4 sm:$0x11]  }
  0xa5   : > { %v5815_v16 = vld [vmem:[#allocation2 + $0x90] sm:$0xff]   ;;  %2361 = vmatprep.mubr.bf16.mxu0 %v1915_v18  ;;  %v5816_v61 = vld [vmem:[#allocation2 + $0x98] ss:$0 sps:$4 sm:$0x11]   ;;  %v1486_v18 = vrot.slane %v6555_v2, 1  ;;  %v1489_v17 = vrot.slane %v6558_v5, 1 }
  0xa6   : > { %2362 = vmatmul.mubr.bf16.gmra.mxu0 %v5812_v38  ;;  %v2025_v11 = vrot.slane %v5815_v16, 1  ;;  %v1917_v1 = vshrl.u32 %v5815_v16, 16  ;;  %v1919_v53 = vshll.u32 %v5815_v16, 16  ;;  %v2026_v26 = vrot.slane %v5816_v61, 1  ;;  %v6553_v38 = vld [vmem:[#allocation2 + $0x24] sm:$0xff]   ;;  %v5861_v50 = vld [vmem:[%s7519_s3 + $0x1d0] sm:$0xff]  }
  0xa7   : > { %v1924_v27 = vshll.u32 %v5816_v61, 16  ;;  %v1485_v4 = vrot.slane %v6553_v38, 1  ;;  %v5843_v61 = vld [vmem:[%s7519_s3 + $0x1a8] sm:$0xff]   ;;  %v1491_v60 = vrot.slane %v6580_v63, 1  ;;  %v1492_v36 = vrot.slane %v6582_v21, 1  ;;  %v5862_v3 = vld [vmem:[%s7519_s3 + $0x190] sm:$0xff]  }
  0xa8   : > { %v1921_v28 = vrot.slane %v1919_v53, 1  ;;  %v2027_v0 = vsel %vm1475_vm9, %v2025_v11, %v2026_v26  ;;  %v6592_v53 = vld [vmem:[#allocation2 + $0x50] ss:$0 sps:$4 sm:$0x11]   ;;  %v1285_v26 = vor.u32 %v1284_v45, %v1280_v43  ;;  %v1494_v29 = vrot.slane %v6588_v23, 1  ;;  %v6659_v43 = vld [vmem:[#allocation2 + $0x78] sm:$0xff]  }
  0xa9   : > { %v1926_v33 = vrot.slane %v1924_v27, 1  ;;  %5595 = vmatmul.mubr.bf16.gmra.mxu1 %v2027_v0  ;;  %v1487_v11 = vsel %vm1475_vm9, %v1485_v4, %v1486_v18  ;;  %v1289_v27 = vrot.slane %v1287_v9, 1  ;;  %v1495_v44 = vrot.slane %v6592_v53, 1  ;;  %v6623_v46 = vld [vmem:[#allocation2 + $0x68] ss:$0 sps:$4 sm:$0x11]  }
  0xaa   : > { %v1922_v39 = vor.u32 %v1921_v28, %v1917_v1  ;;  %5598 = vmatprep.mubr.bf16.mxu1 %v2030_v14  ;;  %v1294_v1 = vshll.u32 %v6541_v31, 16  ;;  %v1490_v14 = vsel %vm1475_vm9, %v1488_v48, %v1489_v17  ;;  %v5848_v28 = vld [vmem:[%s7519_s3 + $0x1e0] sm:$0xff]   ;;  %v1493_v35 = vsel %vm1475_vm9, %v1491_v60, %v1492_v36  ;;  %v5869_v45 = vld [vmem:[%s7519_s3 + $0x188] sm:$0xff]   ;;  %v5878_v4 = vld [vmem:[%s7519_s3 + $0x218] sm:$0xff]  }
  0xab   : > { %v1290_v37 = vsel %vm1266_vm8, %v1285_v26, %v1289_v27  ;;  %v1304_v51 = vshrl.u32 %v6553_v38, 16  ;;  %v1498_v54 = vrot.slane %v6613_v41, 1  ;;  %v1311_v57 = vshll.u32 %v6555_v2, 16  ;;  %v6653_v2 = vld [vmem:[#allocation2 + $0x6c] sm:$0xff]   ;;  %v5874_v18 = vld [vmem:[%s7519_s3 + $0x1c0] sm:$0xff]  }
  0xac   : > { %v1927_v22 = vsel %vm1266_vm8, %v1922_v39, %v1926_v33  ;;  %v1296_v0 = vrot.slane %v1294_v1, 1  ;;  %v1299_v33 = vshll.u32 %v6537_v42, 16  ;;  %v6611_v39 = vld [vmem:[#allocation2 + $0x54] sm:$0xff]   ;;  %v1316_v48 = vshrl.u32 %v6561_v15, 16 }
  0xad   : > { %2369 = vmatprep.mubr.bf16.mxu0 %v1927_v22  ;;  %v5855_v42 = vld [vmem:[%s7519_s3 + $0x1d8] sm:$0xff]   ;;  %v6619_v22 = vld [vmem:[#allocation2 + $0x60] sm:$0xff]   ;;  %v1497_v52 = vrot.slane %v6611_v39, 1  ;;  %v1506_v26 = vrot.slane %v6659_v43, 1 }
  0xae   : > { %2370 = vmatmul.mubr.bf16.gmra.mxu0 %v5815_v16  ;;  %v1278_v16 = vsel %vm1266_vm8, %v1273_v19, %v1277_v56  ;;  %v1301_v40 = vrot.slane %v1299_v33, 1  ;;  %v1500_v58 = vrot.slane %v6619_v22, 1  ;;  %v5868_v19 = vld [vmem:[%s7519_s3 + $0x1c8] sm:$0xff]   ;;  %v6655_v56 = vld [vmem:[#allocation2 + $0x74] ss:$0 sps:$4 sm:$0x11]  }
  0xaf   : > { %5622 = vmatprep.mubr.bf16.mxu0 %v1478_v47  ;;  %v1306_v47 = vshll.u32 %v6553_v38, 16  ;;  %v6695_v33 = vld [vmem:[#allocation2 + $0x98] ss:$0 sps:$4 sm:$0x11]  }
  0xb1   : > { %5599 = vmatmul.mubr.bf16.gmra.mxu1 %v2033_v49  ;;  %v1496_v49 = vsel %vm1475_vm9, %v1494_v29, %v1495_v44  ;;  %v1328_v29 = vshrl.u32 %v6580_v63, 16 }
  0xb2   : > { %5602 = vmatprep.mubr.bf16.mxu1 %v2036_v55  ;;  %v1308_v55 = vrot.slane %v1306_v47, 1  ;;  %v1513_v47 = vrot.slane %v6695_v33, 1 }
  0xb4   : > { %v1309_v9 = vor.u32 %v1308_v55, %v1304_v51  ;;  %v6719_v51 = vld [vmem:[#allocation2 + $0xb0] ss:$0 sps:$4 sm:$0x11]   ;;  %v6722_v55 = vld [vmem:[#allocation2 + $0x18] sm:$0xff]  }
  0xb6   : > { %5623 = vmatmul.mubr.bf16.vlgmr.msra.gmra.mxu0 %v1481_v6  ;;  %v5865_v6 = vld [vmem:[%s7519_s3 + $0x220] sm:$0xff]  }
  0xb7   : > { %5423 = vmatpush3.bf16.msra.mxu0 %v5830_v13  ;;  %5626 = vmatprep.mubr.bf16.mxu0 %v1484_v12  ;;  %v1501_v13 = vrot.slane %v6623_v46, 1  ;;  %v1499_v12 = vsel %vm1475_vm9, %v1497_v52, %v1498_v54 }
  0xb8   : > { %5424 = vmatprep.subr.bf16.mxu0 %v5835_v20  ;;  %v1318_v20 = vshll.u32 %v6561_v15, 16 }
  0xb9   : > { %5603 = vmatmul.mubr.bf16.gmra.mxu1 %v6519_v8  ;;  %v1292_v8 = vshrl.u32 %v6541_v31, 16 }
  0xba   : > { %2747 = vmatprep.mubr.bf16.mxu1 %v1278_v16  ;;  %v1320_v17 = vrot.slane %v1318_v20, 1  ;;  %v1323_v16 = vshll.u32 %v6558_v5, 16  ;;  %v5883_v5 = vld [vmem:[%s7519_s3 + $0x210] sm:$0xff]   ;;  %v1519_v20 = vrot.slane %v6719_v51, 1 }
  0xbb   : > { %5425 = vmatpush3.bf16.msra.mxu0 %v5836_v59  ;;  %v1297_v62 = vor.u32 %v1296_v0, %v1292_v8  ;;  %v6661_v59 = vld [vmem:[#allocation2 + $0x80] ss:$0 sps:$4 sm:$0x11]   ;;  %v1330_v8 = vshll.u32 %v6580_v63, 16  ;;  %v6693_v0 = vld [vmem:[#allocation2 + $0x90] sm:$0xff]  }
  0xbc   : > { %5426 = vmatprep.subr.bf16.mxu0 %v5842_v10  ;;  %v1502_v10 = vsel %vm1475_vm9, %v1500_v58, %v1501_v13  ;;  %v1507_v27 = vrot.slane %v6661_v59, 1  ;;  %v1321_v60 = vor.u32 %v1320_v17, %v1316_v48  ;;  %v1325_v36 = vrot.slane %v1323_v16, 1  ;;  %v6739_v16 = vld [vmem:[#allocation2 + $0xbc] ss:$0 sps:$4 sm:$0x11]  }
  0xbd   : > { %v1302_v32 = vsel %vm1266_vm8, %v1297_v62, %v1301_v40  ;;  %v1332_v44 = vrot.slane %v1330_v8, 1  ;;  %v1340_v58 = vshrl.u32 %v6588_v23, 16  ;;  %v1347_v13 = vshll.u32 %v6592_v53, 16 }
  0xbe   : > { %5627 = vmatmul.mubr.bf16.gmra.mxu0 %v1487_v11  ;;  %v1504_v11 = vrot.slane %v6655_v56, 1  ;;  %v1354_v17 = vshll.u32 %v6611_v39, 16  ;;  %v3234_v8 = vshrl.u32 %v6722_v55, 16 }
  0xbf   : > { %5630 = vmatprep.mubr.bf16.mxu0 %v1490_v14  ;;  %5427 = vmatpush3.bf16.msra.mxu0 %v5843_v61  ;;  %v1503_v61 = vrot.slane %v6653_v2, 1  ;;  %v5875_v14 = vld [vmem:[%s7519_s3 + $0x180] sm:$0xff]   ;;  %v1349_v48 = vrot.slane %v1347_v13, 1 }
  0xc0   : > { %5428 = vmatprep.subr.bf16.mxu0 %v5848_v28  ;;  %v6686_v28 = vld [vmem:[#allocation2 + $0x84] sm:$0xff]  }
  0xc1   : > { %2748 = vmatmul.mubr.bf16.vlgmr.msra.gmra.mxu1 %v6527_v24  ;;  %v5852_v24 = vld [vmem:[%s7519_s3 + $0x228] sm:$0xff]   ;;  %v1509_v62 = vrot.slane %v6686_v28, 1 }
  0xc2   : > { %5655 = vmatpush3.bf16.msra.mxu1 %v6499_v7  ;;  %2755 = vmatprep.mubr.bf16.mxu1 %v1290_v37  ;;  %v5856_v7 = vld [vmem:[%s7519_s3 + $0x198] sm:$0xff]   ;;  %v1508_v37 = vsel %vm1475_vm9, %v1506_v26, %v1507_v27 }
  0xc3   : > { %5656 = vmatprep.subr.bf16.mxu1 %v5839_v25  ;;  %5429 = vmatpush3.bf16.msra.mxu0 %v5849_v30  ;;  %v1505_v30 = vsel %vm1475_vm9, %v1503_v61, %v1504_v11  ;;  %v6742_v61 = vld [vmem:[#allocation2 + $0xb4] sm:$0xff]  }
  0xc4   : > { %5430 = vmatprep.subr.bf16.mxu0 %v5855_v42  ;;  %v1335_v42 = vshll.u32 %v6582_v21, 16  ;;  %v5893_v21 = vld [vmem:[%s7519_s3 + $0x200] sm:$0xff]   ;;  %v6744_v11 = vld [vmem:[#allocation2 + $0x38] ss:$0 sps:$4 sm:$0x11]  }
  0xc6   : > { %5631 = vmatmul.mubr.bf16.gmra.mxu0 %v1493_v35  ;;  %5657 = vmatpush3.bf16.msra.mxu1 %v5839_v25  ;;  %v6690_v25 = vld [vmem:[#allocation2 + $0x8c] ss:$0 sps:$4 sm:$0x11]   ;;  %v1512_v35 = vrot.slane %v6693_v0, 1  ;;  %v1337_v52 = vrot.slane %v1335_v42, 1 }
  0xc7   : > { %5634 = vmatprep.mubr.bf16.mxu0 %v1496_v49  ;;  %5658 = vmatprep.subr.bf16.mxu1 %v5852_v24  ;;  %v1510_v40 = vrot.slane %v6690_v25, 1  ;;  %v6707_v49 = vld [vmem:[#allocation2 + $0x9c] sm:$0xff]  }
  0xc8   : > { %5431 = vmatpush3.bf16.msra.mxu0 %v5856_v7  ;;  %v6710_v7 = vld [vmem:[#allocation2 + $0xa4] ss:$0 sps:$4 sm:$0x11]  }
  0xc9   : > { %5432 = vmatprep.subr.bf16.mxu0 %v5861_v50  ;;  %2756 = vmatmul.mubr.bf16.gmra.mxu1 %v6532_v34  ;;  %v1313_v34 = vrot.slane %v1311_v57, 1  ;;  %v1342_v50 = vshll.u32 %v6588_v23, 16  ;;  %v1511_v54 = vsel %vm1475_vm9, %v1509_v62, %v1510_v40  ;;  %v1333_v57 = vor.u32 %v1332_v44, %v1328_v29 }
  0xca   : > { %2763 = vmatprep.mubr.bf16.mxu1 %v1302_v32  ;;  %5659 = vmatpush3.bf16.msra.mxu1 %v5852_v24  ;;  %v1326_v24 = vsel %vm1266_vm8, %v1321_v60, %v1325_v36  ;;  %v6716_v32 = vld [vmem:[#allocation2 + $0xa8] sm:$0xff]   ;;  %v6753_v36 = vld [vmem:[#allocation2 + $0x3c] sm:$0xff]   ;;  %v1352_v62 = vshrl.u32 %v6611_v39, 16  ;;  %v1359_v40 = vshll.u32 %v6613_v41, 16 }
  0xcb   : > { %5660 = vmatprep.subr.bf16.mxu1 %v5865_v6  ;;  %v1314_v1 = vsel %vm1266_vm8, %v1309_v9, %v1313_v34  ;;  %v5877_v9 = vld [vmem:[#allocation2 + $0x20] ss:$0 sps:$4 sm:$0x11]   ;;  %v3236_v34 = vshll.u32 %v6722_v55, 16  ;;  %v1338_v53 = vsel %vm1266_vm8, %v1333_v57, %v1337_v52 }
  0xcc   : > { %5433 = vmatpush3.bf16.msra.mxu0 %v5862_v3  ;;  %v1514_v3 = vsel %vm1475_vm9, %v1512_v35, %v1513_v47  ;;  %v3442_v26 = vrot.slane %v5877_v9, 1  ;;  %v3448_v35 = vrot.slane %v6744_v11, 1  ;;  %v3450_v47 = vrot.slane %v6753_v36, 1 }
  0xcd   : > { %5434 = vmatprep.subr.bf16.mxu0 %v5868_v19  ;;  %v1516_v19 = vrot.slane %v6710_v7, 1  ;;  %v3238_v60 = vrot.slane %v3236_v34, 1 }
  0xce   : > { %5635 = vmatmul.mubr.bf16.gmra.mxu0 %v1499_v12  ;;  %5661 = vmatpush3.bf16.msra.mxu1 %v5865_v6  ;;  %v1344_v6 = vrot.slane %v1342_v50, 1  ;;  %v1518_v12 = vrot.slane %v6716_v32, 1  ;;  %v1522_v50 = vrot.slane %v6739_v16, 1 }
  0xcf   : > { %5638 = vmatprep.mubr.bf16.mxu0 %v1502_v10  ;;  %5662 = vmatprep.subr.bf16.mxu1 %v5878_v4  ;;  %v6735_v10 = vld [vmem:[#allocation2 + $0x24] sm:$0xff]  }
  0xd0   : > { %5435 = vmatpush3.bf16.msra.mxu0 %v5869_v45  ;;  %v6731_v45 = vld [vmem:[#allocation2 + $0x2c] ss:$0 sps:$4 sm:$0x11]   ;;  %v3444_v27 = vrot.slane %v6735_v10, 1 }
  0xd1   : > { %5436 = vmatprep.subr.bf16.mxu0 %v5874_v18  ;;  %2764 = vmatmul.mubr.bf16.gmra.mxu1 %v6541_v31  ;;  %v5888_v31 = vld [vmem:[%s7519_s3 + $0x208] sm:$0xff]   ;;  %v1345_v18 = vor.u32 %v1344_v6, %v1340_v58  ;;  %v3248_v58 = vshll.u32 %v6735_v10, 16  ;;  %v1361_v6 = vrot.slane %v1359_v40, 1  ;;  %v3253_v34 = vshll.u32 %v6731_v45, 16 }
  0xd2   : > { %2771 = vmatprep.mubr.bf16.mxu1 %v1314_v1  ;;  %5663 = vmatpush3.bf16.msra.mxu1 %v5878_v4  ;;  %v3445_v4 = vrot.slane %v6731_v45, 1  ;;  %v3441_v1 = vrot.slane %v6722_v55, 1  ;;  %v1378_v45 = vshll.u32 %v6653_v2, 16  ;;  %v3272_v40 = vshll.u32 %v6753_v36, 16 }
  0xd3   : > { %5664 = vmatprep.subr.bf16.mxu1 %v5883_v5  ;;  %v1350_v44 = vsel %vm1266_vm8, %v1345_v18, %v1349_v48 }
  0xd4   : > { %5437 = vmatpush3.bf16.msra.mxu0 %v5875_v14  ;;  %v6761_v29 = vsel %vm1475_vm9, %v3444_v27, %v3445_v4 }
  0xd6   : > { %5639 = vmatmul.mubr.bf16.gmra.mxu0 %v1505_v30  ;;  %5665 = vmatpush3.bf16.msra.mxu1 %v5883_v5  ;;  %v1520_v5 = vsel %vm1475_vm9, %v1518_v12, %v1519_v20  ;;  %v6751_v30 = vld [vmem:[#allocation2 + $0x30] sm:$0xff]   ;;  %v3246_v20 = vshrl.u32 %v6735_v10, 16 }
  0xd7   : > { %5642 = vmatprep.mubr.bf16.mxu0 %v1508_v37  ;;  %5666 = vmatprep.subr.bf16.mxu1 %v5888_v31  ;;  %v6755_v37 = vld [vmem:[#allocation2 + $0x44] ss:$0 sps:$4 sm:$0x11]   ;;  %v3447_v42 = vrot.slane %v6751_v30, 1 }
  0xd8   : > { %v3451_v52 = vrot.slane %v6755_v37, 1 }
  0xd9   : > { %2772 = vmatmul.mubr.bf16.gmra.mxu1 %v6553_v38  ;;  %v1515_v38 = vrot.slane %v6707_v49, 1  ;;  %v6774_v13 = vsel %vm1475_vm9, %v3447_v42, %v3448_v35 }
  0xda   : > { %2779 = vmatprep.mubr.bf16.mxu1 %v1326_v24  ;;  %5667 = vmatpush3.bf16.msra.mxu1 %v5888_v31  ;;  %v6758_v31 = vsel %vm1475_vm9, %v3441_v1, %v3442_v26  ;;  %v1356_v24 = vrot.slane %v1354_v17, 1  ;;  %v6777_v41 = vsel %vm1475_vm9, %v3450_v47, %v3451_v52  ;;  %v3255_v17 = vrot.slane %v3253_v34, 1  ;;  %v6804_v52 = vld [vmem:[#allocation2 + $0x48] sm:$0xff]  }
  0xdb   : > { %5668 = vmatprep.subr.bf16.mxu1 %v5893_v21  ;;  %v1517_v14 = vsel %vm1475_vm9, %v1515_v38, %v1516_v19  ;;  %v1366_v19 = vshll.u32 %v6619_v22, 16  ;;  %v3260_v1 = vshll.u32 %v6751_v30, 16  ;;  %v3284_v34 = vshll.u32 %v6804_v52, 16 }
  0xdd   : > { %v1368_v4 = vrot.slane %v1366_v19, 1  ;;  %v1395_v19 = vshll.u32 %v6661_v59, 16  ;;  %v1402_v59 = vshll.u32 %v6686_v28, 16 }
  0xde   : > { %5643 = vmatmul.mubr.bf16.gmra.mxu0 %v1511_v54  ;;  %5669 = vmatpush3.bf16.msra.mxu1 %v5893_v21  ;;  %v1521_v21 = vrot.slane %v6742_v61, 1  ;;  %v3239_v54 = vor.u32 %v3238_v60, %v3234_v8  ;;  %v3262_v8 = vrot.slane %v3260_v1, 1  ;;  %v1376_v60 = vshrl.u32 %v6653_v2, 16 }
  0xdf   : > { %5646 = vmatprep.mubr.bf16.mxu0 %v1514_v3  ;;  %v1357_v3 = vor.u32 %v1356_v24, %v1352_v62 }
  0xe0   : > { %v1523_v38 = vsel %vm1475_vm9, %v1521_v21, %v1522_v50  ;;  %v3270_v21 = vshrl.u32 %v6753_v36, 16  ;;  %v3277_v50 = vshll.u32 %v6755_v37, 16 }
  0xe1   : > { %2780 = vmatmul.mubr.bf16.gmra.mxu1 %v6561_v15  ;;  %v3241_v15 = vshll.u32 %v5877_v9, 16  ;;  %v3250_v9 = vrot.slane %v3248_v58, 1  ;;  %v1362_v18 = vsel %vm1266_vm8, %v1357_v3, %v1361_v6  ;;  %v1388_v6 = vshrl.u32 %v6659_v43, 16 }
  0xe2   : > { %2787 = vmatprep.mubr.bf16.mxu1 %v1338_v53  ;;  %v1364_v53 = vshrl.u32 %v6619_v22, 16  ;;  %v3279_v37 = vrot.slane %v3277_v50, 1 }
  0xe3   : > { %v3243_v57 = vrot.slane %v3241_v15, 1  ;;  %v3251_v48 = vor.u32 %v3250_v9, %v3246_v20  ;;  %v1380_v15 = vrot.slane %v1378_v45, 1  ;;  %v6812_v9 = vld [vmem:[#allocation2 + $0x50] ss:$0 sps:$4 sm:$0x11]  }
  0xe4   : > { %v1369_v26 = vor.u32 %v1368_v4, %v1364_v53  ;;  %v3289_v45 = vshll.u32 %v6812_v9, 16 }
  0xe5   : > { %v3244_v12 = vsel %vm1266_vm8, %v3239_v54, %v3243_v57  ;;  %v1381_v47 = vor.u32 %v1380_v15, %v1376_v60  ;;  %v1404_v60 = vrot.slane %v1402_v59, 1  ;;  %v1407_v15 = vshll.u32 %v6690_v25, 16 }
  0xe6   : > { %5647 = vmatmul.mubr.bf16.gmra.mxu0 %v1517_v14  ;;  %v3256_v14 = vsel %vm1266_vm8, %v3251_v48, %v3255_v17  ;;  %v1397_v48 = vrot.slane %v1395_v19, 1  ;;  %v3282_v17 = vshrl.u32 %v6804_v52, 16  ;;  %v1414_v25 = vshll.u32 %v6693_v0, 16 }
  0xe7   : > { %5650 = vmatprep.mubr.bf16.mxu0 %v1520_v5  ;;  %v3258_v5 = vshrl.u32 %v6751_v30, 16  ;;  %v1419_v19 = vshll.u32 %v6695_v33, 16  ;;  %v1426_v33 = vshll.u32 %v6707_v49, 16 }
  0xe9   : > { %2788 = vmatmul.mubr.bf16.gmra.mxu1 %v6580_v63  ;;  %v1371_v63 = vshll.u32 %v6623_v46, 16  ;;  %v3265_v46 = vshll.u32 %v6744_v11, 16  ;;  %v3263_v42 = vor.u32 %v3262_v8, %v3258_v5  ;;  %v6826_v5 = vld [vmem:[#allocation2 + $0x54] sm:$0xff]   ;;  %v1421_v59 = vrot.slane %v1419_v19, 1 }
  0xea   : > { %2795 = vmatprep.mubr.bf16.mxu1 %v1350_v44  ;;  %v1383_v44 = vshll.u32 %v6655_v56, 16  ;;  %v3274_v56 = vrot.slane %v3272_v40, 1  ;;  %v6834_v40 = vld [vmem:[#allocation2 + $0x5c] ss:$0 sps:$4 sm:$0x11]   ;;  %v3294_v50 = vshrl.u32 %v6826_v5, 16 }
  0xeb   : > { %v1373_v27 = vrot.slane %v1371_v63, 1  ;;  %v3267_v62 = vrot.slane %v3265_v46, 1  ;;  %v1400_v46 = vshrl.u32 %v6686_v28, 16 }
  0xec   : > { %v1385_v11 = vrot.slane %v1383_v44, 1  ;;  %v3275_v20 = vor.u32 %v3274_v56, %v3270_v21 }
  0xed   : > { %v3268_v24 = vsel %vm1266_vm8, %v3263_v42, %v3267_v62  ;;  %v3291_v62 = vrot.slane %v3289_v45, 1 }
  0xee   : > { %5651 = vmatmul.mubr.bf16.gmra.mxu0 %v1523_v38  ;;  %v1386_v3 = vsel %vm1266_vm8, %v1381_v47, %v1385_v11  ;;  %v1405_v11 = vor.u32 %v1404_v60, %v1400_v46  ;;  %v1424_v46 = vshrl.u32 %v6707_v49, 16  ;;  %v1428_v60 = vrot.slane %v1426_v33, 1  ;;  %v6890_v33 = vld [vmem:[#allocation2 + $0x80] ss:$0 sps:$4 sm:$0x11]  }
  0xef   : > { %3730 = vmatprep.mubr.bf16.mxu0 %v3244_v12 }
  0xf1   : > { %2796 = vmatmul.mubr.bf16.gmra.mxu1 %v6588_v23  ;;  %v1374_v23 = vsel %vm1266_vm8, %v1369_v26, %v1373_v27  ;;  %v3280_v26 = vsel %vm1266_vm8, %v3275_v20, %v3279_v37  ;;  %v3286_v27 = vrot.slane %v3284_v34, 1 }
  0xf2   : > { %2803 = vmatprep.mubr.bf16.mxu1 %v1362_v18 }
  0xf3   : > { %v3287_v42 = vor.u32 %v3286_v27, %v3282_v17 }
  0xf5   : > { %v3292_v56 = vsel %vm1266_vm8, %v3287_v42, %v3291_v62 }
  0xf6   : > { %3731 = vmatmul.mubr.bf16.vlgmr.msra.gmra.mxu0 %v6722_v55  ;;  %v1390_v55 = vshll.u32 %v6659_v43, 16 }
  0xf7   : > { %3738 = vmatprep.mubr.bf16.mxu0 %v3256_v14 }
  0xf8   : > { %v1392_v38 = vrot.slane %v1390_v55, 1  ;;  %v1409_v55 = vrot.slane %v1407_v15, 1  ;;  %v1431_v15 = vshll.u32 %v6710_v7, 16 }
  0xf9   : > { %2804 = vmatmul.mubr.bf16.gmra.mxu1 %v6611_v39 }
  0xfa   : > { %2811 = vmatprep.mubr.bf16.mxu1 %v1374_v23  ;;  %v1393_v18 = vor.u32 %v1392_v38, %v1388_v6  ;;  %v1412_v6 = vshrl.u32 %v6693_v0, 16  ;;  %v1416_v38 = vrot.slane %v1414_v25, 1  ;;  %v1410_v20 = vsel %vm1266_vm8, %v1405_v11, %v1409_v55 }
  0xfb   : > { %v5166_v35 = vpop.f32.mrf.mxu0  ;;  %v1433_v7 = vrot.slane %v1431_v15, 1  ;;  %v3337_v15 = vshll.u32 %v6890_v33, 16 }
  0xfc   : > { %v1398_v23 = vsel %vm1266_vm8, %v1393_v18, %v1397_v48  ;;  %v1417_v48 = vor.u32 %v1416_v38, %v1412_v6 }
  0xfd   : > { %v5167_v54 = vpop.f32.mrf.mxu0 }
  0xfe   : > { %v5238_v57 = vpop.f32.mrf.mxu1  ;;  %v6806_v58 = vadd.f32 %v5167_v54, %v5166_v35  ;;  %3739 = vmatmul.mubr.bf16.gmra.mxu0 %v6735_v10  ;;  %v3296_v35 = vshll.u32 %v6826_v5, 16  ;;  %v1422_v42 = vsel %vm1266_vm8, %v1417_v48, %v1421_v59 }
  0xff   : > { %v5169_v39 = vpop.f32.mrf.mxu0  ;;  %3746 = vmatprep.mubr.bf16.mxu0 %v3268_v24 }
 0x100   : > { %v5239_v12 = vpop.f32.mrf.mxu1  ;;  %v3298_v54 = vrot.slane %v3296_v35, 1 }
 0x101   : > { %v6815_v53 = vadd.f32 %v5239_v12, %v5238_v57  ;;  %v5170_v4 = vpop.f32.mrf.mxu0  ;;  %2812 = vmatmul.mubr.bf16.gmra.mxu1 %v6619_v22  ;;  %v3301_v57 = vshll.u32 %v6834_v40, 16 }
 0x102   : > { %v5241_v10 = vpop.f32.mrf.mxu1  ;;  %v6817_v63 = vadd.f32 %v5170_v4, %v5169_v39  ;;  %2819 = vmatprep.mubr.bf16.mxu1 %v1386_v3  ;;  %v6844_v39 = vld [vmem:[#allocation2 + $0x60] sm:$0xff]   ;;  %v3299_v37 = vor.u32 %v3298_v54, %v3294_v50  ;;  %v6852_v4 = vld [vmem:[#allocation2 + $0x68] ss:$0 sps:$4 sm:$0x11]   ;;  %v1438_v50 = vshll.u32 %v6716_v32, 16 }
 0x103   : > { %v3303_v34 = vrot.slane %v3301_v57, 1  ;;  %v3313_v45 = vshll.u32 %v6852_v4, 16 }
 0x104   : > { %v5242_v1 = vpop.f32.mrf.mxu1 }
 0x105   : > { %v6824_v14 = vadd.f32 %v5242_v1, %v5241_v10  ;;  %v5172_v8 = vpop.f32.mrf.mxu0  ;;  %v3308_v10 = vshll.u32 %v6844_v39, 16  ;;  %v3304_v1 = vsel %vm1266_vm8, %v3299_v37, %v3303_v34  ;;  %v3315_v35 = vrot.slane %v3313_v45, 1 }
 0x106   : > { %3747 = vmatmul.mubr.bf16.gmra.mxu0 %v6751_v30  ;;  %v1440_v37 = vrot.slane %v1438_v50, 1  ;;  %v1443_v34 = vshll.u32 %v6719_v51, 16  ;;  %v1450_v45 = vshll.u32 %v6742_v61, 16 }
 0x107   : > { %v5173_v22 = vpop.f32.mrf.mxu0  ;;  %3754 = vmatprep.mubr.bf16.mxu0 %v3280_v26  ;;  %v3306_v26 = vshrl.u32 %v6844_v39, 16  ;;  %v3310_v27 = vrot.slane %v3308_v10, 1 }
 0x108   : > { %v6831_v44 = vadd.f32 %v5173_v22, %v5172_v8  ;;  %v6862_v8 = vld [vmem:[#allocation2 + $0x6c] sm:$0xff]  }
 0x109   : > { %v5175_v47 = vpop.f32.mrf.mxu0  ;;  %2820 = vmatmul.mubr.bf16.gmra.mxu1 %v6653_v2  ;;  %v3311_v62 = vor.u32 %v3310_v27, %v3306_v26  ;;  %v3320_v11 = vshll.u32 %v6862_v8, 16  ;;  %v3318_v6 = vshrl.u32 %v6862_v8, 16  ;;  %v1445_v27 = vrot.slane %v1443_v34, 1  ;;  %v6915_v34 = vld [vmem:[#allocation2 + $0x90] sm:$0xff]  }
 0x10a   : > { %2827 = vmatprep.mubr.bf16.mxu1 %v1398_v23 }
 0x10b   : > { %v5176_v30 = vpop.f32.mrf.mxu0  ;;  %v3316_v57 = vsel %vm1266_vm8, %v3311_v62, %v3315_v35  ;;  %v3322_v38 = vrot.slane %v3320_v11, 1  ;;  %v1448_v62 = vshrl.u32 %v6742_v61, 16  ;;  %v1452_v35 = vrot.slane %v1450_v45, 1 }
 0x10c   : > { %v6839_v21 = vadd.f32 %v5176_v30, %v5175_v47  ;;  %v6870_v30 = vld [vmem:[#allocation2 + $0x74] ss:$0 sps:$4 sm:$0x11]   ;;  %v3356_v45 = vshll.u32 %v6915_v34, 16 }
 0x10d   : > { %v5244_v24 = vpop.f32.mrf.mxu1  ;;  %v3325_v19 = vshll.u32 %v6870_v30, 16  ;;  %v3323_v48 = vor.u32 %v3322_v38, %v3318_v6  ;;  %v1453_v6 = vor.u32 %v1452_v35, %v1448_v62 }
 0x10e   : > { %3755 = vmatmul.mubr.bf16.gmra.mxu0 %v6753_v36 }
 0x10f   : > { %v5245_v3 = vpop.f32.mrf.mxu1  ;;  %3762 = vmatprep.mubr.bf16.mxu0 %v3292_v56  ;;  %v1429_v56 = vor.u32 %v1428_v60, %v1424_v46  ;;  %v3327_v59 = vrot.slane %v3325_v19, 1 }
 0x110   : > { %v6847_v2 = vadd.f32 %v5245_v3, %v5244_v24 }
 0x111   : > { %v5247_v12 = vpop.f32.mrf.mxu1  ;;  %2828 = vmatmul.mubr.bf16.gmra.mxu1 %v6659_v43  ;;  %v3328_v51 = vsel %vm1266_vm8, %v3323_v48, %v3327_v59 }
 0x112   : > { %2835 = vmatprep.mubr.bf16.mxu1 %v1410_v20  ;;  %v1436_v20 = vshrl.u32 %v6716_v32, 16 }
 0x113   : > { %v5248_v18 = vpop.f32.mrf.mxu1 }
 0x114   : > { %v6856_v36 = vadd.f32 %v5248_v18, %v5247_v12  ;;  %v5178_v17 = vpop.f32.mrf.mxu0  ;;  %v6882_v12 = vld [vmem:[#allocation2 + $0x78] sm:$0xff]   ;;  %v1434_v18 = vsel %vm1266_vm8, %v1429_v56, %v1433_v7  ;;  %v1441_v26 = vor.u32 %v1440_v37, %v1436_v20  ;;  %v3339_v56 = vrot.slane %v3337_v15, 1  ;;  %v6906_v7 = vld [vmem:[#allocation2 + $0x8c] ss:$0 sps:$4 sm:$0x11]  }
 0x115   : > { %v3330_v46 = vshrl.u32 %v6882_v12, 16  ;;  %v3349_v37 = vshll.u32 %v6906_v7, 16 }
 0x116   : > { %v5179_v22 = vpop.f32.mrf.mxu0  ;;  %3763 = vmatmul.mubr.bf16.gmra.mxu0 %v6804_v52  ;;  %v1446_v11 = vsel %vm1266_vm8, %v1441_v26, %v1445_v27  ;;  %v6921_v27 = vld [vmem:[#allocation2 + $0x98] ss:$0 sps:$4 sm:$0x11]  }
 0x117   : > { %v6865_v43 = vadd.f32 %v5179_v22, %v5178_v17  ;;  %3770 = vmatprep.mubr.bf16.mxu0 %v3304_v1  ;;  %v3332_v17 = vshll.u32 %v6882_v12, 16  ;;  %v3351_v26 = vrot.slane %v3349_v37, 1 }
 0x118   : > { %v5181_v23 = vpop.f32.mrf.mxu0 }
 0x119   : > { %v5250_v47 = vpop.f32.mrf.mxu1  ;;  %2836 = vmatmul.mubr.bf16.gmra.mxu1 %v6686_v28  ;;  %v3334_v60 = vrot.slane %v3332_v17, 1 }
 0x11a   : > { %v5182_v55 = vpop.f32.mrf.mxu0  ;;  %2843 = vmatprep.mubr.bf16.mxu1 %v1422_v42 }
 0x11b   : > { %v5251_v25 = vpop.f32.mrf.mxu1  ;;  %v6874_v24 = vadd.f32 %v5182_v55, %v5181_v23  ;;  %v6898_v23 = vld [vmem:[#allocation2 + $0x84] sm:$0xff]  }
 0x11c   : > { %v6877_v54 = vadd.f32 %v5251_v25, %v5250_v47  ;;  %v1455_v47 = vshll.u32 %v6739_v16, 16  ;;  %v3335_v25 = vor.u32 %v3334_v60, %v3330_v46  ;;  %v3344_v50 = vshll.u32 %v6898_v23, 16 }
 0x11d   : > { %v5253_v3 = vpop.f32.mrf.mxu1 }
 0x11e   : > { %3771 = vmatmul.mubr.bf16.gmra.mxu0 %v6826_v5  ;;  %v1457_v38 = vrot.slane %v1455_v47, 1  ;;  %v3340_v16 = vsel %vm1266_vm8, %v3335_v25, %v3339_v56  ;;  %v3346_v20 = vrot.slane %v3344_v50, 1  ;;  %v3354_v47 = vshrl.u32 %v6915_v34, 16  ;;  %v6935_v25 = vld [vmem:[#allocation2 + $0x9c] sm:$0xff]  }
 0x11f   : > { %v5254_v28 = vpop.f32.mrf.mxu1  ;;  %3778 = vmatprep.mubr.bf16.mxu0 %v3316_v57 }
 0x120   : > { %v6887_v10 = vadd.f32 %v5254_v28, %v5253_v3  ;;  %v3342_v28 = vshrl.u32 %v6898_v23, 16  ;;  %v1458_v59 = vsel %vm1266_vm8, %v1453_v6, %v1457_v38 }
 0x121   : > { %2844 = vmatmul.mubr.bf16.gmra.mxu1 %v6693_v0 }
 0x122   : > { %2851 = vmatprep.mubr.bf16.mxu1 %v1434_v18 }
 0x124   : > { %v5184_v1 = vpop.f32.mrf.mxu0 }
 0x126   : > { %v5185_v22 = vpop.f32.mrf.mxu0  ;;  %3779 = vmatmul.mubr.bf16.gmra.mxu0 %v6844_v39 }
 0x127   : > { %v6900_v42 = vadd.f32 %v5185_v22, %v5184_v1  ;;  %3786 = vmatprep.mubr.bf16.mxu0 %v3328_v51  ;;  %v3347_v1 = vor.u32 %v3346_v20, %v3342_v28  ;;  %v3368_v28 = vshll.u32 %v6935_v25, 16 }
 0x128   : > { %v5187_v0 = vpop.f32.mrf.mxu0 }
 0x129   : > { %2852 = vmatmul.mubr.bf16.gmra.mxu1 %v6707_v49  ;;  %v3352_v35 = vsel %vm1266_vm8, %v3347_v1, %v3351_v26  ;;  %v6960_v1 = vld [vmem:[#allocation2 + $0xa8] sm:$0xff]  }
 0x12a   : > { %v5188_v55 = vpop.f32.mrf.mxu0  ;;  %2859 = vmatprep.mubr.bf16.mxu1 %v1446_v11  ;;  %v3358_v11 = vrot.slane %v3356_v45, 1 }
 0x12b   : > { %v6909_v57 = vadd.f32 %v5188_v55, %v5187_v0  ;;  %v5256_v3 = vpop.f32.mrf.mxu1  ;;  %v3361_v55 = vshll.u32 %v6921_v27, 16 }
 0x12c   : > { %v3359_v38 = vor.u32 %v3358_v11, %v3354_v47 }
 0x12d   : > { %v5257_v19 = vpop.f32.mrf.mxu1 }
 0x12e   : > { %v6917_v18 = vadd.f32 %v5257_v19, %v5256_v3  ;;  %3787 = vmatmul.mubr.bf16.gmra.mxu0 %v6862_v8  ;;  %v3363_v19 = vrot.slane %v3361_v55, 1  ;;  %v3453_v55 = vrot.slane %v6804_v52, 1 }
 0x12f   : > { %v5259_v48 = vpop.f32.mrf.mxu1  ;;  %3794 = vmatprep.mubr.bf16.mxu0 %v3340_v16  ;;  %v6946_v16 = vld [vmem:[#allocation2 + $0xa4] ss:$0 sps:$4 sm:$0x11]  }
 0x130   : > { %v5190_v49 = vpop.f32.mrf.mxu0 }
 0x131   : > { %v5260_v17 = vpop.f32.mrf.mxu1  ;;  %2860 = vmatmul.mubr.bf16.gmra.mxu1 %v6716_v32 }
 0x132   : > { %v6924_v51 = vadd.f32 %v5260_v17, %v5259_v48  ;;  %v5191_v22 = vpop.f32.mrf.mxu0  ;;  %2867 = vmatprep.mubr.bf16.mxu1 %v1458_v59  ;;  %v3364_v48 = vsel %vm1266_vm8, %v3359_v38, %v3363_v19  ;;  %v3370_v59 = vrot.slane %v3368_v28, 1  ;;  %v3373_v17 = vshll.u32 %v6946_v16, 16 }
 0x133   : > { %v5576_v46 = vpop.f32.mrf.mxu1  ;;  %v6927_v60 = vadd.f32 %v5191_v22, %v5190_v49  ;;  %v3366_v49 = vshrl.u32 %v6935_v25, 16 }
 0x134   : > { %v6930_v15 = vadd.f32 %v5576_v46, %v6831_v44  ;;  %v5193_v0 = vpop.f32.mrf.mxu0 }
 0x135   : > { %v2444_v62 = vpop.f32.mrf.mxu1  ;;  %v3371_v46 = vor.u32 %v3370_v59, %v3366_v49 }
 0x136   : > { %v6938_v32 = vadd.f32 %v6806_v58, %v2444_v62  ;;  %v5194_v56 = vpop.f32.mrf.mxu0  ;;  %3795 = vmatmul.mubr.bf16.gmra.mxu0 %v6882_v12  ;;  %v6969_v62 = vld [vmem:[#allocation2 + $0xb0] ss:$0 sps:$4 sm:$0x11]  }
 0x137   : > { %v5577_v50 = vpop.f32.mrf.mxu1  ;;  %v6941_v44 = vadd.f32 %v5194_v56, %v5193_v0  ;;  %3802 = vmatprep.mubr.bf16.mxu0 %v3352_v35  ;;  %v3375_v0 = vrot.slane %v3373_v17, 1  ;;  %v3380_v35 = vshll.u32 %v6960_v1, 16  ;;  %v3454_v56 = vrot.slane %v6812_v9, 1 }
 0x138   : > { %v6944_v3 = vadd.f32 %v5577_v50, %v6839_v21 }
 0x139   : > { %v2447_v6 = vpop.f32.mrf.mxu1  ;;  %2868 = vmatmul.mubr.bf16.gmra.mxu1 %v6742_v61  ;;  %v3376_v28 = vsel %vm1266_vm8, %v3371_v46, %v3375_v0  ;;  %v3455_v9 = vsel %vm1475_vm9, %v3453_v55, %v3454_v56  ;;  %v3456_v46 = vrot.slane %v6826_v5, 1 }
 0x13a   : > { %v6950_v58 = vadd.f32 %v6817_v63, %v2447_v6  ;;  %5670 = vmatprep.mubr.bf16.mxu1 %v6758_v31  ;;  %v3378_v6 = vshrl.u32 %v6960_v1, 16 }
 0x13b   : > { %v5580_v20 = vpop.f32.mrf.mxu1 }
 0x13c   : > { %v6955_v37 = vadd.f32 %v5580_v20, %v6900_v42  ;;  %v3385_v20 = vshll.u32 %v6969_v62, 16 }
 0x13d   : > { %v2460_v21 = vpop.f32.mrf.mxu1 }
 0x13e   : > { %v5196_v63 = vpop.f32.mrf.mxu0  ;;  %v6963_v26 = vadd.f32 %v6865_v43, %v2460_v21  ;;  %3803 = vmatmul.mubr.bf16.gmra.mxu0 %v6898_v23 }
 0x13f   : > { %v5581_v61 = vpop.f32.mrf.mxu1  ;;  %3810 = vmatprep.mubr.bf16.mxu0 %v3364_v48 }
 0x140   : > { %v5197_v31 = vpop.f32.mrf.mxu0  ;;  %v6967_v42 = vadd.f32 %v5581_v61, %v6909_v57  ;;  %v3387_v61 = vrot.slane %v3385_v20, 1 }
 0x141   : > { %v5198_v45 = vadd.f32 %v5197_v31, %v5196_v63  ;;  %v2463_v22 = vpop.f32.mrf.mxu1  ;;  %5671 = vmatmul.mubr.bf16.vlgmr.msra.gmra.mxu1 %v6761_v29  ;;  %v6984_v29 = vld [vmem:[#allocation2 + $0xb4] sm:$0xff]   ;;  %v6993_v31 = vld [vmem:[#allocation2 + $0xbc] ss:$0 sps:$4 sm:$0x11]  }
 0x142   : > { %v5199_v47 = vpop.f32.mrf.mxu0  ;;  %v6973_v43 = vadd.f32 %v6874_v24, %v2463_v22  ;;  %5674 = vmatprep.mubr.bf16.mxu1 %v6774_v13  ;;  %v3382_v24 = vrot.slane %v3380_v35, 1  ;;  %v3457_v35 = vrot.slane %v6834_v40, 1  ;;  %v3390_v55 = vshrl.u32 %v6984_v29, 16 }
 0x143   : > { %v5584_v11 = vpop.f32.mrf.mxu1 }
 0x144   : > { %v5200_v57 = vpop.f32.mrf.mxu0  ;;  %v6979_v50 = vadd.f32 %v5584_v11, %v5198_v45  ;;  %v3383_v63 = vor.u32 %v3382_v24, %v3378_v6  ;;  %v3392_v45 = vshll.u32 %v6984_v29, 16  ;;  %v3459_v11 = vrot.slane %v6844_v39, 1 }
 0x145   : > { %v5201_v38 = vadd.f32 %v5200_v57, %v5199_v47  ;;  %v2476_v19 = vpop.f32.mrf.mxu1  ;;  %v3460_v57 = vrot.slane %v6852_v4, 1  ;;  %v3458_v39 = vsel %vm1475_vm9, %v3456_v46, %v3457_v35  ;;  %v3465_v35 = vrot.slane %v6882_v12, 1 }
 0x146   : > { %v5202_v21 = vpop.f32.mrf.mxu0  ;;  %v6987_v13 = vadd.f32 %v6927_v60, %v2476_v19  ;;  %3811 = vmatmul.mubr.bf16.gmra.mxu0 %v6915_v34  ;;  %v7007_v19 = vld [vmem:[#allocation2 + $0xc0] sm:$0xff]  }
 0x147   : > { %v5585_v52 = vpop.f32.mrf.mxu1  ;;  %3818 = vmatprep.mubr.bf16.mxu0 %v3376_v28  ;;  %v3461_v4 = vsel %vm1475_vm9, %v3459_v11, %v3460_v57  ;;  %v3402_v11 = vshrl.u32 %v7007_v19, 16 }
 0x148   : > { %v5203_v48 = vpop.f32.mrf.mxu0  ;;  %v6991_v49 = vadd.f32 %v5585_v52, %v5201_v38  ;;  %v3394_v38 = vrot.slane %v3392_v45, 1 }
 0x149   : > { %v5204_v59 = vadd.f32 %v5203_v48, %v5202_v21  ;;  %v2479_v17 = vpop.f32.mrf.mxu1  ;;  %5675 = vmatmul.mubr.bf16.gmra.mxu1 %v6777_v41  ;;  %v3397_v41 = vshll.u32 %v6993_v31, 16  ;;  %v7014_v48 = vld [vmem:[#allocation2 + $0xc8] ss:$0 sps:$4 sm:$0x11]  }
 0x14a   : > { %v5205_v22 = vpop.f32.mrf.mxu0  ;;  %v6997_v60 = vadd.f32 %v6941_v44, %v2479_v17  ;;  %5678 = vmatprep.mubr.bf16.mxu1 %v3455_v9  ;;  %v3388_v44 = vsel %vm1266_vm8, %v3383_v63, %v3387_v61  ;;  %v3395_v52 = vor.u32 %v3394_v38, %v3390_v55  ;;  %v3404_v17 = vshll.u32 %v7007_v19, 16 }
 0x14b   : > { %v5588_v0 = vpop.f32.mrf.mxu1  ;;  %v3399_v9 = vrot.slane %v3397_v41, 1  ;;  %v3462_v61 = vrot.slane %v6862_v8, 1 }
 0x14c   : > { %v5206_v47 = vpop.f32.mrf.mxu0 }
 0x14d   : > { %v5207_v56 = vadd.f32 %v5206_v47, %v5205_v22  ;;  %v2492_v6 = vpop.f32.mrf.mxu1  ;;  %v3463_v22 = vrot.slane %v6870_v30, 1  ;;  %v3466_v47 = vrot.slane %v6890_v33, 1  ;;  %v3400_v55 = vsel %vm1266_vm8, %v3395_v52, %v3399_v9 }
 0x14e   : > { %v5208_v5 = vpop.f32.mrf.mxu0  ;;  %v7009_v28 = vadd.f32 %v5204_v59, %v2492_v6  ;;  %3819 = vmatmul.mubr.bf16.gmra.mxu0 %v6935_v25  ;;  %v3409_v6 = vshll.u32 %v7014_v48, 16  ;;  %v3469_v9 = vrot.slane %v6906_v7, 1 }
 0x14f   : > { %v5589_v40 = vpop.f32.mrf.mxu1  ;;  %3826 = vmatprep.mubr.bf16.mxu0 %v3388_v44  ;;  %v7028_v44 = vld [vmem:[#allocation2 + $0xcc] sm:$0xff]   ;;  %v3464_v30 = vsel %vm1475_vm9, %v3462_v61, %v3463_v22  ;;  %v3467_v12 = vsel %vm1475_vm9, %v3465_v35, %v3466_v47  ;;  %v3471_v61 = vrot.slane %v6915_v34, 1  ;;  %v3472_v22 = vrot.slane %v6921_v27, 1 }
 0x150   : > { %v5209_v24 = vpop.f32.mrf.mxu0 }
 0x151   : > { %v5210_v20 = vadd.f32 %v5209_v24, %v5208_v5  ;;  %v2495_v21 = vpop.f32.mrf.mxu1  ;;  %5679 = vmatmul.mubr.bf16.gmra.mxu1 %v3458_v39  ;;  %v3411_v39 = vrot.slane %v3409_v6, 1  ;;  %v3416_v24 = vshll.u32 %v7028_v44, 16  ;;  %v3473_v34 = vsel %vm1475_vm9, %v3471_v61, %v3472_v22 }
 0x152   : > { %v5211_v63 = vpop.f32.mrf.mxu0  ;;  %v7017_v59 = vadd.f32 %v5207_v56, %v2495_v21  ;;  %5682 = vmatprep.mubr.bf16.mxu1 %v3461_v4  ;;  %v3406_v56 = vrot.slane %v3404_v17, 1  ;;  %v7035_v4 = vld [vmem:[#allocation2 + $0xd4] ss:$0 sps:$4 sm:$0x11]  }
 0x153   : > { %v7020_v45 = vadd.f32 %v5588_v0, %v5210_v20 }
 0x154   : > { %v5212_v46 = vpop.f32.mrf.mxu0  ;;  %v3407_v5 = vor.u32 %v3406_v56, %v3402_v11  ;;  %v3418_v11 = vrot.slane %v3416_v24, 1 }
 0x155   : > { %v5213_v57 = vadd.f32 %v5212_v46, %v5211_v63  ;;  %v3414_v46 = vshrl.u32 %v7028_v44, 16 }
 0x156   : > { %v5214_v8 = vpop.f32.mrf.mxu0  ;;  %3827 = vmatmul.mubr.bf16.gmra.mxu0 %v6960_v1  ;;  %v3412_v47 = vsel %vm1266_vm8, %v3407_v5, %v3411_v39  ;;  %v3475_v5 = vrot.slane %v6946_v16, 1 }
 0x157   : > { %v7030_v0 = vadd.f32 %v5589_v40, %v5213_v57  ;;  %v5592_v33 = vpop.f32.mrf.mxu1  ;;  %3834 = vmatprep.mubr.bf16.mxu0 %v3400_v55  ;;  %v3468_v40 = vrot.slane %v6898_v23, 1  ;;  %v3421_v57 = vshll.u32 %v7035_v4, 16 }
 0x158   : > { %v5215_v38 = vpop.f32.mrf.mxu0 }
 0x159   : > { %v5216_v41 = vadd.f32 %v5215_v38, %v5214_v8  ;;  %v2508_v20 = vpop.f32.mrf.mxu1  ;;  %5683 = vmatmul.mubr.bf16.gmra.mxu1 %v3464_v30  ;;  %v3470_v7 = vsel %vm1475_vm9, %v3468_v40, %v3469_v9  ;;  %v3419_v8 = vor.u32 %v3418_v11, %v3414_v46  ;;  %v3423_v30 = vrot.slane %v3421_v57, 1 }
 0x15a   : > { %v5217_v21 = vpop.f32.mrf.mxu0  ;;  %5686 = vmatprep.mubr.bf16.mxu1 %v3467_v12  ;;  %v3483_v11 = vrot.slane %v7007_v19, 1  ;;  %v3484_v57 = vrot.slane %v7014_v48, 1 }
 0x15b   : > { %v7039_v52 = vadd.f32 %v5216_v41, %v2508_v20  ;;  %v5593_v17 = vpop.f32.mrf.mxu1  ;;  %v3474_v41 = vrot.slane %v6935_v25, 1  ;;  %v3477_v20 = vrot.slane %v6960_v1, 1  ;;  %v3424_v40 = vsel %vm1266_vm8, %v3419_v8, %v3423_v30 }
 0x15c   : > { %v5218_v63 = vpop.f32.mrf.mxu0  ;;  %v3480_v1 = vrot.slane %v6984_v29, 1 }
 0x15d   : > { %v5219_v35 = vadd.f32 %v5218_v63, %v5217_v21  ;;  %v2511_v23 = vpop.f32.mrf.mxu1  ;;  %v3478_v21 = vrot.slane %v6969_v62, 1  ;;  %v3481_v62 = vrot.slane %v6993_v31, 1 }
 0x15e   : > { %v5220_v55 = vpop.f32.mrf.mxu0  ;;  %3835 = vmatmul.mubr.bf16.gmra.mxu0 %v6984_v29  ;;  %v3485_v29 = vsel %vm1475_vm9, %v3483_v11, %v3484_v57 }
 0x15f   : > { %v7047_v56 = vadd.f32 %v5219_v35, %v2511_v23  ;;  %3842 = vmatprep.mubr.bf16.mxu0 %v3412_v47  ;;  %v3479_v25 = vsel %vm1475_vm9, %v3477_v20, %v3478_v21 }
 0x160   : > { %v5221_v6 = vpop.f32.mrf.mxu0 }
 0x161   : > { %v5222_v27 = vadd.f32 %v5221_v6, %v5220_v55  ;;  %5687 = vmatmul.mubr.bf16.gmra.mxu1 %v3470_v7  ;;  %v3482_v6 = vsel %vm1475_vm9, %v3480_v1, %v3481_v62 }
 0x162   : > { %v5223_v12 = vpop.f32.mrf.mxu0  ;;  %5690 = vmatprep.mubr.bf16.mxu1 %v3473_v34 }
 0x163   : > { %v7052_v38 = vadd.f32 %v5592_v33, %v5222_v27  ;;  %v3476_v33 = vsel %vm1475_vm9, %v3474_v41, %v3475_v5  ;;  %v3487_v41 = vrot.slane %v7035_v4, 1 }
 0x164   : > { %v5224_v39 = vpop.f32.mrf.mxu0 }
 0x165   : > { %v5225_v24 = vadd.f32 %v5224_v39, %v5223_v12  ;;  %v3486_v12 = vrot.slane %v7028_v44, 1 }
 0x166   : > { %v5226_v9 = vpop.f32.mrf.mxu0  ;;  %3843 = vmatmul.mubr.bf16.gmra.mxu0 %v7007_v19 }
 0x167   : > { %v7059_v63 = vadd.f32 %v5593_v17, %v5225_v24  ;;  %3850 = vmatprep.mubr.bf16.mxu0 %v3424_v40 }
 0x168   : > { %v5227_v61 = vpop.f32.mrf.mxu0 }
 0x169   : > { %v5228_v16 = vadd.f32 %v5227_v61, %v5226_v9  ;;  %v5596_v46 = vpop.f32.mrf.mxu1  ;;  %5691 = vmatmul.mubr.bf16.gmra.mxu1 %v3476_v33 }
 0x16a   : > { %v5229_v22 = vpop.f32.mrf.mxu0  ;;  %5694 = vmatprep.mubr.bf16.mxu1 %v3479_v25 }
 0x16b   : > { %v2524_v17 = vpop.f32.mrf.mxu1 }
 0x16c   : > { %v5230_v35 = vpop.f32.mrf.mxu0  ;;  %v7068_v23 = vadd.f32 %v5228_v16, %v2524_v17 }
 0x16d   : > { %v5231_v47 = vadd.f32 %v5230_v35, %v5229_v22  ;;  %v5597_v55 = vpop.f32.mrf.mxu1 }
 0x16e   : > { %v5232_v7 = vpop.f32.mrf.mxu0  ;;  %3851 = vmatmul.mubr.bf16.gmra.mxu0 %v7028_v44 }
 0x16f   : > { %v2527_v34 = vpop.f32.mrf.mxu1 }
 0x170   : > { %v5233_v27 = vpop.f32.mrf.mxu0  ;;  %v7073_v31 = vadd.f32 %v5231_v47, %v2527_v34 }
 0x171   : > { %v5234_v8 = vadd.f32 %v5233_v27, %v5232_v7  ;;  %v5600_v30 = vpop.f32.mrf.mxu1  ;;  %5695 = vmatmul.mubr.bf16.gmra.mxu1 %v3482_v6 }
 0x172   : > { %v5235_v19 = vpop.f32.mrf.mxu0  ;;  %v7076_v48 = vadd.f32 %v5600_v30, %v6847_v2  ;;  %5698 = vmatprep.mubr.bf16.mxu1 %v3485_v29  ;;  %v3488_v2 = vsel %vm1475_vm9, %v3486_v12, %v3487_v41 }
 0x173   : > { %v7080_v5 = vadd.f32 %v5596_v46, %v5234_v8  ;;  %v2540_v39 = vpop.f32.mrf.mxu1 }
 0x174   : > { %v5236_v24 = vpop.f32.mrf.mxu0  ;;  %v7083_v20 = vadd.f32 %v6815_v53, %v2540_v39 }
 0x175   : > { %v5237_v21 = vadd.f32 %v5236_v24, %v5235_v19  ;;  %v5601_v40 = vpop.f32.mrf.mxu1 }
 0x176   : > { %v5624_v9 = vpop.f32.mrf.mxu0  ;;  %v7086_v33 = vadd.f32 %v5601_v40, %v6856_v36 }
 0x177   : > { %v7089_v61 = vadd.f32 %v5597_v55, %v5237_v21  ;;  %v2543_v44 = vpop.f32.mrf.mxu1 }
 0x178   : > { %v2910_v25 = vpop.f32.mrf.mxu0  ;;  %v7092_v4 = vadd.f32 %v6824_v14, %v2543_v44 }
 0x179   : > { %v5604_v16 = vpop.f32.mrf.mxu1  ;;  %5699 = vmatmul.mubr.bf16.gmra.mxu1 %v3488_v2 }
 0x17a   : > { %v5625_v22 = vpop.f32.mrf.mxu0  ;;  %v7095_v53 = vadd.f32 %v5604_v16, %v6917_v18 }
 0x17b   : > { %v2556_v46 = vpop.f32.mrf.mxu1 }
 0x17c   : > { %v2913_v1 = vpop.f32.mrf.mxu0  ;;  %v7098_v36 = vadd.f32 %v6877_v54, %v2556_v46 }
 0x17d   : > { %v5605_v62 = vpop.f32.mrf.mxu1 }
 0x17e   : > { %v5628_v35 = vpop.f32.mrf.mxu0  ;;  %v7101_v17 = vadd.f32 %v5605_v62, %v6924_v51 }
 0x17f   : > { %v2559_v47 = vpop.f32.mrf.mxu1 }
 0x180   : > { %7529 = vst [vmem:[#allocation3_spill] sm:$0xff] %v7101_v17  ;;  %v2926_v11 = vpop.f32.mrf.mxu0  ;;  %v7104_v14 = vadd.f32 %v6887_v10, %v2559_v47 }
 0x181   : > { %v5302_v57 = vpop.f32.mrf.mxu1 }
 0x182   : > { %v5629_v55 = vpop.f32.mrf.mxu0 }
 0x183   : > { %v5303_v7 = vpop.f32.mrf.mxu1 }
 0x184   : > { %v2929_v18 = vpop.f32.mrf.mxu0  ;;  %v5304_v6 = vadd.f32 %v5303_v7, %v5302_v57 }
 0x185   : > { %v5305_v34 = vpop.f32.mrf.mxu1 }
 0x186   : > { %v7106_v29 = vpop.f32.mrf.mxu0  ;;  %v2750_v54 = vadd.f32 %v5304_v6, %v6938_v32 }
 0x187   : > { %v5306_v27 = vpop.f32.mrf.mxu1 }
 0x188   : > { %v2942_v8 = vpop.f32.mrf.mxu0  ;;  %v7109_v30 = vadd.f32 %v2910_v25, %v2750_v54  ;;  %v5307_v51 = vadd.f32 %v5306_v27, %v5305_v34 }
 0x189   : > { %v5308_v19 = vpop.f32.mrf.mxu1 }
 0x18a   : > { %v7111_v12 = vpop.f32.mrf.mxu0  ;;  %v2753_v10 = vadd.f32 %v5307_v51, %v6950_v58 }
 0x18b   : > { %v5309_v41 = vpop.f32.mrf.mxu1 }
 0x18c   : > { %v2945_v39 = vpop.f32.mrf.mxu0  ;;  %v7114_v24 = vadd.f32 %v2913_v1, %v2753_v10  ;;  %v5310_v21 = vadd.f32 %v5309_v41, %v5308_v19 }
 0x18d   : > { %v5311_v40 = vpop.f32.mrf.mxu1 }
 0x18e   : > { %v7116_v2 = vpop.f32.mrf.mxu0  ;;  %v2758_v32 = vadd.f32 %v5310_v21, %v6930_v15 }
 0x18f   : > { %v5312_v44 = vpop.f32.mrf.mxu1 }
 0x190   : > { %v7119_v16 = vpop.f32.mrf.mxu0  ;;  %v5313_v25 = vadd.f32 %v5312_v44, %v5311_v40  ;;  %v7121_v46 = vadd.f32 %v5624_v9, %v2758_v32 }
 0x191   : > { %v5314_v62 = vpop.f32.mrf.mxu1 }
 0x192   : > { %v7123_v47 = vpop.f32.mrf.mxu0  ;;  %v2761_v58 = vadd.f32 %v5313_v25, %v6944_v3 }
 0x193   : > { %v5315_v57 = vpop.f32.mrf.mxu1 }
 0x194   : > { %v7126_v1 = vpop.f32.mrf.mxu0  ;;  %v5316_v7 = vadd.f32 %v5315_v57, %v5314_v62  ;;  %v7128_v6 = vadd.f32 %v5625_v22, %v2761_v58 }
 0x195   : > { %v5317_v34 = vpop.f32.mrf.mxu1 }
 0x196   : > { %v7130_v54 = vpop.f32.mrf.mxu0  ;;  %v2766_v15 = vadd.f32 %v5316_v7, %v6963_v26 }
 0x197   : > { %v5318_v27 = vpop.f32.mrf.mxu1 }
 0x198   : > { %v7133_v51 = vpop.f32.mrf.mxu0  ;;  %v5319_v9 = vadd.f32 %v5318_v27, %v5317_v34  ;;  %v7135_v19 = vadd.f32 %v2926_v11, %v2766_v15 }
 0x199   : > { %v5320_v10 = vpop.f32.mrf.mxu1 }
 0x19a   : > { %v7137_v41 = vpop.f32.mrf.mxu0  ;;  %v2769_v3 = vadd.f32 %v5319_v9, %v6973_v43 }
 0x19b   : > { %v5321_v21 = vpop.f32.mrf.mxu1 }
 0x19c   : > { %v7140_v40 = vpop.f32.mrf.mxu0  ;;  %v5322_v22 = vadd.f32 %v5321_v21, %v5320_v10  ;;  %v7142_v32 = vadd.f32 %v2929_v18, %v2769_v3 }
 0x19d   : > { %v5323_v44 = vpop.f32.mrf.mxu1 }
 0x19e   : > { %v7144_v25 = vpop.f32.mrf.mxu0  ;;  %v2774_v26 = vadd.f32 %v5322_v22, %v6955_v37 }
 0x19f   : > { %7530 = vst [vmem:[#allocation4_spill] sm:$0xff] %v7144_v25  ;;  %v5324_v62 = vpop.f32.mrf.mxu1 }
 0x1a0   : > { %v7147_v58 = vpop.f32.mrf.mxu0  ;;  %v5325_v11 = vadd.f32 %v5324_v62, %v5323_v44  ;;  %v7149_v57 = vadd.f32 %v5628_v35, %v2774_v26 }
 0x1a1   : > { %v5326_v7 = vpop.f32.mrf.mxu1 }
 0x1a2   : > { %v7151_v34 = vpop.f32.mrf.mxu0  ;;  %v2777_v43 = vadd.f32 %v5325_v11, %v6967_v42 }
 0x1a3   : > { %7531 = vst [vmem:[#allocation5_spill] sm:$0xff] %v7151_v34  ;;  %v5327_v15 = vpop.f32.mrf.mxu1 }
 0x1a4   : > { %v7154_v27 = vpop.f32.mrf.mxu0  ;;  %v5328_v18 = vadd.f32 %v5327_v15, %v5326_v7  ;;  %v7156_v9 = vadd.f32 %v5629_v55, %v2777_v43 }
 0x1a5   : > { %v5329_v10 = vpop.f32.mrf.mxu1 }
 0x1a6   : > { %v7158_v3 = vpop.f32.mrf.mxu0  ;;  %v2782_v37 = vadd.f32 %v5328_v18, %v6987_v13 }
 0x1a7   : > { %7532 = vst [vmem:[#allocation6_spill] sm:$0xff] %v7158_v3  ;;  %v5330_v21 = vpop.f32.mrf.mxu1 }
 0x1a8   : > { %v7161_v22 = vpop.f32.mrf.mxu0  ;;  %v5331_v35 = vadd.f32 %v5330_v21, %v5329_v10  ;;  %v7163_v44 = vadd.f32 %v2942_v8, %v2782_v37 }
 0x1a9   : > { %v5332_v26 = vpop.f32.mrf.mxu1 }
 0x1aa   : > { %v7165_v62 = vpop.f32.mrf.mxu0  ;;  %v2785_v42 = vadd.f32 %v5331_v35, %v6997_v60 }
 0x1ab   : > { %7533 = vst [vmem:[#allocation7_spill] sm:$0xff] %v7165_v62  ;;  %v5333_v11 = vpop.f32.mrf.mxu1 }
 0x1ac   : > { %v7168_v7 = vpop.f32.mrf.mxu0  ;;  %v5334_v55 = vadd.f32 %v5333_v11, %v5332_v26  ;;  %v7170_v43 = vadd.f32 %v2945_v39, %v2785_v42 }
 0x1ad   : > { %v5335_v15 = vpop.f32.mrf.mxu1 }
 0x1ae   : > { %v7172_v17 = vpop.f32.mrf.mxu0  ;;  %v2790_v13 = vadd.f32 %v5334_v55, %v6979_v50 }
 0x1af   : > { %7534 = vst [vmem:[#allocation8_spill] sm:$0xff] %v7172_v17  ;;  %v5336_v18 = vpop.f32.mrf.mxu1 }
 0x1b0   : > { %v7175_v10 = vpop.f32.mrf.mxu0  ;;  %v5337_v8 = vadd.f32 %v5336_v18, %v5335_v15  ;;  %v7178_v37 = vadd.f32 %v7106_v29, %v2790_v13 }
 0x1b1   : > { %7535 = vst [vmem:[#allocation9_spill] sm:$0xff] %v7175_v10  ;;  %v5338_v21 = vpop.f32.mrf.mxu1 }
 0x1b2   : > { %v7180_v60 = vpop.f32.mrf.mxu0  ;;  %v2793_v35 = vadd.f32 %v5337_v8, %v6991_v49 }
 0x1b3   : > { %7536 = vst [vmem:[#allocation10_spill] sm:$0xff] %v7180_v60  ;;  %v5339_v26 = vpop.f32.mrf.mxu1 }
 0x1b4   : > { %v7183_v39 = vpop.f32.mrf.mxu0  ;;  %v5340_v42 = vadd.f32 %v5339_v26, %v5338_v21  ;;  %v7186_v11 = vadd.f32 %v7111_v12, %v2793_v35 }
 0x1b5   : > { %7537 = vst [vmem:[#allocation11_spill] sm:$0xff] %v7183_v39  ;;  %v5341_v50 = vpop.f32.mrf.mxu1 }
 0x1b6   : > { %v5438_v55 = vpop.f32.mrf.mxu0  ;;  %v2798_v17 = vadd.f32 %v5340_v42, %v7009_v28 }
 0x1b7   : > { %v5342_v15 = vpop.f32.mrf.mxu1 }
 0x1b8   : > { %v5439_v18 = vpop.f32.mrf.mxu0  ;;  %v5343_v29 = vadd.f32 %v5342_v15, %v5341_v50  ;;  %v7192_v60 = vadd.f32 %v7119_v16, %v2798_v17 }
 0x1b9   : > { %v7189_v13 = vadd.f32 %v5439_v18, %v5438_v55  ;;  %v5344_v49 = vpop.f32.mrf.mxu1 }
 0x1ba   : > { %v5441_v8 = vpop.f32.mrf.mxu0  ;;  %v2801_v39 = vadd.f32 %v5343_v29, %v7017_v59 }
 0x1bb   : > { %v5345_v21 = vpop.f32.mrf.mxu1 }
 0x1bc   : > { %v5442_v26 = vpop.f32.mrf.mxu0  ;;  %v5346_v12 = vadd.f32 %v5345_v21, %v5344_v49  ;;  %v7198_v10 = vadd.f32 %v7126_v1, %v2801_v39 }
 0x1bd   : > { %v7195_v35 = vadd.f32 %v5442_v26, %v5441_v8  ;;  %v5347_v28 = vpop.f32.mrf.mxu1 }
 0x1be   : > { %v7200_v42 = vpop.f32.mrf.mxu0  ;;  %v2806_v50 = vadd.f32 %v5346_v12, %v7020_v45 }
 0x1bf   : > { %v5348_v55 = vpop.f32.mrf.mxu1 }
 0x1c0   : > { %v7203_v17 = vpop.f32.mrf.mxu0  ;;  %v5349_v16 = vadd.f32 %v5348_v55, %v5347_v28  ;;  %v7206_v15 = vadd.f32 %v7116_v2, %v2806_v50 }
 0x1c1   : > { %v5350_v59 = vpop.f32.mrf.mxu1 }
 0x1c2   : > { %v7208_v18 = vpop.f32.mrf.mxu0  ;;  %v2809_v29 = vadd.f32 %v5349_v16, %v7030_v0 }
 0x1c3   : > { %v5351_v49 = vpop.f32.mrf.mxu1 }
 0x1c4   : > { %v7211_v1 = vpop.f32.mrf.mxu0  ;;  %v5352_v39 = vadd.f32 %v5351_v49, %v5350_v59  ;;  %v7214_v8 = vadd.f32 %v7123_v47, %v2809_v29 }
 0x1c5   : > { %v5353_v45 = vpop.f32.mrf.mxu1 }
 0x1c6   : > { %v7216_v21 = vpop.f32.mrf.mxu0  ;;  %v2814_v26 = vadd.f32 %v5352_v39, %v7039_v52 }
 0x1c7   : > { %v5354_v12 = vpop.f32.mrf.mxu1 }
 0x1c8   : > { %v7219_v2 = vpop.f32.mrf.mxu0  ;;  %v5355_v28 = vadd.f32 %v5354_v12, %v5353_v45  ;;  %v7222_v50 = vadd.f32 %v7133_v51, %v2814_v26 }
 0x1c9   : > { %v5356_v0 = vpop.f32.mrf.mxu1 }
 0x1ca   : > { %7538 = vst [vmem:[#allocation12_spill] sm:$0xff] %v7222_v50  ;;  %v7224_v55 = vpop.f32.mrf.mxu0  ;;  %v2817_v16 = vadd.f32 %v5355_v28, %v7047_v56 }
 0x1cb   : > { %v5357_v59 = vpop.f32.mrf.mxu1 }
 0x1cc   : > { %v7227_v47 = vpop.f32.mrf.mxu0  ;;  %v5358_v29 = vadd.f32 %v5357_v59, %v5356_v0  ;;  %v7230_v49 = vadd.f32 %v7140_v40, %v2817_v16 }
 0x1cd   : > { %v5359_v52 = vpop.f32.mrf.mxu1 }
 0x1ce   : > { %7539 = vst [vmem:[#allocation13_spill] sm:$0xff] %v7230_v49  ;;  %v7232_v39 = vpop.f32.mrf.mxu0  ;;  %v2822_v45 = vadd.f32 %v5358_v29, %v7052_v38 }
 0x1cf   : > { %v5360_v12 = vpop.f32.mrf.mxu1 }
 0x1d0   : > { %v7235_v51 = vpop.f32.mrf.mxu0  ;;  %v5361_v26 = vadd.f32 %v5360_v12, %v5359_v52  ;;  %v7238_v62 = vadd.f32 %v7130_v54, %v2822_v45 }
 0x1d1   : > { %v5362_v56 = vpop.f32.mrf.mxu1 }
 0x1d2   : > { %7540 = vst [vmem:[#allocation14_spill] sm:$0xff] %v7238_v62  ;;  %v7240_v28 = vpop.f32.mrf.mxu0  ;;  %v2825_v0 = vadd.f32 %v5361_v26, %v7059_v63 }
 0x1d3   : > { %v5363_v59 = vpop.f32.mrf.mxu1 }
 0x1d4   : > { %v7243_v40 = vpop.f32.mrf.mxu0  ;;  %v5364_v16 = vadd.f32 %v5363_v59, %v5362_v56  ;;  %v7246_v3 = vadd.f32 %v7137_v41, %v2825_v0 }
 0x1d5   : > { %v5365_v38 = vpop.f32.mrf.mxu1 }
 0x1d6   : > { %7541 = vst [vmem:[#allocation15_spill] sm:$0xff] %v7246_v3  ;;  %v7248_v29 = vpop.f32.mrf.mxu0  ;;  %v2830_v52 = vadd.f32 %v5364_v16, %v7068_v23 }
 0x1d7   : > { %v5366_v12 = vpop.f32.mrf.mxu1 }
 0x1d8   : > { %v7251_v54 = vpop.f32.mrf.mxu0  ;;  %v5367_v45 = vadd.f32 %v5366_v12, %v5365_v38  ;;  %v7254_v34 = vadd.f32 %v7147_v58, %v2830_v52 }
 0x1d9   : > { %v5368_v63 = vpop.f32.mrf.mxu1 }
 0x1da   : > { %7542 = vst [vmem:[#allocation16_spill] sm:$0xff] %v7254_v34  ;;  %v7256_v26 = vpop.f32.mrf.mxu0  ;;  %v2833_v56 = vadd.f32 %v5367_v45, %v7073_v31 }
 0x1db   : > { %v5369_v59 = vpop.f32.mrf.mxu1 }
 0x1dc   : > { %v7259_v41 = vpop.f32.mrf.mxu0  ;;  %v5370_v0 = vadd.f32 %v5369_v59, %v5368_v63  ;;  %v7262_v25 = vadd.f32 %v7154_v27, %v2833_v56 }
 0x1dd   : > { %v5371_v23 = vpop.f32.mrf.mxu1 }
 0x1de   : > { %7543 = vst [vmem:[#allocation17_spill] sm:$0xff] %v7262_v25  ;;  %v7264_v16 = vpop.f32.mrf.mxu0  ;;  %v7267_v38 = vadd.f32 %v5370_v0, %v7080_v5 }
 0x1df   : > { %v5372_v58 = vpop.f32.mrf.mxu1 }
 0x1e0   : > { %7544 = vst [vmem:[#allocation18_spill] sm:$0xff] %v7267_v38  ;;  %v7269_v52 = vpop.f32.mrf.mxu0  ;;  %v5373_v12 = vadd.f32 %v5372_v58, %v5371_v23 }
 0x1e1   : > { %v5374_v34 = vpop.f32.mrf.mxu1 }
 0x1e2   : > { %v7271_v49 = vpop.f32.mrf.mxu0  ;;  %v7274_v31 = vadd.f32 %v5373_v12, %v7089_v61 }
 0x1e3   : > { %v5375_v45 = vpop.f32.mrf.mxu1 }
 0x1e4   : > { %7545 = vst [vmem:[#allocation19_spill] sm:$0xff] %v7274_v31  ;;  %v7276_v63 = vpop.f32.mrf.mxu0  ;;  %v5376_v27 = vadd.f32 %v5375_v45, %v5374_v34 }
 0x1e5   : > { %v5377_v56 = vpop.f32.mrf.mxu1 }
 0x1e6   : > { %v7278_v59 = vpop.f32.mrf.mxu0  ;;  %v2846_v5 = vadd.f32 %v5376_v27, %v7083_v20 }
 0x1e7   : > { %v5378_v0 = vpop.f32.mrf.mxu1 }
 0x1e8   : > { %v7281_v25 = vpop.f32.mrf.mxu0  ;;  %v5379_v38 = vadd.f32 %v5378_v0, %v5377_v56  ;;  %v7284_v23 = vadd.f32 %v7161_v22, %v2846_v5 }
 0x1e9   : > { %v5380_v58 = vpop.f32.mrf.mxu1 }
 0x1ea   : > { %7546 = vst [vmem:[#allocation20_spill] sm:$0xff] %v7284_v23  ;;  %v7286_v3 = vpop.f32.mrf.mxu0  ;;  %v2849_v61 = vadd.f32 %v5379_v38, %v7092_v4 }
 0x1eb   : > { %v5381_v12 = vpop.f32.mrf.mxu1 }
 0x1ec   : > { %v7289_v31 = vpop.f32.mrf.mxu0  ;;  %v5382_v34 = vadd.f32 %v5381_v12, %v5380_v58  ;;  %v7292_v45 = vadd.f32 %v7168_v7, %v2849_v61 }
 0x1ed   : > { %v5383_v20 = vpop.f32.mrf.mxu1 }
 0x1ee   : > { %7547 = vst [vmem:[#allocation21_spill] sm:$0xff] %v7292_v45  ;;  %v7294_v27 = vpop.f32.mrf.mxu0  ;;  %v7297_v56 = vadd.f32 %v5382_v34, %v7076_v48 }
 0x1ef   : > { %v5384_v22 = vpop.f32.mrf.mxu1 }
 0x1f0   : > { %7548 = vst [vmem:[#allocation22_spill] sm:$0xff] %v7297_v56  ;;  %v7299_v5 = vpop.f32.mrf.mxu0  ;;  %v5385_v0 = vadd.f32 %v5384_v22, %v5383_v20 }
 0x1f1   : > { %v5386_v23 = vpop.f32.mrf.mxu1 }
 0x1f2   : > { %v7301_v62 = vpop.f32.mrf.mxu0  ;;  %v7304_v4 = vadd.f32 %v5385_v0, %v7086_v33 }
 0x1f3   : > { %v5387_v38 = vpop.f32.mrf.mxu1 }
 0x1f4   : > { %7549 = vst [vmem:[#allocation23_spill] sm:$0xff] %v7304_v4  ;;  %v7306_v58 = vpop.f32.mrf.mxu0  ;;  %v5388_v7 = vadd.f32 %v5387_v38, %v5386_v23 }
 0x1f5   : > { %v5389_v61 = vpop.f32.mrf.mxu1 }
 0x1f6   : > { %v7308_v12 = vpop.f32.mrf.mxu0  ;;  %v7311_v48 = vadd.f32 %v5388_v7, %v7098_v36 }
 0x1f7   : > { %v5390_v34 = vpop.f32.mrf.mxu1 }
 0x1f8   : > { %7550 = vst [vmem:[#allocation24_spill] sm:$0xff] %v7311_v48  ;;  %v7313_v45 = vpop.f32.mrf.mxu0  ;;  %v5391_v20 = vadd.f32 %v5390_v34, %v5389_v61 }
 0x1f9   : > { %v5392_v22 = vpop.f32.mrf.mxu1 }
 0x1fa   : > { %v7315_v56 = vpop.f32.mrf.mxu0  ;;  %v7318_v33 = vadd.f32 %v5391_v20, %v7104_v14  ;;  %v5446_v14 = vadd.f32 %v7203_v17, %v7200_v42 }
 0x1fb   : > { %7551 = vst [vmem:[#allocation25_spill] sm:$0xff] %v7315_v56  ;;  %v5393_v0 = vpop.f32.mrf.mxu1 }
 0x1fc   : > { %7552 = vst [vmem:[#allocation26_spill] sm:$0xff] %v7318_v33  ;;  %v7320_v4 = vpop.f32.mrf.mxu0  ;;  %v5394_v23 = vadd.f32 %v5393_v0, %v5392_v22  ;;  %v5449_v0 = vadd.f32 %v7211_v1, %v7208_v18  ;;  %v5458_v18 = vadd.f32 %v7235_v51, %v7232_v39 }
 0x1fd   : > { %7553 = vst [vmem:[#allocation27_spill] sm:$0xff] %v7320_v4  ;;  %v7322_v38 = vpop.f32.mrf.mxu1 }
 0x1fe   : > { %7554 = vst [vmem:[#allocation28_spill] sm:$0xff] %v7322_v38  ;;  %v7324_v50 = vpop.f32.mrf.mxu0  ;;  %v7327_v36 = vadd.f32 %v5394_v23, %v7095_v53 }
 0x1ff   : > { %v7329_v7 = vpop.f32.mrf.mxu1 }
 0x200   : > { %7555 = vst [vmem:[#allocation29_spill] sm:$0xff] %v7327_v36  ;;  %7556 = vst [vmem:[#allocation30_spill] sm:$0xff] %v7329_v7  ;;  %v7331_v61 = vpop.f32.mrf.mxu0 }
 0x201   : > { %v5672_v34 = vpop.f32.mrf.mxu1 }
 0x202   : > { %v7333_v48 = vpop.f32.mrf.mxu0  ;;  %v3902_v33 = vadd.f32 %v5672_v34, %v5446_v14 }
 0x203   : > { %v3893_v20 = vpop.f32.mrf.mxu1 }
 0x204   : > { %v7337_v22 = vpop.f32.mrf.mxu0  ;;  %v3894_v53 = vadd.f32 %v7189_v13, %v3893_v20  ;;  %v4022_v42 = vadd.f32 %v3902_v33, %v7121_v46  ;;  %v5455_v20 = vadd.f32 %v7227_v47, %v7224_v55 }
 0x205   : > { %7557 = vst [vmem:[#allocation31_spill] sm:$0xff] %v7337_v22  ;;  %v5673_v23 = vpop.f32.mrf.mxu1 }
 0x206   : > { %v7342_v36 = vpop.f32.mrf.mxu0  ;;  %v4020_v7 = vadd.f32 %v3894_v53, %v7109_v30  ;;  %v3905_v38 = vadd.f32 %v5673_v23, %v5449_v0 }
 0x207   : > { %v3896_v4 = vpop.f32.mrf.mxu1 }
 0x208   : > { %v7345_v56 = vpop.f32.mrf.mxu0  ;;  %v4023_v17 = vadd.f32 %v3905_v38, %v7128_v6  ;;  %v3897_v22 = vadd.f32 %v7195_v35, %v3896_v4  ;;  %v5452_v6 = vadd.f32 %v7219_v2, %v7216_v21  ;;  %v5461_v35 = vadd.f32 %v7243_v40, %v7240_v28 }
 0x209   : > { %v5676_v30 = vpop.f32.mrf.mxu1  ;;  %v4247_v33 = vmul.f32 %v4020_v7, %v4020_v7  ;;  %v4249_v21 = vmul.f32 %v4022_v42, %v4022_v42 }
 0x20a   : > { %v7359_v13 = vpop.f32.mrf.mxu0  ;;  %v5048_v1 = vpack.c.bf16 %v4023_v17, %v4022_v42  ;;  %v4021_v46 = vadd.f32 %v3897_v22, %v7114_v24  ;;  %v3918_v39 = vadd.f32 %v5676_v30, %v5458_v18  ;;  %v4250_v53 = vmul.f32 %v4023_v17, %v4023_v17 }
 0x20b   : > { %v3909_v51 = vpop.f32.mrf.mxu1 }
 0x20c   : > { %v7366_v4 = vpop.f32.mrf.mxu0  ;;  %5135 = vst [vmem:[%s7357_s9 + $0x8] sm:$0xff] %v5048_v1   ;;  %v5043_v38 = vpack.c.bf16 %v4021_v46, %v4020_v7  ;;  %v4213_v34 = vadd.f32 %v4021_v46, %v4020_v7  ;;  %v4248_v14 = vmul.f32 %v4021_v46, %v4021_v46  ;;  %v3910_v24 = vadd.f32 %v5452_v6, %v3909_v51 }
 0x20d   : > { %v5677_v22 = vpop.f32.mrf.mxu1  ;;  %v4026_v23 = vadd.f32 %v3918_v39, %v7149_v57  ;;  %v5464_v6 = vadd.f32 %v7251_v54, %v7248_v29 }
 0x20e   : > { %v7371_v0 = vpop.f32.mrf.mxu0  ;;  %5044 = vst [vmem:[%s7357_s9] sm:$0xff] %v5043_v38   ;;  %v4214_v2 = vadd.f32 %v4213_v34, %v4022_v42  ;;  %v4279_v28 = vadd.f32 %v4248_v14, %v4247_v33  ;;  %v3921_v40 = vadd.f32 %v5677_v22, %v5461_v35  ;;  %v4024_v18 = vadd.f32 %v3910_v24, %v7135_v19 }
 0x20f   : > { %v3912_v30 = vpop.f32.mrf.mxu1  ;;  %v5470_v42 = vadd.f32 %v7269_v52, %v7264_v16 }
 0x210   : > { %v7376_v7 = vpop.f32.mrf.mxu0  ;;  %v4280_v1 = vadd.f32 %v4279_v28, %v4249_v21  ;;  %v4215_v46 = vadd.f32 %v4214_v2, %v4023_v17  ;;  %v4027_v55 = vadd.f32 %v3921_v40, %v7156_v9  ;;  %v3913_v47 = vadd.f32 %v5455_v20, %v3912_v30 }
 0x211   : > { %v5680_v35 = vpop.f32.mrf.mxu1  ;;  %v4251_v19 = vmul.f32 %v4024_v18, %v4024_v18  ;;  %v5473_v9 = vadd.f32 %v7276_v63, %v7271_v49  ;;  %v4253_v2 = vmul.f32 %v4026_v23, %v4026_v23 }
 0x212   : > { %v7383_v51 = vpop.f32.mrf.mxu0  ;;  %v4216_v57 = vadd.f32 %v4215_v46, %v4024_v18  ;;  %v4281_v39 = vadd.f32 %v4280_v1, %v4250_v53  ;;  %v5058_v33 = vpack.c.bf16 %v4027_v55, %v4026_v23  ;;  %v4025_v38 = vadd.f32 %v3913_v47, %v7142_v32 }
 0x213   : > { %v3925_v17 = vpop.f32.mrf.mxu1  ;;  %v3934_v54 = vadd.f32 %v5680_v35, %v5470_v42  ;;  %v5467_v32 = vadd.f32 %v7259_v41, %v7256_v26  ;;  %v4254_v46 = vmul.f32 %v4027_v55, %v4027_v55 }
 0x214   : > { %v7386_v34 = vpop.f32.mrf.mxu0  ;;  %v4282_v29 = vadd.f32 %v4281_v39, %v4251_v19  ;;  %5137 = vst [vmem:[%s7357_s9 + $0x18] sm:$0xff] %v5058_v33   ;;  %v3926_v16 = vadd.f32 %v5464_v6, %v3925_v17  ;;  %v5053_v52 = vpack.c.bf16 %v4025_v38, %v4024_v18  ;;  %v4217_v14 = vadd.f32 %v4216_v57, %v4025_v38 }
 0x215   : > { %v4252_v20 = vmul.f32 %v4025_v38, %v4025_v38  ;;  %v5681_v24 = vpop.f32.mrf.mxu1  ;;  %v4030_v18 = vadd.f32 %v3934_v54, %v7178_v37  ;;  %v5485_v37 = vadd.f32 %v7306_v58, %v7301_v62  ;;  %v5479_v62 = vadd.f32 %v7289_v31, %v7286_v3 }
 0x216   : > { %v7391_v22 = vpop.f32.mrf.mxu0  ;;  %v3937_v21 = vadd.f32 %v5681_v24, %v5473_v9  ;;  %5136 = vst [vmem:[%s7357_s9 + $0x10] sm:$0xff] %v5053_v52   ;;  %v4218_v28 = vadd.f32 %v4217_v14, %v4026_v23  ;;  %v4028_v49 = vadd.f32 %v3926_v16, %v7163_v44  ;;  %v5476_v23 = vadd.f32 %v7281_v25, %v7278_v59 }
 0x217   : > { %v4283_v40 = vadd.f32 %v4282_v29, %v4252_v20  ;;  %v3928_v63 = vpop.f32.mrf.mxu1  ;;  %v5482_v44 = vadd.f32 %v7299_v5, %v7294_v27  ;;  %v4257_v58 = vmul.f32 %v4030_v18, %v4030_v18 }
 0x218   : > { %v7397_v53 = vpop.f32.mrf.mxu0  ;;  %v4031_v30 = vadd.f32 %v3937_v21, %v7186_v11  ;;  %v3929_v1 = vadd.f32 %v5467_v32, %v3928_v63  ;;  %v4219_v6 = vadd.f32 %v4218_v28, %v4027_v55  ;;  %v4255_v57 = vmul.f32 %v4028_v49, %v4028_v49 }
 0x219   : > { %v4284_v47 = vadd.f32 %v4283_v40, %v4253_v2  ;;  %v5684_v26 = vpop.f32.mrf.mxu1  ;;  %v5488_v40 = vadd.f32 %v7313_v45, %v7308_v12 }
 0x21a   : > { %v7401_v41 = vpop.f32.mrf.mxu0  ;;  %v5068_v42 = vpack.c.bf16 %v4031_v30, %v4030_v18  ;;  %v4029_v35 = vadd.f32 %v3929_v1, %v7170_v43  ;;  %v4220_v11 = vadd.f32 %v4219_v6, %v4028_v49  ;;  %v3950_v25 = vadd.f32 %v5684_v26, %v5482_v44 }
 0x21b   : > { %v4285_v19 = vadd.f32 %v4284_v47, %v4254_v46  ;;  %v3941_v55 = vpop.f32.mrf.mxu1  ;;  %v4258_v21 = vmul.f32 %v4031_v30, %v4031_v30 }
 0x21c   : > { %v7410_v39 = vpop.f32.mrf.mxu0  ;;  %5139 = vst [vmem:[%s7357_s9 + $0x28] sm:$0xff] %v5068_v42   ;;  %v5063_v33 = vpack.c.bf16 %v4029_v35, %v4028_v49  ;;  %v4256_v38 = vmul.f32 %v4029_v35, %v4029_v35  ;;  %v3942_v59 = vadd.f32 %v5476_v23, %v3941_v55  ;;  %v4221_v27 = vadd.f32 %v4220_v11, %v4029_v35  ;;  %v7560_v42 = vld [vmem:[#allocation27_spill] sm:$0xff] }
 0x21d   : > { %v4286_v17 = vadd.f32 %v4285_v19, %v4255_v57  ;;  %v5685_v5 = vpop.f32.mrf.mxu1  ;;  %v4034_v20 = vadd.f32 %v3950_v25, %v7206_v15  ;;  %v7558_v15 = vld [vmem:[#allocation31_spill] sm:$0xff]  ;;  %v7561_v19 = vld [vmem:[#allocation12_spill] sm:$0xff]  ;;  %v7562_v25 = vld [vmem:[#allocation14_spill] sm:$0xff] }
 0x21e   : > { %v7413_v9 = vpop.f32.mrf.mxu0  ;;  %5138 = vst [vmem:[%s7357_s9 + $0x20] sm:$0xff] %v5063_v33   ;;  %v3953_v43 = vadd.f32 %v5685_v5, %v5485_v37  ;;  %v4222_v29 = vadd.f32 %v4221_v27, %v4030_v18  ;;  %v4032_v16 = vadd.f32 %v3942_v59, %v7192_v60  ;;  %v5494_v60 = vadd.f32 %v7331_v61, %v7324_v50 }
 0x21f   : > { %v4287_v54 = vadd.f32 %v4286_v17, %v4256_v38  ;;  %v3944_v52 = vpop.f32.mrf.mxu1  ;;  %v4261_v37 = vmul.f32 %v4034_v20, %v4034_v20  ;;  %v7563_v17 = vld [vmem:[#allocation15_spill] sm:$0xff] }
 0x220   : > { %v7419_v14 = vpop.f32.mrf.mxu0  ;;  %v4035_v24 = vadd.f32 %v3953_v43, %v7214_v8  ;;  %v3945_v32 = vadd.f32 %v5479_v62, %v3944_v52  ;;  %v4223_v28 = vadd.f32 %v4222_v29, %v4031_v30  ;;  %v5497_v8 = vadd.f32 %v7558_v15, %v7333_v48 }
 0x221   : > { %v4288_v2 = vadd.f32 %v4287_v54, %v4257_v58  ;;  %v5688_v3 = vpop.f32.mrf.mxu1  ;;  %v4259_v1 = vmul.f32 %v4032_v16, %v4032_v16  ;;  %v5506_v52 = vadd.f32 %v7376_v7, %v7371_v0 }
 0x222   : > { %v7423_v31 = vpop.f32.mrf.mxu0  ;;  %v5078_v49 = vpack.c.bf16 %v4035_v24, %v4034_v20  ;;  %v4033_v63 = vadd.f32 %v3945_v32, %v7198_v10  ;;  %v4224_v18 = vadd.f32 %v4223_v28, %v4032_v16  ;;  %v3966_v45 = vadd.f32 %v5688_v3, %v5494_v60  ;;  %v7559_v10 = vld [vmem:[#allocation25_spill] sm:$0xff] }
 0x223   : > { %v4289_v46 = vadd.f32 %v4288_v2, %v4258_v21  ;;  %v3957_v30 = vpop.f32.mrf.mxu1  ;;  %v5491_v48 = vadd.f32 %v7560_v42, %v7559_v10  ;;  %v4262_v62 = vmul.f32 %v4035_v24, %v4035_v24  ;;  %v7564_v32 = vld [vmem:[#allocation13_spill] sm:$0xff]  ;;  %v5509_v2 = vadd.f32 %v7386_v34, %v7383_v51  ;;  %v7565_v51 = vld [vmem:[#allocation18_spill] sm:$0xff]  ;;  %v7566_v34 = vld [vmem:[#allocation4_spill] sm:$0xff] }
 0x224   : > { %v7432_v47 = vpop.f32.mrf.mxu0  ;;  %5141 = vst [vmem:[%s7357_s9 + $0x38] sm:$0xff] %v5078_v49   ;;  %v5073_v6 = vpack.c.bf16 %v4033_v63, %v4032_v16  ;;  %v4260_v26 = vmul.f32 %v4033_v63, %v4033_v63  ;;  %v3958_v12 = vadd.f32 %v5488_v40, %v3957_v30  ;;  %v4225_v50 = vadd.f32 %v4224_v18, %v4033_v63  ;;  %v7568_v30 = vld [vmem:[#allocation5_spill] sm:$0xff] }
 0x225   : > { %v4290_v23 = vadd.f32 %v4289_v46, %v4259_v1  ;;  %v5689_v61 = vpop.f32.mrf.mxu1  ;;  %v4038_v59 = vadd.f32 %v3966_v45, %v7562_v25  ;;  %v5500_v16 = vadd.f32 %v7345_v56, %v7342_v36  ;;  %v5503_v18 = vadd.f32 %v7366_v4, %v7359_v13  ;;  %v7567_v46 = vld [vmem:[#allocation19_spill] sm:$0xff]  ;;  %v7570_v25 = vld [vmem:[#allocation17_spill] sm:$0xff] }
 0x226   : > { %v7435_v44 = vpop.f32.mrf.mxu0  ;;  %5140 = vst [vmem:[%s7357_s9 + $0x30] sm:$0xff] %v5073_v6   ;;  %v3969_v35 = vadd.f32 %v5689_v61, %v5497_v8  ;;  %v4226_v11 = vadd.f32 %v4225_v50, %v4034_v20  ;;  %v4036_v55 = vadd.f32 %v3958_v12, %v7561_v19  ;;  %v2999_v1 = vadd.f32 %v7566_v34, %v7565_v51  ;;  %v7569_v50 = vld [vmem:[#allocation16_spill] sm:$0xff] }
 0x227   : > { %v4291_v57 = vadd.f32 %v4290_v23, %v4260_v26  ;;  %v3960_v33 = vpop.f32.mrf.mxu1  ;;  %v3002_v6 = vadd.f32 %v7568_v30, %v7567_v46  ;;  %v4265_v45 = vmul.f32 %v4038_v59, %v4038_v59  ;;  %v5512_v19 = vadd.f32 %v7397_v53, %v7391_v22  ;;  %v7571_v53 = vld [vmem:[#allocation28_spill] sm:$0xff] }
 0x228   : > { %v7441_v38 = vpop.f32.mrf.mxu0  ;;  %v4039_v27 = vadd.f32 %v3969_v35, %v7563_v17  ;;  %v3961_v5 = vadd.f32 %v5491_v48, %v3960_v33  ;;  %v4227_v58 = vadd.f32 %v4226_v11, %v4035_v24  ;;  %v4263_v3 = vmul.f32 %v4036_v55, %v4036_v55 }
 0x229   : > { %v4292_v43 = vadd.f32 %v4291_v57, %v4261_v37  ;;  %v5692_v29 = vpop.f32.mrf.mxu1 }
 0x22a   : > { %v7445_v54 = vpop.f32.mrf.mxu0  ;;  %v5088_v20 = vpack.c.bf16 %v4039_v27, %v4038_v59  ;;  %v4037_v21 = vadd.f32 %v3961_v5, %v7564_v32  ;;  %v4228_v28 = vadd.f32 %v4227_v58, %v4036_v55  ;;  %v3982_v56 = vadd.f32 %v5692_v29, %v5506_v52 }
 0x22b   : > { %v4293_v40 = vadd.f32 %v4292_v43, %v4262_v62  ;;  %v3973_v24 = vpop.f32.mrf.mxu1  ;;  %v4266_v13 = vmul.f32 %v4039_v27, %v4039_v27  ;;  %v5521_v43 = vadd.f32 %v7432_v47, %v7423_v31  ;;  %v7575_v47 = vld [vmem:[#allocation23_spill] sm:$0xff] }
 0x22c   : > { %v7454_v60 = vpop.f32.mrf.mxu0  ;;  %5143 = vst [vmem:[%s7357_s9 + $0x48] sm:$0xff] %v5088_v20   ;;  %v5083_v49 = vpack.c.bf16 %v4037_v21, %v4036_v55  ;;  %v4264_v63 = vmul.f32 %v4037_v21, %v4037_v21  ;;  %v3974_v36 = vadd.f32 %v5500_v16, %v3973_v24  ;;  %v4229_v0 = vadd.f32 %v4228_v28, %v4037_v21  ;;  %v7572_v20 = vld [vmem:[#allocation30_spill] sm:$0xff] }
 0x22d   : > { %v4294_v15 = vadd.f32 %v4293_v40, %v4263_v3  ;;  %v5693_v7 = vpop.f32.mrf.mxu1  ;;  %v4042_v48 = vadd.f32 %v3982_v56, %v2999_v1  ;;  %v5518_v55 = vadd.f32 %v7419_v14, %v7413_v9  ;;  %v5397_v9 = vadd.f32 %v7572_v20, %v7571_v53  ;;  %v7573_v28 = vld [vmem:[#allocation22_spill] sm:$0xff]  ;;  %v7576_v40 = vld [vmem:[#allocation7_spill] sm:$0xff] }
 0x22e   : > { %v5528_v8 = vpop.f32.mrf.mxu0  ;;  %5142 = vst [vmem:[%s7357_s9 + $0x40] sm:$0xff] %v5083_v49   ;;  %v3985_v26 = vadd.f32 %v5693_v7, %v5509_v2  ;;  %v4230_v12 = vadd.f32 %v4229_v0, %v4038_v59  ;;  %v4040_v61 = vadd.f32 %v3974_v36, %v7569_v50  ;;  %v5515_v2 = vadd.f32 %v7410_v39, %v7401_v41  ;;  %v7574_v3 = vld [vmem:[#allocation6_spill] sm:$0xff]  ;;  %v7578_v39 = vld [vmem:[#allocation3_spill] sm:$0xff]  ;;  %v7579_v50 = vld [vmem:[#allocation21_spill] sm:$0xff] }
 0x22f   : > { %v4295_v23 = vadd.f32 %v4294_v15, %v4264_v63  ;;  %v3976_v10 = vpop.f32.mrf.mxu1  ;;  %v3015_v31 = vadd.f32 %v7574_v3, %v7573_v28  ;;  %v3018_v24 = vadd.f32 %v7576_v40, %v7575_v47  ;;  %v4269_v63 = vmul.f32 %v4042_v48, %v4042_v48  ;;  %v7577_v15 = vld [vmem:[#allocation20_spill] sm:$0xff] }
 0x230   : > { %v5529_v42 = vpop.f32.mrf.mxu0  ;;  %v4043_v35 = vadd.f32 %v3985_v26, %v3002_v6  ;;  %v3977_v37 = vadd.f32 %v5503_v18, %v3976_v10  ;;  %v4231_v11 = vadd.f32 %v4230_v12, %v4039_v27  ;;  %v4267_v5 = vmul.f32 %v4040_v61, %v4040_v61 }
 0x231   : > { %v4296_v4 = vadd.f32 %v4295_v23, %v4265_v45  ;;  %v5696_v57 = vpop.f32.mrf.mxu1  ;;  %v5530_v41 = vadd.f32 %v5529_v42, %v5528_v8  ;;  %v2873_v46 = vadd.f32 %v5397_v9, %v7578_v39  ;;  %v5524_v12 = vadd.f32 %v7441_v38, %v7435_v44  ;;  %v7582_v38 = vld [vmem:[#allocation29_spill] sm:$0xff]  ;;  %v7585_v9 = vld [vmem:[#allocation26_spill] sm:$0xff] }
 0x232   : > { %v5098_v33 = vpack.c.bf16 %v4043_v35, %v4042_v48  ;;  %v4041_v59 = vadd.f32 %v3977_v37, %v7570_v25  ;;  %v4232_v17 = vadd.f32 %v4231_v11, %v4040_v61  ;;  %v5531_v29 = vpop.f32.mrf.mxu0  ;;  %v3998_v52 = vadd.f32 %v5696_v57, %v5518_v55  ;;  %v7580_v55 = vld [vmem:[#allocation24_spill] sm:$0xff] }
 0x233   : > { %v4297_v62 = vadd.f32 %v4296_v4, %v4266_v13  ;;  %v3989_v58 = vpop.f32.mrf.mxu1  ;;  %v4270_v30 = vmul.f32 %v4043_v35, %v4043_v35 }
 0x234   : > { %5145 = vst [vmem:[%s7357_s9 + $0x58] sm:$0xff] %v5098_v33   ;;  %v5093_v27 = vpack.c.bf16 %v4041_v59, %v4040_v61  ;;  %v4268_v16 = vmul.f32 %v4041_v59, %v4041_v59  ;;  %v3990_v22 = vadd.f32 %v5512_v19, %v3989_v58  ;;  %v4233_v32 = vadd.f32 %v4232_v17, %v4041_v59  ;;  %v5532_v18 = vpop.f32.mrf.mxu0  ;;  %v7581_v33 = vld [vmem:[#allocation9_spill] sm:$0xff]  ;;  %v7583_v59 = vld [vmem:[#allocation8_spill] sm:$0xff] }
 0x235   : > { %v4298_v14 = vadd.f32 %v4297_v62, %v4267_v5  ;;  %v5697_v21 = vpop.f32.mrf.mxu1  ;;  %v4046_v51 = vadd.f32 %v3998_v52, %v3015_v31  ;;  %v5533_v10 = vadd.f32 %v5532_v18, %v5531_v29  ;;  %v3023_v25 = vadd.f32 %v7581_v33, %v7580_v55  ;;  %v7584_v5 = vld [vmem:[#allocation10_spill] sm:$0xff] }
 0x236   : > { %5144 = vst [vmem:[%s7357_s9 + $0x50] sm:$0xff] %v5093_v27   ;;  %v4001_v49 = vadd.f32 %v5697_v21, %v5521_v43  ;;  %v4234_v56 = vadd.f32 %v4233_v32, %v4042_v48  ;;  %v4044_v0 = vadd.f32 %v3990_v22, %v7577_v15  ;;  %v3031_v17 = vadd.f32 %v7583_v59, %v7582_v38 }
 0x237   : > { %v4299_v36 = vadd.f32 %v4298_v14, %v4268_v16  ;;  %v3992_v7 = vpop.f32.mrf.mxu1  ;;  %v3034_v62 = vadd.f32 %v7584_v5, %v2873_v46  ;;  %v5527_v43 = vadd.f32 %v7454_v60, %v7445_v54  ;;  %v4273_v29 = vmul.f32 %v4046_v51, %v4046_v51  ;;  %v7586_v14 = vld [vmem:[#allocation11_spill] sm:$0xff] }
 0x238   : > { %v4047_v34 = vadd.f32 %v4001_v49, %v3018_v24  ;;  %v3993_v1 = vadd.f32 %v5515_v2, %v3992_v7  ;;  %v4235_v26 = vadd.f32 %v4234_v56, %v4043_v35  ;;  %v4271_v37 = vmul.f32 %v4044_v0, %v4044_v0 }
 0x239   : > { %v4300_v6 = vadd.f32 %v4299_v36, %v4269_v63  ;;  %v5700_v45 = vpop.f32.mrf.mxu1  ;;  %v3026_v32 = vadd.f32 %v7586_v14, %v7585_v9 }
 0x23a   : > { %v5108_v23 = vpack.c.bf16 %v4047_v34, %v4046_v51  ;;  %v4045_v61 = vadd.f32 %v3993_v1, %v7579_v50  ;;  %v4236_v48 = vadd.f32 %v4235_v26, %v4044_v0  ;;  %v4014_v11 = vadd.f32 %v5700_v45, %v5530_v41 }
 0x23b   : > { %v4301_v13 = vadd.f32 %v4300_v6, %v4270_v30  ;;  %v4005_v4 = vpop.f32.mrf.mxu1  ;;  %v4274_v2 = vmul.f32 %v4047_v34, %v4047_v34 }
 0x23c   : > { %5147 = vst [vmem:[%s7357_s9 + $0x68] sm:$0xff] %v5108_v23   ;;  %v5103_v8 = vpack.c.bf16 %v4045_v61, %v4044_v0  ;;  %v4272_v42 = vmul.f32 %v4045_v61, %v4045_v61  ;;  %v4006_v57 = vadd.f32 %v5524_v12, %v4005_v4  ;;  %v4237_v35 = vadd.f32 %v4236_v48, %v4045_v61 }
 0x23d   : > { %v4302_v19 = vadd.f32 %v4301_v13, %v4271_v37  ;;  %v5701_v44 = vpop.f32.mrf.mxu1  ;;  %v4050_v53 = vadd.f32 %v4014_v11, %v3031_v17 }
 0x23e   : > { %5146 = vst [vmem:[%s7357_s9 + $0x60] sm:$0xff] %v5103_v8   ;;  %v4017_v58 = vadd.f32 %v5701_v44, %v5533_v10  ;;  %v4238_v27 = vadd.f32 %v4237_v35, %v4046_v51  ;;  %v4048_v52 = vadd.f32 %v4006_v57, %v3023_v25 }
 0x23f   : > { %v4303_v16 = vadd.f32 %v4302_v19, %v4272_v42  ;;  %v4008_v22 = vpop.f32.mrf.mxu1  ;;  %v4277_v36 = vmul.f32 %v4050_v53, %v4050_v53 }
 0x240   : > { %v4051_v20 = vadd.f32 %v4017_v58, %v3034_v62  ;;  %v4009_v21 = vadd.f32 %v5527_v43, %v4008_v22  ;;  %v4239_v3 = vadd.f32 %v4238_v27, %v4047_v34  ;;  %v4275_v47 = vmul.f32 %v4048_v52, %v4048_v52 }
 0x241   : > { %v4304_v28 = vadd.f32 %v4303_v16, %v4273_v29 }
 0x242   : > { %v5118_v54 = vpack.c.bf16 %v4051_v20, %v4050_v53  ;;  %v4049_v60 = vadd.f32 %v4009_v21, %v3026_v32  ;;  %v4240_v31 = vadd.f32 %v4239_v3, %v4048_v52  ;;  %v4278_v7 = vmul.f32 %v4051_v20, %v4051_v20 }
 0x243   : > { %v4305_v40 = vadd.f32 %v4304_v28, %v4274_v2 }
 0x244   : > { %5149 = vst [vmem:[%s7357_s9 + $0x78] sm:$0xff] %v5118_v54   ;;  %v5113_v24 = vpack.c.bf16 %v4049_v60, %v4048_v52  ;;  %v4276_v49 = vmul.f32 %v4049_v60, %v4049_v60  ;;  %v4241_v56 = vadd.f32 %v4240_v31, %v4049_v60 }
 0x245   : > { %v4306_v63 = vadd.f32 %v4305_v40, %v4275_v47 }
 0x246   : > { %5148 = vst [vmem:[%s7357_s9 + $0x70] sm:$0xff] %v5113_v24   ;;  %v4242_v15 = vadd.f32 %v4241_v56, %v4050_v53 }
 0x247   : > { %v4307_v0 = vadd.f32 %v4306_v63, %v4276_v49 }
 0x248   : > { %v4243_v18 = vadd.f32 %v4242_v15, %v4051_v20 }
 0x249   : > { %v4308_v51 = vadd.f32 %v4307_v0, %v4277_v36 }
 0x24a   : > { %4245 = vst [vmem:[%s293_s12] sm:$0xff] %v4243_v18 }
 0x24b   : > { %v4309_v34 = vadd.f32 %v4308_v51, %v4278_v7 }
 0x24d   : > { %4311 = vst [vmem:[%s297_s16] sm:$0xff] %v4309_v34 }
 0x24e PF: > { %s17_s23 = sadd.s32 1, %s5942_s23   ;;  %s7587_s21 = smov %s5938_s22 }
 0x24f   : > { %p14_p5 = scmp.ge.s32.totalorder %s17_s23, 4   ;;  %s7588_s22 = smov %s7590_s24 }
 0x251   :  { %16 = sbr.rel (!%p14_p5) target bundleno = 2 (0x2), region = 100 }

</bundles_post_ra>
